<compile_context>
chip_gen: v7x
topology: tpu7x:2x2x1
jax: 0.10.0
libtpu: 0.0.40
codegen_flags: <defaults>
</compile_context>

<pallas_src>
import functools

import jax
import jax.numpy as jnp
import numpy as np
from jax import lax
from jax.experimental import pallas as pl
from jax.experimental.pallas import tpu as pltpu


def _round_up(x, m):
    return ((x + m - 1) // m) * m


def _choose_tile_n(N, T, H, din):
    """Pick an MXU/VMEM-friendly tile along the N = B*A axis."""
    if N < 128:
        return _round_up(max(N, 8), 8)          # single (or few) sublane-aligned blocks
    # rough per-row VMEM bytes: 5 scratch bufs + lstm out block (x2 buf) + inputs (x2 buf)
    bytes_per_row = 4 * (5 * H + 2 * H + 2 * din + 8 * H)
    budget = 20 * 1024 * 1024
    tile = 256
    while tile > 128 and T * tile * bytes_per_row > budget:
        tile //= 2
    return tile


# ----------------------------- Pallas kernel ------------------------------ #
def _reward_kernel(T, TILE_N, H, FUSE_REC,
                   # inputs
                   s_ref, a_ref,
                   w1s_ref, w1a_ref, b1_ref, w2_ref, b2_ref, w3_ref, b3_ref,
                   wih_i_ref, wih_f_ref, wih_g_ref, wih_o_ref,
                   whh_i_ref, whh_f_ref, whh_g_ref, whh_o_ref,
                   bg_i_ref, bg_f_ref, bg_g_ref, bg_o_ref,
                   t1h_ref, t1l_ref, tb1_ref, t2_ref, tb2_ref, t3_ref, tb3_ref,
                   wl_ref, bl_ref,
                   # outputs
                   y_ref, lstm_ref,
                   # scratch
                   pre_scr, pi_scr, pf_scr, pg_scr, po_scr):
    NT = T * TILE_N

    def mm(a, b):
        return jnp.dot(a, b, preferred_element_type=jnp.float32)

    # ---- batched (all timesteps) head MLP; concat folded into first matmul ----
    s_all = s_ref[...].reshape(NT, s_ref.shape[-1])             # [NT, obs]
    a_all = a_ref[...].reshape(NT, a_ref.shape[-1])             # [NT, act]
    h1 = jnp.maximum(mm(s_all, w1s_ref[...]) + mm(a_all, w1a_ref[...]) + b1_ref[...], 0.0)
    h2 = jnp.maximum(mm(h1, w2_ref[...]) + b2_ref[...], 0.0)
    h3 = jnp.maximum(mm(h2, w3_ref[...]) + b3_ref[...], 0.0)    # [NT, H]

    # ---- lstm-independent half of the tail MLP's first layer, precomputed ----
    pre_scr[...] = mm(h3, t1h_ref[...]) + tb1_ref[...]

    # ---- batched per-gate input projections (i, f, g, o) ----
    pi_scr[...] = mm(h3, wih_i_ref[...]) + bg_i_ref[...]
    pf_scr[...] = mm(h3, wih_f_ref[...]) + bg_f_ref[...]
    pg_scr[...] = mm(h3, wih_g_ref[...]) + bg_g_ref[...]
    po_scr[...] = mm(h3, wih_o_ref[...]) + bg_o_ref[...]

    # hoist recurrent weights out of the time loop
    if FUSE_REC:
        # H is a multiple of 128: lane-concat is aligned, one matmul per step.
        whh_all = jnp.concatenate(
            [whh_i_ref[...], whh_f_ref[...], whh_g_ref[...], whh_o_ref[...]], axis=-1)
    else:
        whh_i = whh_i_ref[...]
        whh_f = whh_f_ref[...]
        whh_g = whh_g_ref[...]
        whh_o = whh_o_ref[...]

    # ---- recurrence: only h_prev @ whh + elementwise cell per step ----
    def step(t, carry):
        h_prev, c_prev = carry
        off = pl.multiple_of(t * TILE_N, TILE_N)
        if FUSE_REC:
            rec = mm(h_prev, whh_all)                            # [TILE_N, 4H]
            r_i = rec[:, 0 * H:1 * H]
            r_f = rec[:, 1 * H:2 * H]
            r_g = rec[:, 2 * H:3 * H]
            r_o = rec[:, 3 * H:4 * H]
        else:
            r_i = mm(h_prev, whh_i)
            r_f = mm(h_prev, whh_f)
            r_g = mm(h_prev, whh_g)
            r_o = mm(h_prev, whh_o)
        i_g = jax.nn.sigmoid(pi_scr[pl.ds(off, TILE_N), :] + r_i)
        f_g = jax.nn.sigmoid(pf_scr[pl.ds(off, TILE_N), :] + r_f)
        g_g = jnp.tanh(pg_scr[pl.ds(off, TILE_N), :] + r_g)
        o_g = jax.nn.sigmoid(po_scr[pl.ds(off, TILE_N), :] + r_o)
        c_new = f_g * c_prev + i_g * g_g
        h_new = o_g * jnp.tanh(c_new)
        lstm_ref[t] = h_new                                      # [TILE_N, H]
        return (h_new, c_new)

    h0 = jnp.zeros((TILE_N, H), jnp.float32)
    c0 = jnp.zeros((TILE_N, H), jnp.float32)
    unroll = T if T <= 16 else 8
    lax.fori_loop(0, T, step, (h0, c0), unroll=unroll)

    # ---- batched tail MLP + final projection (single store, no per-step [Q,1]) ----
    lstm_all = lstm_ref[...].reshape(NT, H)
    z = jnp.maximum(pre_scr[...] + mm(lstm_all, t1l_ref[...]), 0.0)
    z = jnp.maximum(mm(z, t2_ref[...]) + tb2_ref[...], 0.0)
    z = jnp.maximum(mm(z, t3_ref[...]) + tb3_ref[...], 0.0)     # [NT, Q]
    y = mm(z, wl_ref[...]) + bl_ref[...]                        # [NT, 1]
    y_ref[...] = y.reshape(T, TILE_N, 1)


# ------------------------------ JAX wrapper ------------------------------- #
def lstm_reward_forward(states, actions, params, *, tile_n=None):
    """states: [B, T, A, obs_dim], actions: [B, T, A, act_dim] (continuous)."""
    B, T, A, obs_dim = states.shape
    act_dim = actions.shape[-1]
    N = B * A
    E = params["w1"].shape[1]
    H = E // 2
    Q = E // 4

    # time-major inputs with a single transpose+reshape each (no concat in HBM)
    s_tm = jnp.transpose(states, (1, 0, 2, 3)).reshape(T, N, obs_dim)
    a_tm = jnp.transpose(actions, (1, 0, 2, 3)).reshape(T, N, act_dim)

    if tile_n is None:
        tile_n = _choose_tile_n(N, T, H, obs_dim + act_dim)
    n_pad = pl.cdiv(N, tile_n) * tile_n
    if n_pad != N:
        s_tm = jnp.pad(s_tm, ((0, 0), (0, n_pad - N), (0, 0)))
        a_tm = jnp.pad(a_tm, ((0, 0), (0, n_pad - N), (0, 0)))

    # ---- split parameters once, outside the kernel ----
    w1 = params["w1"]
    w1s, w1a = w1[:obs_dim], w1[obs_dim:]
    wih, whh = params["wih"], params["whh"]
    b_g = params["bih"] + params["bhh"]
    gate_sl = [slice(k * H, (k + 1) * H) for k in range(4)]     # i, f, g, o
    wih_g = [wih[:, s] for s in gate_sl]
    whh_g = [whh[:, s] for s in gate_sl]
    bg_g = [b_g[:, s] for s in gate_sl]
    t1 = params["t1"]
    t1h, t1l = t1[:H], t1[H:]

    plist = [w1s, w1a, params["b1"], params["w2"], params["b2"], params["w3"], params["b3"],
             *wih_g, *whh_g, *bg_g,
             t1h, t1l, params["tb1"], params["t2"], params["tb2"],
             params["t3"], params["tb3"], params["wl"], params["bl"]]

    fuse_rec = (H % 128 == 0)
    kernel = functools.partial(_reward_kernel, T, tile_n, H, fuse_rec)
    grid = (n_pad // tile_n,)

    w_specs = [pl.BlockSpec(w.shape, lambda i: (0, 0)) for w in plist]

    flops = 2 * T * N * ((obs_dim + act_dim) * E + E * H + H * H
                         + 8 * H * H + 2 * H * H + H * Q + Q * Q + Q)
    bytes_accessed = 4 * (T * N * (obs_dim + act_dim) + T * N * H + T * N
                          + sum(int(p.size) for p in plist))
    cost = pl.CostEstimate(flops=int(flops),
                           transcendentals=int(T * N * 5 * H),
                           bytes_accessed=int(bytes_accessed))

    y_tm, lstm_tm = pl.pallas_call(
        kernel,
        out_shape=(
            jax.ShapeDtypeStruct((T, n_pad, 1), jnp.float32),
            jax.ShapeDtypeStruct((T, n_pad, H), jnp.float32),
        ),
        grid_spec=pltpu.PrefetchScalarGridSpec(
            num_scalar_prefetch=0,
            grid=grid,
            in_specs=[
                pl.BlockSpec((T, tile_n, obs_dim), lambda i: (0, i, 0)),
                pl.BlockSpec((T, tile_n, act_dim), lambda i: (0, i, 0)),
                *w_specs,
            ],
            out_specs=(
                pl.BlockSpec((T, tile_n, 1), lambda i: (0, i, 0)),
                pl.BlockSpec((T, tile_n, H), lambda i: (0, i, 0)),
            ),
            scratch_shapes=[pltpu.VMEM((T * tile_n, H), jnp.float32)] * 5,
        ),
        compiler_params=pltpu.CompilerParams(
            dimension_semantics=("parallel",),
            vmem_limit_bytes=48 * 1024 * 1024,
        ),
        cost_estimate=cost,
    )(s_tm, a_tm, *plist)

    y_tm = y_tm[:, :N]                                           # [T, N, 1]
    lstm_tm = lstm_tm[:, :N]                                     # [T, N, H]
    lstm_out = jnp.transpose(lstm_tm, (1, 0, 2))                 # [N, T, H]
    y = jnp.transpose(y_tm.reshape(T, B, A, 1), (1, 0, 2, 3))    # [B, T, A, 1]
    return y, lstm_out


# -------------------------- deterministic params --------------------------- #
def init_params(key, input_dim, embd_dim):
    E, H, Q = embd_dim, embd_dim // 2, embd_dim // 4
    shapes = {
        "w1": (input_dim, E), "b1": (1, E),
        "w2": (E, H), "b2": (1, H),
        "w3": (H, H), "b3": (1, H),
        "wih": (H, 4 * H), "whh": (H, 4 * H),
        "bih": (1, 4 * H), "bhh": (1, 4 * H),
        "t1": (2 * H, H), "tb1": (1, H),
        "t2": (H, Q), "tb2": (1, Q),
        "t3": (Q, Q), "tb3": (1, Q),
        "wl": (Q, 1), "bl": (1, 1),
    }
    fan_in = {
        "w1": input_dim, "b1": input_dim, "w2": E, "b2": E, "w3": H, "b3": H,
        "wih": H, "whh": H, "bih": H, "bhh": H,
        "t1": 2 * H, "tb1": 2 * H, "t2": H, "tb2": H, "t3": Q, "tb3": Q,
        "wl": Q, "bl": Q,
    }
    params = {}
    keys = jax.random.split(key, len(shapes))
    for k_rng, (name, shp) in zip(keys, shapes.items()):
        bound = 1.0 / float(np.sqrt(fan_in[name]))
        params[name] = jax.random.uniform(k_rng, shp, jnp.float32, -bound, bound)
    return params


# --------------------------- pure-JAX reference ---------------------------- #
def reference_forward(states, actions, params):
    B, T, A, _ = states.shape
    x = jnp.concatenate([states, actions], axis=-1)
    x = jnp.transpose(x, (0, 2, 1, 3)).reshape(B * A, T, -1)
    h = jnp.maximum(x @ params["w1"] + params["b1"], 0.0)
    h = jnp.maximum(h @ params["w2"] + params["b2"], 0.0)
    h = jnp.maximum(h @ params["w3"] + params["b3"], 0.0)
    H = h.shape[-1]
    N = B * A

    def step(carry, x_t):
        h_t, c_t = carry
        gates = x_t @ params["wih"] + h_t @ params["whh"] + params["bih"] + params["bhh"]
        i = jax.nn.sigmoid(gates[:, :H])
        f = jax.nn.sigmoid(gates[:, H:2 * H])
        g = jnp.tanh(gates[:, 2 * H:3 * H])
        o = jax.nn.sigmoid(gates[:, 3 * H:])
        c = f * c_t + i * g
        hh = o * jnp.tanh(c)
        return (hh, c), hh

    (_, _), outs = lax.scan(
        step,
        (jnp.zeros((N, H), jnp.float32), jnp.zeros((N, H), jnp.float32)),
        jnp.transpose(h, (1, 0, 2)),
    )
    lstm_out = jnp.transpose(outs, (1, 0, 2))
    z = jnp.concatenate([h, lstm_out], axis=-1)
    z = jnp.maximum(z @ params["t1"] + params["tb1"], 0.0)
    z = jnp.maximum(z @ params["t2"] + params["tb2"], 0.0)
    z = jnp.maximum(z @ params["t3"] + params["tb3"], 0.0)
    y = z @ params["wl"] + params["bl"]
    y = y.reshape(B, A, T, 1).transpose(0, 2, 1, 3)
    return y, lstm_out


def _run_case(key, B, T, A, obs_dim, act_dim, embd_dim):
    k_s, k_a, k_p = jax.random.split(key, 3)
    states = jax.random.normal(k_s, (B, T, A, obs_dim), jnp.float32)
    actions = jax.random.normal(k_a, (B, T, A, act_dim), jnp.float32)
    params = init_params(k_p, obs_dim + act_dim, embd_dim)

    y, lstm_out = lstm_reward_forward(states, actions, params)
    (y, lstm_out) = jax.block_until_ready((y, lstm_out))

    assert y.shape == (B, T, A, 1)
    assert lstm_out.shape == (B * A, T, embd_dim // 2)

    y_ref, lstm_ref = reference_forward(states, actions, params)
    np.testing.assert_allclose(np.asarray(y), np.asarray(y_ref), rtol=2e-3, atol=2e-3)
    np.testing.assert_allclose(np.asarray(lstm_out), np.asarray(lstm_ref), rtol=2e-3, atol=2e-3)


if __name__ == "__main__":
    key = jax.random.PRNGKey(0)
    k1, k2 = jax.random.split(key)

    # Case 1: small embd (per-gate recurrent path, H = 32).
    _run_case(k1, B=2, T=8, A=3, obs_dim=11, act_dim=5, embd_dim=64)

    # Case 2: lane-aligned embd (fused recurrent-matmul path, H = 128).
    _run_case(k2, B=2, T=4, A=2, obs_dim=11, act_dim=5, embd_dim=256)

    print("KERNEL_OK")
</pallas_src>

<mosaic_0001>
module attributes {stable_mosaic.version = 11 : i64} {
  func.func @_reward_kernel(%arg0: i32, %arg1: memref<8x8x11xf32, #tpu.memory_space<vmem>>, %arg2: memref<8x8x5xf32, #tpu.memory_space<vmem>>, %arg3: memref<11x64xf32, #tpu.memory_space<vmem>>, %arg4: memref<5x64xf32, #tpu.memory_space<vmem>>, %arg5: memref<1x64xf32, #tpu.memory_space<vmem>>, %arg6: memref<64x32xf32, #tpu.memory_space<vmem>>, %arg7: memref<1x32xf32, #tpu.memory_space<vmem>>, %arg8: memref<32x32xf32, #tpu.memory_space<vmem>>, %arg9: memref<1x32xf32, #tpu.memory_space<vmem>>, %arg10: memref<32x32xf32, #tpu.memory_space<vmem>>, %arg11: memref<32x32xf32, #tpu.memory_space<vmem>>, %arg12: memref<32x32xf32, #tpu.memory_space<vmem>>, %arg13: memref<32x32xf32, #tpu.memory_space<vmem>>, %arg14: memref<32x32xf32, #tpu.memory_space<vmem>>, %arg15: memref<32x32xf32, #tpu.memory_space<vmem>>, %arg16: memref<32x32xf32, #tpu.memory_space<vmem>>, %arg17: memref<32x32xf32, #tpu.memory_space<vmem>>, %arg18: memref<1x32xf32, #tpu.memory_space<vmem>>, %arg19: memref<1x32xf32, #tpu.memory_space<vmem>>, %arg20: memref<1x32xf32, #tpu.memory_space<vmem>>, %arg21: memref<1x32xf32, #tpu.memory_space<vmem>>, %arg22: memref<32x32xf32, #tpu.memory_space<vmem>>, %arg23: memref<32x32xf32, #tpu.memory_space<vmem>>, %arg24: memref<1x32xf32, #tpu.memory_space<vmem>>, %arg25: memref<32x16xf32, #tpu.memory_space<vmem>>, %arg26: memref<1x16xf32, #tpu.memory_space<vmem>>, %arg27: memref<16x16xf32, #tpu.memory_space<vmem>>, %arg28: memref<1x16xf32, #tpu.memory_space<vmem>>, %arg29: memref<16x1xf32, #tpu.memory_space<vmem>>, %arg30: memref<1x1xf32, #tpu.memory_space<vmem>>, %arg31: memref<8x8x1xf32, #tpu.memory_space<vmem>>, %arg32: memref<8x8x32xf32, #tpu.memory_space<vmem>>, %arg33: memref<64x32xf32, #tpu.memory_space<vmem>>, %arg34: memref<64x32xf32, #tpu.memory_space<vmem>>, %arg35: memref<64x32xf32, #tpu.memory_space<vmem>>, %arg36: memref<64x32xf32, #tpu.memory_space<vmem>>, %arg37: memref<64x32xf32, #tpu.memory_space<vmem>>) attributes {dimension_semantics = [#tpu.dimension_semantics<parallel>], iteration_bounds = array<i64: 1>, scalar_prefetch = 0 : i64, scratch_operands = 5 : i64, tpu.core_type = #tpu.core_type<tc>, window_params = [{transform_indices = @transform_0, window_bounds = array<i64: 8, 8, 11>}, {transform_indices = @transform_1, window_bounds = array<i64: 8, 8, 5>}, {pipeline_mode = #tpu.pipeline_mode<synchronous>, transform_indices = @transform_2, window_bounds = array<i64: 11, 64>}, {pipeline_mode = #tpu.pipeline_mode<synchronous>, transform_indices = @transform_3, window_bounds = array<i64: 5, 64>}, {pipeline_mode = #tpu.pipeline_mode<synchronous>, transform_indices = @transform_4, window_bounds = array<i64: 1, 64>}, {pipeline_mode = #tpu.pipeline_mode<synchronous>, transform_indices = @transform_5, window_bounds = array<i64: 64, 32>}, {pipeline_mode = #tpu.pipeline_mode<synchronous>, transform_indices = @transform_6, window_bounds = array<i64: 1, 32>}, {pipeline_mode = #tpu.pipeline_mode<synchronous>, transform_indices = @transform_7, window_bounds = array<i64: 32, 32>}, {pipeline_mode = #tpu.pipeline_mode<synchronous>, transform_indices = @transform_8, window_bounds = array<i64: 1, 32>}, {pipeline_mode = #tpu.pipeline_mode<synchronous>, transform_indices = @transform_9, window_bounds = array<i64: 32, 32>}, {pipeline_mode = #tpu.pipeline_mode<synchronous>, transform_indices = @transform_10, window_bounds = array<i64: 32, 32>}, {pipeline_mode = #tpu.pipeline_mode<synchronous>, transform_indices = @transform_11, window_bounds = array<i64: 32, 32>}, {pipeline_mode = #tpu.pipeline_mode<synchronous>, transform_indices = @transform_12, window_bounds = array<i64: 32, 32>}, {pipeline_mode = #tpu.pipeline_mode<synchronous>, transform_indices = @transform_13, window_bounds = array<i64: 32, 32>}, {pipeline_mode = #tpu.pipeline_mode<synchronous>, transform_indices = @transform_14, window_bounds = array<i64: 32, 32>}, {pipeline_mode = #tpu.pipeline_mode<synchronous>, transform_indices = @transform_15, window_bounds = array<i64: 32, 32>}, {pipeline_mode = #tpu.pipeline_mode<synchronous>, transform_indices = @transform_16, window_bounds = array<i64: 32, 32>}, {pipeline_mode = #tpu.pipeline_mode<synchronous>, transform_indices = @transform_17, window_bounds = array<i64: 1, 32>}, {pipeline_mode = #tpu.pipeline_mode<synchronous>, transform_indices = @transform_18, window_bounds = array<i64: 1, 32>}, {pipeline_mode = #tpu.pipeline_mode<synchronous>, transform_indices = @transform_19, window_bounds = array<i64: 1, 32>}, {pipeline_mode = #tpu.pipeline_mode<synchronous>, transform_indices = @transform_20, window_bounds = array<i64: 1, 32>}, {pipeline_mode = #tpu.pipeline_mode<synchronous>, transform_indices = @transform_21, window_bounds = array<i64: 32, 32>}, {pipeline_mode = #tpu.pipeline_mode<synchronous>, transform_indices = @transform_22, window_bounds = array<i64: 32, 32>}, {pipeline_mode = #tpu.pipeline_mode<synchronous>, transform_indices = @transform_23, window_bounds = array<i64: 1, 32>}, {pipeline_mode = #tpu.pipeline_mode<synchronous>, transform_indices = @transform_24, window_bounds = array<i64: 32, 16>}, {pipeline_mode = #tpu.pipeline_mode<synchronous>, transform_indices = @transform_25, window_bounds = array<i64: 1, 16>}, {pipeline_mode = #tpu.pipeline_mode<synchronous>, transform_indices = @transform_26, window_bounds = array<i64: 16, 16>}, {pipeline_mode = #tpu.pipeline_mode<synchronous>, transform_indices = @transform_27, window_bounds = array<i64: 1, 16>}, {pipeline_mode = #tpu.pipeline_mode<synchronous>, transform_indices = @transform_28, window_bounds = array<i64: 16, 1>}, {pipeline_mode = #tpu.pipeline_mode<synchronous>, transform_indices = @transform_29, window_bounds = array<i64: 1, 1>}, {transform_indices = @transform_30, window_bounds = array<i64: 8, 8, 1>}, {transform_indices = @transform_31, window_bounds = array<i64: 8, 8, 32>}]} {
    %c0 = arith.constant 0 : index
    %c0_0 = arith.constant 0 : index
    %c0_1 = arith.constant 0 : index
    %0 = vector.load %arg1[%c0, %c0_0, %c0_1] : memref<8x8x11xf32, #tpu.memory_space<vmem>>, vector<8x8x11xf32>
    %1 = vector.shape_cast %0 : vector<8x8x11xf32> to vector<64x11xf32>
    %c0_2 = arith.constant 0 : index
    %c0_3 = arith.constant 0 : index
    %c0_4 = arith.constant 0 : index
    %2 = vector.load %arg2[%c0_2, %c0_3, %c0_4] : memref<8x8x5xf32, #tpu.memory_space<vmem>>, vector<8x8x5xf32>
    %3 = vector.shape_cast %2 : vector<8x8x5xf32> to vector<64x5xf32>
    %c0_5 = arith.constant 0 : index
    %c0_6 = arith.constant 0 : index
    %4 = vector.load %arg3[%c0_5, %c0_6] : memref<11x64xf32, #tpu.memory_space<vmem>>, vector<11x64xf32>
    %cst = arith.constant dense<0.000000e+00> : vector<64x64xf32>
    %5 = tpu.matmul %1, %4, %cst {dimension_numbers = #tpu.dot_dimension_numbers<[1], [0], [0], [1], [0, 0, 1, 1], [], []>} : vector<64x11xf32>, vector<11x64xf32>, vector<64x64xf32> -> vector<64x64xf32>
    %c0_7 = arith.constant 0 : index
    %c0_8 = arith.constant 0 : index
    %6 = vector.load %arg4[%c0_7, %c0_8] : memref<5x64xf32, #tpu.memory_space<vmem>>, vector<5x64xf32>
    %cst_9 = arith.constant dense<0.000000e+00> : vector<64x64xf32>
    %7 = tpu.matmul %3, %6, %cst_9 {dimension_numbers = #tpu.dot_dimension_numbers<[1], [0], [0], [1], [0, 0, 1, 1], [], []>} : vector<64x5xf32>, vector<5x64xf32>, vector<64x64xf32> -> vector<64x64xf32>
    %8 = arith.addf %5, %7 : vector<64x64xf32>
    %c0_10 = arith.constant 0 : index
    %c0_11 = arith.constant 0 : index
    %9 = vector.load %arg5[%c0_10, %c0_11] : memref<1x64xf32, #tpu.memory_space<vmem>>, vector<1x64xf32>
    %10 = vector.broadcast %9 : vector<1x64xf32> to vector<64x64xf32>
    %11 = arith.addf %8, %10 : vector<64x64xf32>
    %cst_12 = arith.constant 0.000000e+00 : f32
    %12 = vector.broadcast %cst_12 : f32 to vector<64x64xf32>
    %13 = arith.maximumf %11, %12 : vector<64x64xf32>
    %c0_13 = arith.constant 0 : index
    %c0_14 = arith.constant 0 : index
    %14 = vector.load %arg6[%c0_13, %c0_14] : memref<64x32xf32, #tpu.memory_space<vmem>>, vector<64x32xf32>
    %cst_15 = arith.constant dense<0.000000e+00> : vector<64x32xf32>
    %15 = tpu.matmul %13, %14, %cst_15 {dimension_numbers = #tpu.dot_dimension_numbers<[1], [0], [0], [1], [0, 0, 1, 1], [], []>} : vector<64x64xf32>, vector<64x32xf32>, vector<64x32xf32> -> vector<64x32xf32>
    %c0_16 = arith.constant 0 : index
    %c0_17 = arith.constant 0 : index
    %16 = vector.load %arg7[%c0_16, %c0_17] : memref<1x32xf32, #tpu.memory_space<vmem>>, vector<1x32xf32>
    %17 = vector.broadcast %16 : vector<1x32xf32> to vector<64x32xf32>
    %18 = arith.addf %15, %17 : vector<64x32xf32>
    %cst_18 = arith.constant 0.000000e+00 : f32
    %19 = vector.broadcast %cst_18 : f32 to vector<64x32xf32>
    %20 = arith.maximumf %18, %19 : vector<64x32xf32>
    %c0_19 = arith.constant 0 : index
    %c0_20 = arith.constant 0 : index
    %21 = vector.load %arg8[%c0_19, %c0_20] : memref<32x32xf32, #tpu.memory_space<vmem>>, vector<32x32xf32>
    %cst_21 = arith.constant dense<0.000000e+00> : vector<64x32xf32>
    %22 = tpu.matmul %20, %21, %cst_21 {dimension_numbers = #tpu.dot_dimension_numbers<[1], [0], [0], [1], [0, 0, 1, 1], [], []>} : vector<64x32xf32>, vector<32x32xf32>, vector<64x32xf32> -> vector<64x32xf32>
    %c0_22 = arith.constant 0 : index
    %c0_23 = arith.constant 0 : index
    %23 = vector.load %arg9[%c0_22, %c0_23] : memref<1x32xf32, #tpu.memory_space<vmem>>, vector<1x32xf32>
    %24 = vector.broadcast %23 : vector<1x32xf32> to vector<64x32xf32>
    %25 = arith.addf %22, %24 : vector<64x32xf32>
    %cst_24 = arith.constant 0.000000e+00 : f32
    %26 = vector.broadcast %cst_24 : f32 to vector<64x32xf32>
    %27 = arith.maximumf %25, %26 : vector<64x32xf32>
    %c0_25 = arith.constant 0 : index
    %c0_26 = arith.constant 0 : index
    %28 = vector.load %arg22[%c0_25, %c0_26] : memref<32x32xf32, #tpu.memory_space<vmem>>, vector<32x32xf32>
    %cst_27 = arith.constant dense<0.000000e+00> : vector<64x32xf32>
    %29 = tpu.matmul %27, %28, %cst_27 {dimension_numbers = #tpu.dot_dimension_numbers<[1], [0], [0], [1], [0, 0, 1, 1], [], []>} : vector<64x32xf32>, vector<32x32xf32>, vector<64x32xf32> -> vector<64x32xf32>
    %c0_28 = arith.constant 0 : index
    %c0_29 = arith.constant 0 : index
    %30 = vector.load %arg24[%c0_28, %c0_29] : memref<1x32xf32, #tpu.memory_space<vmem>>, vector<1x32xf32>
    %31 = vector.broadcast %30 : vector<1x32xf32> to vector<64x32xf32>
    %32 = arith.addf %29, %31 : vector<64x32xf32>
    %c0_30 = arith.constant 0 : index
    %c0_31 = arith.constant 0 : index
    %33 = vector.load %arg33[%c0_30, %c0_31] : memref<64x32xf32, #tpu.memory_space<vmem>>, vector<64x32xf32>
    tpu.vector_store %arg33[%c0_30, %c0_31], %32 {strides = array<i32>} : memref<64x32xf32, #tpu.memory_space<vmem>>, vector<64x32xf32>,
    %c0_32 = arith.constant 0 : index
    %c0_33 = arith.constant 0 : index
    %34 = vector.load %arg10[%c0_32, %c0_33] : memref<32x32xf32, #tpu.memory_space<vmem>>, vector<32x32xf32>
    %cst_34 = arith.constant dense<0.000000e+00> : vector<64x32xf32>
    %35 = tpu.matmul %27, %34, %cst_34 {dimension_numbers = #tpu.dot_dimension_numbers<[1], [0], [0], [1], [0, 0, 1, 1], [], []>} : vector<64x32xf32>, vector<32x32xf32>, vector<64x32xf32> -> vector<64x32xf32>
    %c0_35 = arith.constant 0 : index
    %c0_36 = arith.constant 0 : index
    %36 = vector.load %arg18[%c0_35, %c0_36] : memref<1x32xf32, #tpu.memory_space<vmem>>, vector<1x32xf32>
    %37 = vector.broadcast %36 : vector<1x32xf32> to vector<64x32xf32>
    %38 = arith.addf %35, %37 : vector<64x32xf32>
    %c0_37 = arith.constant 0 : index
    %c0_38 = arith.constant 0 : index
    %39 = vector.load %arg34[%c0_37, %c0_38] : memref<64x32xf32, #tpu.memory_space<vmem>>, vector<64x32xf32>
    tpu.vector_store %arg34[%c0_37, %c0_38], %38 {strides = array<i32>} : memref<64x32xf32, #tpu.memory_space<vmem>>, vector<64x32xf32>,
    %c0_39 = arith.constant 0 : index
    %c0_40 = arith.constant 0 : index
    %40 = vector.load %arg11[%c0_39, %c0_40] : memref<32x32xf32, #tpu.memory_space<vmem>>, vector<32x32xf32>
    %cst_41 = arith.constant dense<0.000000e+00> : vector<64x32xf32>
    %41 = tpu.matmul %27, %40, %cst_41 {dimension_numbers = #tpu.dot_dimension_numbers<[1], [0], [0], [1], [0, 0, 1, 1], [], []>} : vector<64x32xf32>, vector<32x32xf32>, vector<64x32xf32> -> vector<64x32xf32>
    %c0_42 = arith.constant 0 : index
    %c0_43 = arith.constant 0 : index
    %42 = vector.load %arg19[%c0_42, %c0_43] : memref<1x32xf32, #tpu.memory_space<vmem>>, vector<1x32xf32>
    %43 = vector.broadcast %42 : vector<1x32xf32> to vector<64x32xf32>
    %44 = arith.addf %41, %43 : vector<64x32xf32>
    %c0_44 = arith.constant 0 : index
    %c0_45 = arith.constant 0 : index
    %45 = vector.load %arg35[%c0_44, %c0_45] : memref<64x32xf32, #tpu.memory_space<vmem>>, vector<64x32xf32>
    tpu.vector_store %arg35[%c0_44, %c0_45], %44 {strides = array<i32>} : memref<64x32xf32, #tpu.memory_space<vmem>>, vector<64x32xf32>,
    %c0_46 = arith.constant 0 : index
    %c0_47 = arith.constant 0 : index
    %46 = vector.load %arg12[%c0_46, %c0_47] : memref<32x32xf32, #tpu.memory_space<vmem>>, vector<32x32xf32>
    %cst_48 = arith.constant dense<0.000000e+00> : vector<64x32xf32>
    %47 = tpu.matmul %27, %46, %cst_48 {dimension_numbers = #tpu.dot_dimension_numbers<[1], [0], [0], [1], [0, 0, 1, 1], [], []>} : vector<64x32xf32>, vector<32x32xf32>, vector<64x32xf32> -> vector<64x32xf32>
    %c0_49 = arith.constant 0 : index
    %c0_50 = arith.constant 0 : index
    %48 = vector.load %arg20[%c0_49, %c0_50] : memref<1x32xf32, #tpu.memory_space<vmem>>, vector<1x32xf32>
    %49 = vector.broadcast %48 : vector<1x32xf32> to vector<64x32xf32>
    %50 = arith.addf %47, %49 : vector<64x32xf32>
    %c0_51 = arith.constant 0 : index
    %c0_52 = arith.constant 0 : index
    %51 = vector.load %arg36[%c0_51, %c0_52] : memref<64x32xf32, #tpu.memory_space<vmem>>, vector<64x32xf32>
    tpu.vector_store %arg36[%c0_51, %c0_52], %50 {strides = array<i32>} : memref<64x32xf32, #tpu.memory_space<vmem>>, vector<64x32xf32>,
    %c0_53 = arith.constant 0 : index
    %c0_54 = arith.constant 0 : index
    %52 = vector.load %arg13[%c0_53, %c0_54] : memref<32x32xf32, #tpu.memory_space<vmem>>, vector<32x32xf32>
    %cst_55 = arith.constant dense<0.000000e+00> : vector<64x32xf32>
    %53 = tpu.matmul %27, %52, %cst_55 {dimension_numbers = #tpu.dot_dimension_numbers<[1], [0], [0], [1], [0, 0, 1, 1], [], []>} : vector<64x32xf32>, vector<32x32xf32>, vector<64x32xf32> -> vector<64x32xf32>
    %c0_56 = arith.constant 0 : index
    %c0_57 = arith.constant 0 : index
    %54 = vector.load %arg21[%c0_56, %c0_57] : memref<1x32xf32, #tpu.memory_space<vmem>>, vector<1x32xf32>
    %55 = vector.broadcast %54 : vector<1x32xf32> to vector<64x32xf32>
    %56 = arith.addf %53, %55 : vector<64x32xf32>
    %c0_58 = arith.constant 0 : index
    %c0_59 = arith.constant 0 : index
    %57 = vector.load %arg37[%c0_58, %c0_59] : memref<64x32xf32, #tpu.memory_space<vmem>>, vector<64x32xf32>
    tpu.vector_store %arg37[%c0_58, %c0_59], %56 {strides = array<i32>} : memref<64x32xf32, #tpu.memory_space<vmem>>, vector<64x32xf32>,
    %c0_60 = arith.constant 0 : index
    %c0_61 = arith.constant 0 : index
    %58 = vector.load %arg14[%c0_60, %c0_61] : memref<32x32xf32, #tpu.memory_space<vmem>>, vector<32x32xf32>
    %c0_62 = arith.constant 0 : index
    %c0_63 = arith.constant 0 : index
    %59 = vector.load %arg15[%c0_62, %c0_63] : memref<32x32xf32, #tpu.memory_space<vmem>>, vector<32x32xf32>
    %c0_64 = arith.constant 0 : index
    %c0_65 = arith.constant 0 : index
    %60 = vector.load %arg16[%c0_64, %c0_65] : memref<32x32xf32, #tpu.memory_space<vmem>>, vector<32x32xf32>
    %c0_66 = arith.constant 0 : index
    %c0_67 = arith.constant 0 : index
    %61 = vector.load %arg17[%c0_66, %c0_67] : memref<32x32xf32, #tpu.memory_space<vmem>>, vector<32x32xf32>
    %cst_68 = arith.constant 0.000000e+00 : f32
    %62 = vector.broadcast %cst_68 : f32 to vector<8x32xf32>
    %cst_69 = arith.constant 0.000000e+00 : f32
    %63 = vector.broadcast %cst_69 : f32 to vector<8x32xf32>
    %c0_i32 = arith.constant 0 : i32
    %c8_i32 = arith.constant 8 : i32
    %64 = arith.muli %c0_i32, %c8_i32 : i32
    %65 = tpu.assume_multiple %64, 8 : i32
    %cst_70 = arith.constant dense<0.000000e+00> : vector<8x32xf32>
    %66 = tpu.matmul %62, %58, %cst_70 {dimension_numbers = #tpu.dot_dimension_numbers<[1], [0], [0], [1], [0, 0, 1, 1], [], []>} : vector<8x32xf32>, vector<32x32xf32>, vector<8x32xf32> -> vector<8x32xf32>
    %cst_71 = arith.constant dense<0.000000e+00> : vector<8x32xf32>
    %67 = tpu.matmul %62, %59, %cst_71 {dimension_numbers = #tpu.dot_dimension_numbers<[1], [0], [0], [1], [0, 0, 1, 1], [], []>} : vector<8x32xf32>, vector<32x32xf32>, vector<8x32xf32> -> vector<8x32xf32>
    %cst_72 = arith.constant dense<0.000000e+00> : vector<8x32xf32>
    %68 = tpu.matmul %62, %60, %cst_72 {dimension_numbers = #tpu.dot_dimension_numbers<[1], [0], [0], [1], [0, 0, 1, 1], [], []>} : vector<8x32xf32>, vector<32x32xf32>, vector<8x32xf32> -> vector<8x32xf32>
    %cst_73 = arith.constant dense<0.000000e+00> : vector<8x32xf32>
    %69 = tpu.matmul %62, %61, %cst_73 {dimension_numbers = #tpu.dot_dimension_numbers<[1], [0], [0], [1], [0, 0, 1, 1], [], []>} : vector<8x32xf32>, vector<32x32xf32>, vector<8x32xf32> -> vector<8x32xf32>
    %70 = arith.index_cast %65 : i32 to index
    %c0_74 = arith.constant 0 : index
    %71 = vector.load %arg34[%70, %c0_74] : memref<64x32xf32, #tpu.memory_space<vmem>>, vector<8x32xf32>
    %72 = arith.addf %71, %66 : vector<8x32xf32>
    %73 = arith.negf %72 : vector<8x32xf32>
    %74 = math.exp %73 : vector<8x32xf32>
    %cst_75 = arith.constant 1.000000e+00 : f32
    %75 = vector.broadcast %cst_75 : f32 to vector<8x32xf32>
    %76 = arith.addf %75, %74 : vector<8x32xf32>
    %77 = arith.divf %75, %76 : vector<8x32xf32>
    %78 = arith.index_cast %65 : i32 to index
    %c0_76 = arith.constant 0 : index
    %79 = vector.load %arg35[%78, %c0_76] : memref<64x32xf32, #tpu.memory_space<vmem>>, vector<8x32xf32>
    %80 = arith.addf %79, %67 : vector<8x32xf32>
    %81 = arith.negf %80 : vector<8x32xf32>
    %82 = math.exp %81 : vector<8x32xf32>
    %cst_77 = arith.constant 1.000000e+00 : f32
    %83 = vector.broadcast %cst_77 : f32 to vector<8x32xf32>
    %84 = arith.addf %83, %82 : vector<8x32xf32>
    %85 = arith.divf %83, %84 : vector<8x32xf32>
    %86 = arith.index_cast %65 : i32 to index
    %c0_78 = arith.constant 0 : index
    %87 = vector.load %arg36[%86, %c0_78] : memref<64x32xf32, #tpu.memory_space<vmem>>, vector<8x32xf32>
    %88 = arith.addf %87, %68 : vector<8x32xf32>
    %89 = math.tanh %88 : vector<8x32xf32>
    %90 = arith.index_cast %65 : i32 to index
    %c0_79 = arith.constant 0 : index
    %91 = vector.load %arg37[%90, %c0_79] : memref<64x32xf32, #tpu.memory_space<vmem>>, vector<8x32xf32>
    %92 = arith.addf %91, %69 : vector<8x32xf32>
    %93 = arith.negf %92 : vector<8x32xf32>
    %94 = math.exp %93 : vector<8x32xf32>
    %cst_80 = arith.constant 1.000000e+00 : f32
    %95 = vector.broadcast %cst_80 : f32 to vector<8x32xf32>
    %96 = arith.addf %95, %94 : vector<8x32xf32>
    %97 = arith.divf %95, %96 : vector<8x32xf32>
    %98 = arith.mulf %85, %63 : vector<8x32xf32>
    %99 = arith.mulf %77, %89 : vector<8x32xf32>
    %100 = arith.addf %98, %99 : vector<8x32xf32>
    %101 = math.tanh %100 : vector<8x32xf32>
    %102 = arith.mulf %97, %101 : vector<8x32xf32>
    %103 = arith.index_cast %c0_i32 : i32 to index
    %c0_81 = arith.constant 0 : index
    %c0_82 = arith.constant 0 : index
    %104 = vector.load %arg32[%103, %c0_81, %c0_82] : memref<8x8x32xf32, #tpu.memory_space<vmem>>, vector<1x8x32xf32>
    %105 = vector.shape_cast %104 : vector<1x8x32xf32> to vector<8x32xf32>
    %106 = vector.shape_cast %102 : vector<8x32xf32> to vector<1x8x32xf32>
    tpu.vector_store %arg32[%103, %c0_81, %c0_82], %106 {strides = array<i32>} : memref<8x8x32xf32, #tpu.memory_space<vmem>>, vector<1x8x32xf32>,
    %c1_i32 = arith.constant 1 : i32
    %c8_i32_83 = arith.constant 8 : i32
    %107 = arith.muli %c1_i32, %c8_i32_83 : i32
    %108 = tpu.assume_multiple %107, 8 : i32
    %cst_84 = arith.constant dense<0.000000e+00> : vector<8x32xf32>
    %109 = tpu.matmul %102, %58, %cst_84 {dimension_numbers = #tpu.dot_dimension_numbers<[1], [0], [0], [1], [0, 0, 1, 1], [], []>} : vector<8x32xf32>, vector<32x32xf32>, vector<8x32xf32> -> vector<8x32xf32>
    %cst_85 = arith.constant dense<0.000000e+00> : vector<8x32xf32>
    %110 = tpu.matmul %102, %59, %cst_85 {dimension_numbers = #tpu.dot_dimension_numbers<[1], [0], [0], [1], [0, 0, 1, 1], [], []>} : vector<8x32xf32>, vector<32x32xf32>, vector<8x32xf32> -> vector<8x32xf32>
    %cst_86 = arith.constant dense<0.000000e+00> : vector<8x32xf32>
    %111 = tpu.matmul %102, %60, %cst_86 {dimension_numbers = #tpu.dot_dimension_numbers<[1], [0], [0], [1], [0, 0, 1, 1], [], []>} : vector<8x32xf32>, vector<32x32xf32>, vector<8x32xf32> -> vector<8x32xf32>
    %cst_87 = arith.constant dense<0.000000e+00> : vector<8x32xf32>
    %112 = tpu.matmul %102, %61, %cst_87 {dimension_numbers = #tpu.dot_dimension_numbers<[1], [0], [0], [1], [0, 0, 1, 1], [], []>} : vector<8x32xf32>, vector<32x32xf32>, vector<8x32xf32> -> vector<8x32xf32>
    %113 = arith.index_cast %108 : i32 to index
    %c0_88 = arith.constant 0 : index
    %114 = vector.load %arg34[%113, %c0_88] : memref<64x32xf32, #tpu.memory_space<vmem>>, vector<8x32xf32>
    %115 = arith.addf %114, %109 : vector<8x32xf32>
    %116 = arith.negf %115 : vector<8x32xf32>
    %117 = math.exp %116 : vector<8x32xf32>
    %cst_89 = arith.constant 1.000000e+00 : f32
    %118 = vector.broadcast %cst_89 : f32 to vector<8x32xf32>
    %119 = arith.addf %118, %117 : vector<8x32xf32>
    %120 = arith.divf %118, %119 : vector<8x32xf32>
    %121 = arith.index_cast %108 : i32 to index
    %c0_90 = arith.constant 0 : index
    %122 = vector.load %arg35[%121, %c0_90] : memref<64x32xf32, #tpu.memory_space<vmem>>, vector<8x32xf32>
    %123 = arith.addf %122, %110 : vector<8x32xf32>
    %124 = arith.negf %123 : vector<8x32xf32>
    %125 = math.exp %124 : vector<8x32xf32>
    %cst_91 = arith.constant 1.000000e+00 : f32
    %126 = vector.broadcast %cst_91 : f32 to vector<8x32xf32>
    %127 = arith.addf %126, %125 : vector<8x32xf32>
    %128 = arith.divf %126, %127 : vector<8x32xf32>
    %129 = arith.index_cast %108 : i32 to index
    %c0_92 = arith.constant 0 : index
    %130 = vector.load %arg36[%129, %c0_92] : memref<64x32xf32, #tpu.memory_space<vmem>>, vector<8x32xf32>
    %131 = arith.addf %130, %111 : vector<8x32xf32>
    %132 = math.tanh %131 : vector<8x32xf32>
    %133 = arith.index_cast %108 : i32 to index
    %c0_93 = arith.constant 0 : index
    %134 = vector.load %arg37[%133, %c0_93] : memref<64x32xf32, #tpu.memory_space<vmem>>, vector<8x32xf32>
    %135 = arith.addf %134, %112 : vector<8x32xf32>
    %136 = arith.negf %135 : vector<8x32xf32>
    %137 = math.exp %136 : vector<8x32xf32>
    %cst_94 = arith.constant 1.000000e+00 : f32
    %138 = vector.broadcast %cst_94 : f32 to vector<8x32xf32>
    %139 = arith.addf %138, %137 : vector<8x32xf32>
    %140 = arith.divf %138, %139 : vector<8x32xf32>
    %141 = arith.mulf %128, %100 : vector<8x32xf32>
    %142 = arith.mulf %120, %132 : vector<8x32xf32>
    %143 = arith.addf %141, %142 : vector<8x32xf32>
    %144 = math.tanh %143 : vector<8x32xf32>
    %145 = arith.mulf %140, %144 : vector<8x32xf32>
    %146 = arith.index_cast %c1_i32 : i32 to index
    %c0_95 = arith.constant 0 : index
    %c0_96 = arith.constant 0 : index
    %147 = vector.load %arg32[%146, %c0_95, %c0_96] : memref<8x8x32xf32, #tpu.memory_space<vmem>>, vector<1x8x32xf32>
    %148 = vector.shape_cast %147 : vector<1x8x32xf32> to vector<8x32xf32>
    %149 = vector.shape_cast %145 : vector<8x32xf32> to vector<1x8x32xf32>
    tpu.vector_store %arg32[%146, %c0_95, %c0_96], %149 {strides = array<i32>} : memref<8x8x32xf32, #tpu.memory_space<vmem>>, vector<1x8x32xf32>,
    %c2_i32 = arith.constant 2 : i32
    %c8_i32_97 = arith.constant 8 : i32
    %150 = arith.muli %c2_i32, %c8_i32_97 : i32
    %151 = tpu.assume_multiple %150, 8 : i32
    %cst_98 = arith.constant dense<0.000000e+00> : vector<8x32xf32>
    %152 = tpu.matmul %145, %58, %cst_98 {dimension_numbers = #tpu.dot_dimension_numbers<[1], [0], [0], [1], [0, 0, 1, 1], [], []>} : vector<8x32xf32>, vector<32x32xf32>, vector<8x32xf32> -> vector<8x32xf32>
    %cst_99 = arith.constant dense<0.000000e+00> : vector<8x32xf32>
    %153 = tpu.matmul %145, %59, %cst_99 {dimension_numbers = #tpu.dot_dimension_numbers<[1], [0], [0], [1], [0, 0, 1, 1], [], []>} : vector<8x32xf32>, vector<32x32xf32>, vector<8x32xf32> -> vector<8x32xf32>
    %cst_100 = arith.constant dense<0.000000e+00> : vector<8x32xf32>
    %154 = tpu.matmul %145, %60, %cst_100 {dimension_numbers = #tpu.dot_dimension_numbers<[1], [0], [0], [1], [0, 0, 1, 1], [], []>} : vector<8x32xf32>, vector<32x32xf32>, vector<8x32xf32> -> vector<8x32xf32>
    %cst_101 = arith.constant dense<0.000000e+00> : vector<8x32xf32>
    %155 = tpu.matmul %145, %61, %cst_101 {dimension_numbers = #tpu.dot_dimension_numbers<[1], [0], [0], [1], [0, 0, 1, 1], [], []>} : vector<8x32xf32>, vector<32x32xf32>, vector<8x32xf32> -> vector<8x32xf32>
    %156 = arith.index_cast %151 : i32 to index
    %c0_102 = arith.constant 0 : index
    %157 = vector.load %arg34[%156, %c0_102] : memref<64x32xf32, #tpu.memory_space<vmem>>, vector<8x32xf32>
    %158 = arith.addf %157, %152 : vector<8x32xf32>
    %159 = arith.negf %158 : vector<8x32xf32>
    %160 = math.exp %159 : vector<8x32xf32>
    %cst_103 = arith.constant 1.000000e+00 : f32
    %161 = vector.broadcast %cst_103 : f32 to vector<8x32xf32>
    %162 = arith.addf %161, %160 : vector<8x32xf32>
    %163 = arith.divf %161, %162 : vector<8x32xf32>
    %164 = arith.index_cast %151 : i32 to index
    %c0_104 = arith.constant 0 : index
    %165 = vector.load %arg35[%164, %c0_104] : memref<64x32xf32, #tpu.memory_space<vmem>>, vector<8x32xf32>
    %166 = arith.addf %165, %153 : vector<8x32xf32>
    %167 = arith.negf %166 : vector<8x32xf32>
    %168 = math.exp %167 : vector<8x32xf32>
    %cst_105 = arith.constant 1.000000e+00 : f32
    %169 = vector.broadcast %cst_105 : f32 to vector<8x32xf32>
    %170 = arith.addf %169, %168 : vector<8x32xf32>
    %171 = arith.divf %169, %170 : vector<8x32xf32>
    %172 = arith.index_cast %151 : i32 to index
    %c0_106 = arith.constant 0 : index
    %173 = vector.load %arg36[%172, %c0_106] : memref<64x32xf32, #tpu.memory_space<vmem>>, vector<8x32xf32>
    %174 = arith.addf %173, %154 : vector<8x32xf32>
    %175 = math.tanh %174 : vector<8x32xf32>
    %176 = arith.index_cast %151 : i32 to index
    %c0_107 = arith.constant 0 : index
    %177 = vector.load %arg37[%176, %c0_107] : memref<64x32xf32, #tpu.memory_space<vmem>>, vector<8x32xf32>
    %178 = arith.addf %177, %155 : vector<8x32xf32>
    %179 = arith.negf %178 : vector<8x32xf32>
    %180 = math.exp %179 : vector<8x32xf32>
    %cst_108 = arith.constant 1.000000e+00 : f32
    %181 = vector.broadcast %cst_108 : f32 to vector<8x32xf32>
    %182 = arith.addf %181, %180 : vector<8x32xf32>
    %183 = arith.divf %181, %182 : vector<8x32xf32>
    %184 = arith.mulf %171, %143 : vector<8x32xf32>
    %185 = arith.mulf %163, %175 : vector<8x32xf32>
    %186 = arith.addf %184, %185 : vector<8x32xf32>
    %187 = math.tanh %186 : vector<8x32xf32>
    %188 = arith.mulf %183, %187 : vector<8x32xf32>
    %189 = arith.index_cast %c2_i32 : i32 to index
    %c0_109 = arith.constant 0 : index
    %c0_110 = arith.constant 0 : index
    %190 = vector.load %arg32[%189, %c0_109, %c0_110] : memref<8x8x32xf32, #tpu.memory_space<vmem>>, vector<1x8x32xf32>
    %191 = vector.shape_cast %190 : vector<1x8x32xf32> to vector<8x32xf32>
    %192 = vector.shape_cast %188 : vector<8x32xf32> to vector<1x8x32xf32>
    tpu.vector_store %arg32[%189, %c0_109, %c0_110], %192 {strides = array<i32>} : memref<8x8x32xf32, #tpu.memory_space<vmem>>, vector<1x8x32xf32>,
    %c3_i32 = arith.constant 3 : i32
    %c8_i32_111 = arith.constant 8 : i32
    %193 = arith.muli %c3_i32, %c8_i32_111 : i32
    %194 = tpu.assume_multiple %193, 8 : i32
    %cst_112 = arith.constant dense<0.000000e+00> : vector<8x32xf32>
    %195 = tpu.matmul %188, %58, %cst_112 {dimension_numbers = #tpu.dot_dimension_numbers<[1], [0], [0], [1], [0, 0, 1, 1], [], []>} : vector<8x32xf32>, vector<32x32xf32>, vector<8x32xf32> -> vector<8x32xf32>
    %cst_113 = arith.constant dense<0.000000e+00> : vector<8x32xf32>
    %196 = tpu.matmul %188, %59, %cst_113 {dimension_numbers = #tpu.dot_dimension_numbers<[1], [0], [0], [1], [0, 0, 1, 1], [], []>} : vector<8x32xf32>, vector<32x32xf32>, vector<8x32xf32> -> vector<8x32xf32>
    %cst_114 = arith.constant dense<0.000000e+00> : vector<8x32xf32>
    %197 = tpu.matmul %188, %60, %cst_114 {dimension_numbers = #tpu.dot_dimension_numbers<[1], [0], [0], [1], [0, 0, 1, 1], [], []>} : vector<8x32xf32>, vector<32x32xf32>, vector<8x32xf32> -> vector<8x32xf32>
    %cst_115 = arith.constant dense<0.000000e+00> : vector<8x32xf32>
    %198 = tpu.matmul %188, %61, %cst_115 {dimension_numbers = #tpu.dot_dimension_numbers<[1], [0], [0], [1], [0, 0, 1, 1], [], []>} : vector<8x32xf32>, vector<32x32xf32>, vector<8x32xf32> -> vector<8x32xf32>
    %199 = arith.index_cast %194 : i32 to index
    %c0_116 = arith.constant 0 : index
    %200 = vector.load %arg34[%199, %c0_116] : memref<64x32xf32, #tpu.memory_space<vmem>>, vector<8x32xf32>
    %201 = arith.addf %200, %195 : vector<8x32xf32>
    %202 = arith.negf %201 : vector<8x32xf32>
    %203 = math.exp %202 : vector<8x32xf32>
    %cst_117 = arith.constant 1.000000e+00 : f32
    %204 = vector.broadcast %cst_117 : f32 to vector<8x32xf32>
    %205 = arith.addf %204, %203 : vector<8x32xf32>
    %206 = arith.divf %204, %205 : vector<8x32xf32>
    %207 = arith.index_cast %194 : i32 to index
    %c0_118 = arith.constant 0 : index
    %208 = vector.load %arg35[%207, %c0_118] : memref<64x32xf32, #tpu.memory_space<vmem>>, vector<8x32xf32>
    %209 = arith.addf %208, %196 : vector<8x32xf32>
    %210 = arith.negf %209 : vector<8x32xf32>
    %211 = math.exp %210 : vector<8x32xf32>
    %cst_119 = arith.constant 1.000000e+00 : f32
    %212 = vector.broadcast %cst_119 : f32 to vector<8x32xf32>
    %213 = arith.addf %212, %211 : vector<8x32xf32>
    %214 = arith.divf %212, %213 : vector<8x32xf32>
    %215 = arith.index_cast %194 : i32 to index
    %c0_120 = arith.constant 0 : index
    %216 = vector.load %arg36[%215, %c0_120] : memref<64x32xf32, #tpu.memory_space<vmem>>, vector<8x32xf32>
    %217 = arith.addf %216, %197 : vector<8x32xf32>
    %218 = math.tanh %217 : vector<8x32xf32>
    %219 = arith.index_cast %194 : i32 to index
    %c0_121 = arith.constant 0 : index
    %220 = vector.load %arg37[%219, %c0_121] : memref<64x32xf32, #tpu.memory_space<vmem>>, vector<8x32xf32>
    %221 = arith.addf %220, %198 : vector<8x32xf32>
    %222 = arith.negf %221 : vector<8x32xf32>
    %223 = math.exp %222 : vector<8x32xf32>
    %cst_122 = arith.constant 1.000000e+00 : f32
    %224 = vector.broadcast %cst_122 : f32 to vector<8x32xf32>
    %225 = arith.addf %224, %223 : vector<8x32xf32>
    %226 = arith.divf %224, %225 : vector<8x32xf32>
    %227 = arith.mulf %214, %186 : vector<8x32xf32>
    %228 = arith.mulf %206, %218 : vector<8x32xf32>
    %229 = arith.addf %227, %228 : vector<8x32xf32>
    %230 = math.tanh %229 : vector<8x32xf32>
    %231 = arith.mulf %226, %230 : vector<8x32xf32>
    %232 = arith.index_cast %c3_i32 : i32 to index
    %c0_123 = arith.constant 0 : index
    %c0_124 = arith.constant 0 : index
    %233 = vector.load %arg32[%232, %c0_123, %c0_124] : memref<8x8x32xf32, #tpu.memory_space<vmem>>, vector<1x8x32xf32>
    %234 = vector.shape_cast %233 : vector<1x8x32xf32> to vector<8x32xf32>
    %235 = vector.shape_cast %231 : vector<8x32xf32> to vector<1x8x32xf32>
    tpu.vector_store %arg32[%232, %c0_123, %c0_124], %235 {strides = array<i32>} : memref<8x8x32xf32, #tpu.memory_space<vmem>>, vector<1x8x32xf32>,
    %c4_i32 = arith.constant 4 : i32
    %c8_i32_125 = arith.constant 8 : i32
    %236 = arith.muli %c4_i32, %c8_i32_125 : i32
    %237 = tpu.assume_multiple %236, 8 : i32
    %cst_126 = arith.constant dense<0.000000e+00> : vector<8x32xf32>
    %238 = tpu.matmul %231, %58, %cst_126 {dimension_numbers = #tpu.dot_dimension_numbers<[1], [0], [0], [1], [0, 0, 1, 1], [], []>} : vector<8x32xf32>, vector<32x32xf32>, vector<8x32xf32> -> vector<8x32xf32>
    %cst_127 = arith.constant dense<0.000000e+00> : vector<8x32xf32>
    %239 = tpu.matmul %231, %59, %cst_127 {dimension_numbers = #tpu.dot_dimension_numbers<[1], [0], [0], [1], [0, 0, 1, 1], [], []>} : vector<8x32xf32>, vector<32x32xf32>, vector<8x32xf32> -> vector<8x32xf32>
    %cst_128 = arith.constant dense<0.000000e+00> : vector<8x32xf32>
    %240 = tpu.matmul %231, %60, %cst_128 {dimension_numbers = #tpu.dot_dimension_numbers<[1], [0], [0], [1], [0, 0, 1, 1], [], []>} : vector<8x32xf32>, vector<32x32xf32>, vector<8x32xf32> -> vector<8x32xf32>
    %cst_129 = arith.constant dense<0.000000e+00> : vector<8x32xf32>
    %241 = tpu.matmul %231, %61, %cst_129 {dimension_numbers = #tpu.dot_dimension_numbers<[1], [0], [0], [1], [0, 0, 1, 1], [], []>} : vector<8x32xf32>, vector<32x32xf32>, vector<8x32xf32> -> vector<8x32xf32>
    %242 = arith.index_cast %237 : i32 to index
    %c0_130 = arith.constant 0 : index
    %243 = vector.load %arg34[%242, %c0_130] : memref<64x32xf32, #tpu.memory_space<vmem>>, vector<8x32xf32>
    %244 = arith.addf %243, %238 : vector<8x32xf32>
    %245 = arith.negf %244 : vector<8x32xf32>
    %246 = math.exp %245 : vector<8x32xf32>
    %cst_131 = arith.constant 1.000000e+00 : f32
    %247 = vector.broadcast %cst_131 : f32 to vector<8x32xf32>
    %248 = arith.addf %247, %246 : vector<8x32xf32>
    %249 = arith.divf %247, %248 : vector<8x32xf32>
    %250 = arith.index_cast %237 : i32 to index
    %c0_132 = arith.constant 0 : index
    %251 = vector.load %arg35[%250, %c0_132] : memref<64x32xf32, #tpu.memory_space<vmem>>, vector<8x32xf32>
    %252 = arith.addf %251, %239 : vector<8x32xf32>
    %253 = arith.negf %252 : vector<8x32xf32>
    %254 = math.exp %253 : vector<8x32xf32>
    %cst_133 = arith.constant 1.000000e+00 : f32
    %255 = vector.broadcast %cst_133 : f32 to vector<8x32xf32>
    %256 = arith.addf %255, %254 : vector<8x32xf32>
    %257 = arith.divf %255, %256 : vector<8x32xf32>
    %258 = arith.index_cast %237 : i32 to index
    %c0_134 = arith.constant 0 : index
    %259 = vector.load %arg36[%258, %c0_134] : memref<64x32xf32, #tpu.memory_space<vmem>>, vector<8x32xf32>
    %260 = arith.addf %259, %240 : vector<8x32xf32>
    %261 = math.tanh %260 : vector<8x32xf32>
    %262 = arith.index_cast %237 : i32 to index
    %c0_135 = arith.constant 0 : index
    %263 = vector.load %arg37[%262, %c0_135] : memref<64x32xf32, #tpu.memory_space<vmem>>, vector<8x32xf32>
    %264 = arith.addf %263, %241 : vector<8x32xf32>
    %265 = arith.negf %264 : vector<8x32xf32>
    %266 = math.exp %265 : vector<8x32xf32>
    %cst_136 = arith.constant 1.000000e+00 : f32
    %267 = vector.broadcast %cst_136 : f32 to vector<8x32xf32>
    %268 = arith.addf %267, %266 : vector<8x32xf32>
    %269 = arith.divf %267, %268 : vector<8x32xf32>
    %270 = arith.mulf %257, %229 : vector<8x32xf32>
    %271 = arith.mulf %249, %261 : vector<8x32xf32>
    %272 = arith.addf %270, %271 : vector<8x32xf32>
    %273 = math.tanh %272 : vector<8x32xf32>
    %274 = arith.mulf %269, %273 : vector<8x32xf32>
    %275 = arith.index_cast %c4_i32 : i32 to index
    %c0_137 = arith.constant 0 : index
    %c0_138 = arith.constant 0 : index
    %276 = vector.load %arg32[%275, %c0_137, %c0_138] : memref<8x8x32xf32, #tpu.memory_space<vmem>>, vector<1x8x32xf32>
    %277 = vector.shape_cast %276 : vector<1x8x32xf32> to vector<8x32xf32>
    %278 = vector.shape_cast %274 : vector<8x32xf32> to vector<1x8x32xf32>
    tpu.vector_store %arg32[%275, %c0_137, %c0_138], %278 {strides = array<i32>} : memref<8x8x32xf32, #tpu.memory_space<vmem>>, vector<1x8x32xf32>,
    %c5_i32 = arith.constant 5 : i32
    %c8_i32_139 = arith.constant 8 : i32
    %279 = arith.muli %c5_i32, %c8_i32_139 : i32
    %280 = tpu.assume_multiple %279, 8 : i32
    %cst_140 = arith.constant dense<0.000000e+00> : vector<8x32xf32>
    %281 = tpu.matmul %274, %58, %cst_140 {dimension_numbers = #tpu.dot_dimension_numbers<[1], [0], [0], [1], [0, 0, 1, 1], [], []>} : vector<8x32xf32>, vector<32x32xf32>, vector<8x32xf32> -> vector<8x32xf32>
    %cst_141 = arith.constant dense<0.000000e+00> : vector<8x32xf32>
    %282 = tpu.matmul %274, %59, %cst_141 {dimension_numbers = #tpu.dot_dimension_numbers<[1], [0], [0], [1], [0, 0, 1, 1], [], []>} : vector<8x32xf32>, vector<32x32xf32>, vector<8x32xf32> -> vector<8x32xf32>
    %cst_142 = arith.constant dense<0.000000e+00> : vector<8x32xf32>
    %283 = tpu.matmul %274, %60, %cst_142 {dimension_numbers = #tpu.dot_dimension_numbers<[1], [0], [0], [1], [0, 0, 1, 1], [], []>} : vector<8x32xf32>, vector<32x32xf32>, vector<8x32xf32> -> vector<8x32xf32>
    %cst_143 = arith.constant dense<0.000000e+00> : vector<8x32xf32>
    %284 = tpu.matmul %274, %61, %cst_143 {dimension_numbers = #tpu.dot_dimension_numbers<[1], [0], [0], [1], [0, 0, 1, 1], [], []>} : vector<8x32xf32>, vector<32x32xf32>, vector<8x32xf32> -> vector<8x32xf32>
    %285 = arith.index_cast %280 : i32 to index
    %c0_144 = arith.constant 0 : index
    %286 = vector.load %arg34[%285, %c0_144] : memref<64x32xf32, #tpu.memory_space<vmem>>, vector<8x32xf32>
    %287 = arith.addf %286, %281 : vector<8x32xf32>
    %288 = arith.negf %287 : vector<8x32xf32>
    %289 = math.exp %288 : vector<8x32xf32>
    %cst_145 = arith.constant 1.000000e+00 : f32
    %290 = vector.broadcast %cst_145 : f32 to vector<8x32xf32>
    %291 = arith.addf %290, %289 : vector<8x32xf32>
    %292 = arith.divf %290, %291 : vector<8x32xf32>
    %293 = arith.index_cast %280 : i32 to index
    %c0_146 = arith.constant 0 : index
    %294 = vector.load %arg35[%293, %c0_146] : memref<64x32xf32, #tpu.memory_space<vmem>>, vector<8x32xf32>
    %295 = arith.addf %294, %282 : vector<8x32xf32>
    %296 = arith.negf %295 : vector<8x32xf32>
    %297 = math.exp %296 : vector<8x32xf32>
    %cst_147 = arith.constant 1.000000e+00 : f32
    %298 = vector.broadcast %cst_147 : f32 to vector<8x32xf32>
    %299 = arith.addf %298, %297 : vector<8x32xf32>
    %300 = arith.divf %298, %299 : vector<8x32xf32>
    %301 = arith.index_cast %280 : i32 to index
    %c0_148 = arith.constant 0 : index
    %302 = vector.load %arg36[%301, %c0_148] : memref<64x32xf32, #tpu.memory_space<vmem>>, vector<8x32xf32>
    %303 = arith.addf %302, %283 : vector<8x32xf32>
    %304 = math.tanh %303 : vector<8x32xf32>
    %305 = arith.index_cast %280 : i32 to index
    %c0_149 = arith.constant 0 : index
    %306 = vector.load %arg37[%305, %c0_149] : memref<64x32xf32, #tpu.memory_space<vmem>>, vector<8x32xf32>
    %307 = arith.addf %306, %284 : vector<8x32xf32>
    %308 = arith.negf %307 : vector<8x32xf32>
    %309 = math.exp %308 : vector<8x32xf32>
    %cst_150 = arith.constant 1.000000e+00 : f32
    %310 = vector.broadcast %cst_150 : f32 to vector<8x32xf32>
    %311 = arith.addf %310, %309 : vector<8x32xf32>
    %312 = arith.divf %310, %311 : vector<8x32xf32>
    %313 = arith.mulf %300, %272 : vector<8x32xf32>
    %314 = arith.mulf %292, %304 : vector<8x32xf32>
    %315 = arith.addf %313, %314 : vector<8x32xf32>
    %316 = math.tanh %315 : vector<8x32xf32>
    %317 = arith.mulf %312, %316 : vector<8x32xf32>
    %318 = arith.index_cast %c5_i32 : i32 to index
    %c0_151 = arith.constant 0 : index
    %c0_152 = arith.constant 0 : index
    %319 = vector.load %arg32[%318, %c0_151, %c0_152] : memref<8x8x32xf32, #tpu.memory_space<vmem>>, vector<1x8x32xf32>
    %320 = vector.shape_cast %319 : vector<1x8x32xf32> to vector<8x32xf32>
    %321 = vector.shape_cast %317 : vector<8x32xf32> to vector<1x8x32xf32>
    tpu.vector_store %arg32[%318, %c0_151, %c0_152], %321 {strides = array<i32>} : memref<8x8x32xf32, #tpu.memory_space<vmem>>, vector<1x8x32xf32>,
    %c6_i32 = arith.constant 6 : i32
    %c8_i32_153 = arith.constant 8 : i32
    %322 = arith.muli %c6_i32, %c8_i32_153 : i32
    %323 = tpu.assume_multiple %322, 8 : i32
    %cst_154 = arith.constant dense<0.000000e+00> : vector<8x32xf32>
    %324 = tpu.matmul %317, %58, %cst_154 {dimension_numbers = #tpu.dot_dimension_numbers<[1], [0], [0], [1], [0, 0, 1, 1], [], []>} : vector<8x32xf32>, vector<32x32xf32>, vector<8x32xf32> -> vector<8x32xf32>
    %cst_155 = arith.constant dense<0.000000e+00> : vector<8x32xf32>
    %325 = tpu.matmul %317, %59, %cst_155 {dimension_numbers = #tpu.dot_dimension_numbers<[1], [0], [0], [1], [0, 0, 1, 1], [], []>} : vector<8x32xf32>, vector<32x32xf32>, vector<8x32xf32> -> vector<8x32xf32>
    %cst_156 = arith.constant dense<0.000000e+00> : vector<8x32xf32>
    %326 = tpu.matmul %317, %60, %cst_156 {dimension_numbers = #tpu.dot_dimension_numbers<[1], [0], [0], [1], [0, 0, 1, 1], [], []>} : vector<8x32xf32>, vector<32x32xf32>, vector<8x32xf32> -> vector<8x32xf32>
    %cst_157 = arith.constant dense<0.000000e+00> : vector<8x32xf32>
    %327 = tpu.matmul %317, %61, %cst_157 {dimension_numbers = #tpu.dot_dimension_numbers<[1], [0], [0], [1], [0, 0, 1, 1], [], []>} : vector<8x32xf32>, vector<32x32xf32>, vector<8x32xf32> -> vector<8x32xf32>
    %328 = arith.index_cast %323 : i32 to index
    %c0_158 = arith.constant 0 : index
    %329 = vector.load %arg34[%328, %c0_158] : memref<64x32xf32, #tpu.memory_space<vmem>>, vector<8x32xf32>
    %330 = arith.addf %329, %324 : vector<8x32xf32>
    %331 = arith.negf %330 : vector<8x32xf32>
    %332 = math.exp %331 : vector<8x32xf32>
    %cst_159 = arith.constant 1.000000e+00 : f32
    %333 = vector.broadcast %cst_159 : f32 to vector<8x32xf32>
    %334 = arith.addf %333, %332 : vector<8x32xf32>
    %335 = arith.divf %333, %334 : vector<8x32xf32>
    %336 = arith.index_cast %323 : i32 to index
    %c0_160 = arith.constant 0 : index
    %337 = vector.load %arg35[%336, %c0_160] : memref<64x32xf32, #tpu.memory_space<vmem>>, vector<8x32xf32>
    %338 = arith.addf %337, %325 : vector<8x32xf32>
    %339 = arith.negf %338 : vector<8x32xf32>
    %340 = math.exp %339 : vector<8x32xf32>
    %cst_161 = arith.constant 1.000000e+00 : f32
    %341 = vector.broadcast %cst_161 : f32 to vector<8x32xf32>
    %342 = arith.addf %341, %340 : vector<8x32xf32>
    %343 = arith.divf %341, %342 : vector<8x32xf32>
    %344 = arith.index_cast %323 : i32 to index
    %c0_162 = arith.constant 0 : index
    %345 = vector.load %arg36[%344, %c0_162] : memref<64x32xf32, #tpu.memory_space<vmem>>, vector<8x32xf32>
    %346 = arith.addf %345, %326 : vector<8x32xf32>
    %347 = math.tanh %346 : vector<8x32xf32>
    %348 = arith.index_cast %323 : i32 to index
    %c0_163 = arith.constant 0 : index
    %349 = vector.load %arg37[%348, %c0_163] : memref<64x32xf32, #tpu.memory_space<vmem>>, vector<8x32xf32>
    %350 = arith.addf %349, %327 : vector<8x32xf32>
    %351 = arith.negf %350 : vector<8x32xf32>
    %352 = math.exp %351 : vector<8x32xf32>
    %cst_164 = arith.constant 1.000000e+00 : f32
    %353 = vector.broadcast %cst_164 : f32 to vector<8x32xf32>
    %354 = arith.addf %353, %352 : vector<8x32xf32>
    %355 = arith.divf %353, %354 : vector<8x32xf32>
    %356 = arith.mulf %343, %315 : vector<8x32xf32>
    %357 = arith.mulf %335, %347 : vector<8x32xf32>
    %358 = arith.addf %356, %357 : vector<8x32xf32>
    %359 = math.tanh %358 : vector<8x32xf32>
    %360 = arith.mulf %355, %359 : vector<8x32xf32>
    %361 = arith.index_cast %c6_i32 : i32 to index
    %c0_165 = arith.constant 0 : index
    %c0_166 = arith.constant 0 : index
    %362 = vector.load %arg32[%361, %c0_165, %c0_166] : memref<8x8x32xf32, #tpu.memory_space<vmem>>, vector<1x8x32xf32>
    %363 = vector.shape_cast %362 : vector<1x8x32xf32> to vector<8x32xf32>
    %364 = vector.shape_cast %360 : vector<8x32xf32> to vector<1x8x32xf32>
    tpu.vector_store %arg32[%361, %c0_165, %c0_166], %364 {strides = array<i32>} : memref<8x8x32xf32, #tpu.memory_space<vmem>>, vector<1x8x32xf32>,
    %c7_i32 = arith.constant 7 : i32
    %c8_i32_167 = arith.constant 8 : i32
    %365 = arith.muli %c7_i32, %c8_i32_167 : i32
    %366 = tpu.assume_multiple %365, 8 : i32
    %cst_168 = arith.constant dense<0.000000e+00> : vector<8x32xf32>
    %367 = tpu.matmul %360, %58, %cst_168 {dimension_numbers = #tpu.dot_dimension_numbers<[1], [0], [0], [1], [0, 0, 1, 1], [], []>} : vector<8x32xf32>, vector<32x32xf32>, vector<8x32xf32> -> vector<8x32xf32>
    %cst_169 = arith.constant dense<0.000000e+00> : vector<8x32xf32>
    %368 = tpu.matmul %360, %59, %cst_169 {dimension_numbers = #tpu.dot_dimension_numbers<[1], [0], [0], [1], [0, 0, 1, 1], [], []>} : vector<8x32xf32>, vector<32x32xf32>, vector<8x32xf32> -> vector<8x32xf32>
    %cst_170 = arith.constant dense<0.000000e+00> : vector<8x32xf32>
    %369 = tpu.matmul %360, %60, %cst_170 {dimension_numbers = #tpu.dot_dimension_numbers<[1], [0], [0], [1], [0, 0, 1, 1], [], []>} : vector<8x32xf32>, vector<32x32xf32>, vector<8x32xf32> -> vector<8x32xf32>
    %cst_171 = arith.constant dense<0.000000e+00> : vector<8x32xf32>
    %370 = tpu.matmul %360, %61, %cst_171 {dimension_numbers = #tpu.dot_dimension_numbers<[1], [0], [0], [1], [0, 0, 1, 1], [], []>} : vector<8x32xf32>, vector<32x32xf32>, vector<8x32xf32> -> vector<8x32xf32>
    %371 = arith.index_cast %366 : i32 to index
    %c0_172 = arith.constant 0 : index
    %372 = vector.load %arg34[%371, %c0_172] : memref<64x32xf32, #tpu.memory_space<vmem>>, vector<8x32xf32>
    %373 = arith.addf %372, %367 : vector<8x32xf32>
    %374 = arith.negf %373 : vector<8x32xf32>
    %375 = math.exp %374 : vector<8x32xf32>
    %cst_173 = arith.constant 1.000000e+00 : f32
    %376 = vector.broadcast %cst_173 : f32 to vector<8x32xf32>
    %377 = arith.addf %376, %375 : vector<8x32xf32>
    %378 = arith.divf %376, %377 : vector<8x32xf32>
    %379 = arith.index_cast %366 : i32 to index
    %c0_174 = arith.constant 0 : index
    %380 = vector.load %arg35[%379, %c0_174] : memref<64x32xf32, #tpu.memory_space<vmem>>, vector<8x32xf32>
    %381 = arith.addf %380, %368 : vector<8x32xf32>
    %382 = arith.negf %381 : vector<8x32xf32>
    %383 = math.exp %382 : vector<8x32xf32>
    %cst_175 = arith.constant 1.000000e+00 : f32
    %384 = vector.broadcast %cst_175 : f32 to vector<8x32xf32>
    %385 = arith.addf %384, %383 : vector<8x32xf32>
    %386 = arith.divf %384, %385 : vector<8x32xf32>
    %387 = arith.index_cast %366 : i32 to index
    %c0_176 = arith.constant 0 : index
    %388 = vector.load %arg36[%387, %c0_176] : memref<64x32xf32, #tpu.memory_space<vmem>>, vector<8x32xf32>
    %389 = arith.addf %388, %369 : vector<8x32xf32>
    %390 = math.tanh %389 : vector<8x32xf32>
    %391 = arith.index_cast %366 : i32 to index
    %c0_177 = arith.constant 0 : index
    %392 = vector.load %arg37[%391, %c0_177] : memref<64x32xf32, #tpu.memory_space<vmem>>, vector<8x32xf32>
    %393 = arith.addf %392, %370 : vector<8x32xf32>
    %394 = arith.negf %393 : vector<8x32xf32>
    %395 = math.exp %394 : vector<8x32xf32>
    %cst_178 = arith.constant 1.000000e+00 : f32
    %396 = vector.broadcast %cst_178 : f32 to vector<8x32xf32>
    %397 = arith.addf %396, %395 : vector<8x32xf32>
    %398 = arith.divf %396, %397 : vector<8x32xf32>
    %399 = arith.mulf %386, %358 : vector<8x32xf32>
    %400 = arith.mulf %378, %390 : vector<8x32xf32>
    %401 = arith.addf %399, %400 : vector<8x32xf32>
    %402 = math.tanh %401 : vector<8x32xf32>
    %403 = arith.mulf %398, %402 : vector<8x32xf32>
    %404 = arith.index_cast %c7_i32 : i32 to index
    %c0_179 = arith.constant 0 : index
    %c0_180 = arith.constant 0 : index
    %405 = vector.load %arg32[%404, %c0_179, %c0_180] : memref<8x8x32xf32, #tpu.memory_space<vmem>>, vector<1x8x32xf32>
    %406 = vector.shape_cast %405 : vector<1x8x32xf32> to vector<8x32xf32>
    %407 = vector.shape_cast %403 : vector<8x32xf32> to vector<1x8x32xf32>
    tpu.vector_store %arg32[%404, %c0_179, %c0_180], %407 {strides = array<i32>} : memref<8x8x32xf32, #tpu.memory_space<vmem>>, vector<1x8x32xf32>,
    %c8_i32_181 = arith.constant 8 : i32
    %c0_182 = arith.constant 0 : index
    %c0_183 = arith.constant 0 : index
    %c0_184 = arith.constant 0 : index
    %408 = vector.load %arg32[%c0_182, %c0_183, %c0_184] : memref<8x8x32xf32, #tpu.memory_space<vmem>>, vector<8x8x32xf32>
    %409 = vector.shape_cast %408 : vector<8x8x32xf32> to vector<64x32xf32>
    %c0_185 = arith.constant 0 : index
    %c0_186 = arith.constant 0 : index
    %410 = vector.load %arg33[%c0_185, %c0_186] : memref<64x32xf32, #tpu.memory_space<vmem>>, vector<64x32xf32>
    %c0_187 = arith.constant 0 : index
    %c0_188 = arith.constant 0 : index
    %411 = vector.load %arg23[%c0_187, %c0_188] : memref<32x32xf32, #tpu.memory_space<vmem>>, vector<32x32xf32>
    %cst_189 = arith.constant dense<0.000000e+00> : vector<64x32xf32>
    %412 = tpu.matmul %409, %411, %cst_189 {dimension_numbers = #tpu.dot_dimension_numbers<[1], [0], [0], [1], [0, 0, 1, 1], [], []>} : vector<64x32xf32>, vector<32x32xf32>, vector<64x32xf32> -> vector<64x32xf32>
    %413 = arith.addf %410, %412 : vector<64x32xf32>
    %cst_190 = arith.constant 0.000000e+00 : f32
    %414 = vector.broadcast %cst_190 : f32 to vector<64x32xf32>
    %415 = arith.maximumf %413, %414 : vector<64x32xf32>
    %c0_191 = arith.constant 0 : index
    %c0_192 = arith.constant 0 : index
    %416 = vector.load %arg25[%c0_191, %c0_192] : memref<32x16xf32, #tpu.memory_space<vmem>>, vector<32x16xf32>
    %cst_193 = arith.constant dense<0.000000e+00> : vector<64x16xf32>
    %417 = tpu.matmul %415, %416, %cst_193 {dimension_numbers = #tpu.dot_dimension_numbers<[1], [0], [0], [1], [0, 0, 1, 1], [], []>} : vector<64x32xf32>, vector<32x16xf32>, vector<64x16xf32> -> vector<64x16xf32>
    %c0_194 = arith.constant 0 : index
    %c0_195 = arith.constant 0 : index
    %418 = vector.load %arg26[%c0_194, %c0_195] : memref<1x16xf32, #tpu.memory_space<vmem>>, vector<1x16xf32>
    %419 = vector.broadcast %418 : vector<1x16xf32> to vector<64x16xf32>
    %420 = arith.addf %417, %419 : vector<64x16xf32>
    %cst_196 = arith.constant 0.000000e+00 : f32
    %421 = vector.broadcast %cst_196 : f32 to vector<64x16xf32>
    %422 = arith.maximumf %420, %421 : vector<64x16xf32>
    %c0_197 = arith.constant 0 : index
    %c0_198 = arith.constant 0 : index
    %423 = vector.load %arg27[%c0_197, %c0_198] : memref<16x16xf32, #tpu.memory_space<vmem>>, vector<16x16xf32>
    %cst_199 = arith.constant dense<0.000000e+00> : vector<64x16xf32>
    %424 = tpu.matmul %422, %423, %cst_199 {dimension_numbers = #tpu.dot_dimension_numbers<[1], [0], [0], [1], [0, 0, 1, 1], [], []>} : vector<64x16xf32>, vector<16x16xf32>, vector<64x16xf32> -> vector<64x16xf32>
    %c0_200 = arith.constant 0 : index
    %c0_201 = arith.constant 0 : index
    %425 = vector.load %arg28[%c0_200, %c0_201] : memref<1x16xf32, #tpu.memory_space<vmem>>, vector<1x16xf32>
    %426 = vector.broadcast %425 : vector<1x16xf32> to vector<64x16xf32>
    %427 = arith.addf %424, %426 : vector<64x16xf32>
    %cst_202 = arith.constant 0.000000e+00 : f32
    %428 = vector.broadcast %cst_202 : f32 to vector<64x16xf32>
    %429 = arith.maximumf %427, %428 : vector<64x16xf32>
    %c0_203 = arith.constant 0 : index
    %c0_204 = arith.constant 0 : index
    %430 = vector.load %arg29[%c0_203, %c0_204] : memref<16x1xf32, #tpu.memory_space<vmem>>, vector<16x1xf32>
    %cst_205 = arith.constant dense<0.000000e+00> : vector<64x1xf32>
    %431 = tpu.matmul %429, %430, %cst_205 {dimension_numbers = #tpu.dot_dimension_numbers<[1], [0], [0], [1], [0, 0, 1, 1], [], []>} : vector<64x16xf32>, vector<16x1xf32>, vector<64x1xf32> -> vector<64x1xf32>
    %c0_206 = arith.constant 0 : index
    %c0_207 = arith.constant 0 : index
    %432 = vector.load %arg30[%c0_206, %c0_207] : memref<1x1xf32, #tpu.memory_space<vmem>>, vector<1x1xf32>
    %433 = vector.broadcast %432 : vector<1x1xf32> to vector<64x1xf32>
    %434 = arith.addf %431, %433 : vector<64x1xf32>
    %435 = vector.shape_cast %434 : vector<64x1xf32> to vector<8x8x1xf32>
    %c0_208 = arith.constant 0 : index
    %c0_209 = arith.constant 0 : index
    %c0_210 = arith.constant 0 : index
    %436 = vector.load %arg31[%c0_208, %c0_209, %c0_210] : memref<8x8x1xf32, #tpu.memory_space<vmem>>, vector<8x8x1xf32>
    tpu.vector_store %arg31[%c0_208, %c0_209, %c0_210], %435 {strides = array<i32>} : memref<8x8x1xf32, #tpu.memory_space<vmem>>, vector<8x8x1xf32>,
    return
  }
  func.func @transform_0(%arg0: i32) -> (i32, i32, i32) {
    %c0_i32 = arith.constant 0 : i32
    %c0_i32_0 = arith.constant 0 : i32
    %c0_i32_1 = arith.constant 0 : i32
    return %c0_i32, %arg0, %c0_i32_0 : i32, i32, i32
  }
  func.func @transform_1(%arg0: i32) -> (i32, i32, i32) {
    %c0_i32 = arith.constant 0 : i32
    %c0_i32_0 = arith.constant 0 : i32
    %c0_i32_1 = arith.constant 0 : i32
    return %c0_i32, %arg0, %c0_i32_0 : i32, i32, i32
  }
  func.func @transform_2(%arg0: i32) -> (i32, i32) {
    %c0_i32 = arith.constant 0 : i32
    %c0_i32_0 = arith.constant 0 : i32
    %c0_i32_1 = arith.constant 0 : i32
    return %c0_i32, %c0_i32_0 : i32, i32
  }
  func.func @transform_3(%arg0: i32) -> (i32, i32) {
    %c0_i32 = arith.constant 0 : i32
    %c0_i32_0 = arith.constant 0 : i32
    %c0_i32_1 = arith.constant 0 : i32
    return %c0_i32, %c0_i32_0 : i32, i32
  }
  func.func @transform_4(%arg0: i32) -> (i32, i32) {
    %c0_i32 = arith.constant 0 : i32
    %c0_i32_0 = arith.constant 0 : i32
    %c0_i32_1 = arith.constant 0 : i32
    return %c0_i32, %c0_i32_0 : i32, i32
  }
  func.func @transform_5(%arg0: i32) -> (i32, i32) {
    %c0_i32 = arith.constant 0 : i32
    %c0_i32_0 = arith.constant 0 : i32
    %c0_i32_1 = arith.constant 0 : i32
    return %c0_i32, %c0_i32_0 : i32, i32
  }
  func.func @transform_6(%arg0: i32) -> (i32, i32) {
    %c0_i32 = arith.constant 0 : i32
    %c0_i32_0 = arith.constant 0 : i32
    %c0_i32_1 = arith.constant 0 : i32
    return %c0_i32, %c0_i32_0 : i32, i32
  }
  func.func @transform_7(%arg0: i32) -> (i32, i32) {
    %c0_i32 = arith.constant 0 : i32
    %c0_i32_0 = arith.constant 0 : i32
    %c0_i32_1 = arith.constant 0 : i32
    return %c0_i32, %c0_i32_0 : i32, i32
  }
  func.func @transform_8(%arg0: i32) -> (i32, i32) {
    %c0_i32 = arith.constant 0 : i32
    %c0_i32_0 = arith.constant 0 : i32
    %c0_i32_1 = arith.constant 0 : i32
    return %c0_i32, %c0_i32_0 : i32, i32
  }
  func.func @transform_9(%arg0: i32) -> (i32, i32) {
    %c0_i32 = arith.constant 0 : i32
    %c0_i32_0 = arith.constant 0 : i32
    %c0_i32_1 = arith.constant 0 : i32
    return %c0_i32, %c0_i32_0 : i32, i32
  }
  func.func @transform_10(%arg0: i32) -> (i32, i32) {
    %c0_i32 = arith.constant 0 : i32
    %c0_i32_0 = arith.constant 0 : i32
    %c0_i32_1 = arith.constant 0 : i32
    return %c0_i32, %c0_i32_0 : i32, i32
  }
  func.func @transform_11(%arg0: i32) -> (i32, i32) {
    %c0_i32 = arith.constant 0 : i32
    %c0_i32_0 = arith.constant 0 : i32
    %c0_i32_1 = arith.constant 0 : i32
    return %c0_i32, %c0_i32_0 : i32, i32
  }
  func.func @transform_12(%arg0: i32) -> (i32, i32) {
    %c0_i32 = arith.constant 0 : i32
    %c0_i32_0 = arith.constant 0 : i32
    %c0_i32_1 = arith.constant 0 : i32
    return %c0_i32, %c0_i32_0 : i32, i32
  }
  func.func @transform_13(%arg0: i32) -> (i32, i32) {
    %c0_i32 = arith.constant 0 : i32
    %c0_i32_0 = arith.constant 0 : i32
    %c0_i32_1 = arith.constant 0 : i32
    return %c0_i32, %c0_i32_0 : i32, i32
  }
  func.func @transform_14(%arg0: i32) -> (i32, i32) {
    %c0_i32 = arith.constant 0 : i32
    %c0_i32_0 = arith.constant 0 : i32
    %c0_i32_1 = arith.constant 0 : i32
    return %c0_i32, %c0_i32_0 : i32, i32
  }
  func.func @transform_15(%arg0: i32) -> (i32, i32) {
    %c0_i32 = arith.constant 0 : i32
    %c0_i32_0 = arith.constant 0 : i32
    %c0_i32_1 = arith.constant 0 : i32
    return %c0_i32, %c0_i32_0 : i32, i32
  }
  func.func @transform_16(%arg0: i32) -> (i32, i32) {
    %c0_i32 = arith.constant 0 : i32
    %c0_i32_0 = arith.constant 0 : i32
    %c0_i32_1 = arith.constant 0 : i32
    return %c0_i32, %c0_i32_0 : i32, i32
  }
  func.func @transform_17(%arg0: i32) -> (i32, i32) {
    %c0_i32 = arith.constant 0 : i32
    %c0_i32_0 = arith.constant 0 : i32
    %c0_i32_1 = arith.constant 0 : i32
    return %c0_i32, %c0_i32_0 : i32, i32
  }
  func.func @transform_18(%arg0: i32) -> (i32, i32) {
    %c0_i32 = arith.constant 0 : i32
    %c0_i32_0 = arith.constant 0 : i32
    %c0_i32_1 = arith.constant 0 : i32
    return %c0_i32, %c0_i32_0 : i32, i32
  }
  func.func @transform_19(%arg0: i32) -> (i32, i32) {
    %c0_i32 = arith.constant 0 : i32
    %c0_i32_0 = arith.constant 0 : i32
    %c0_i32_1 = arith.constant 0 : i32
    return %c0_i32, %c0_i32_0 : i32, i32
  }
  func.func @transform_20(%arg0: i32) -> (i32, i32) {
    %c0_i32 = arith.constant 0 : i32
    %c0_i32_0 = arith.constant 0 : i32
    %c0_i32_1 = arith.constant 0 : i32
    return %c0_i32, %c0_i32_0 : i32, i32
  }
  func.func @transform_21(%arg0: i32) -> (i32, i32) {
    %c0_i32 = arith.constant 0 : i32
    %c0_i32_0 = arith.constant 0 : i32
    %c0_i32_1 = arith.constant 0 : i32
    return %c0_i32, %c0_i32_0 : i32, i32
  }
  func.func @transform_22(%arg0: i32) -> (i32, i32) {
    %c0_i32 = arith.constant 0 : i32
    %c0_i32_0 = arith.constant 0 : i32
    %c0_i32_1 = arith.constant 0 : i32
    return %c0_i32, %c0_i32_0 : i32, i32
  }
  func.func @transform_23(%arg0: i32) -> (i32, i32) {
    %c0_i32 = arith.constant 0 : i32
    %c0_i32_0 = arith.constant 0 : i32
    %c0_i32_1 = arith.constant 0 : i32
    return %c0_i32, %c0_i32_0 : i32, i32
  }
  func.func @transform_24(%arg0: i32) -> (i32, i32) {
    %c0_i32 = arith.constant 0 : i32
    %c0_i32_0 = arith.constant 0 : i32
    %c0_i32_1 = arith.constant 0 : i32
    return %c0_i32, %c0_i32_0 : i32, i32
  }
  func.func @transform_25(%arg0: i32) -> (i32, i32) {
    %c0_i32 = arith.constant 0 : i32
    %c0_i32_0 = arith.constant 0 : i32
    %c0_i32_1 = arith.constant 0 : i32
    return %c0_i32, %c0_i32_0 : i32, i32
  }
  func.func @transform_26(%arg0: i32) -> (i32, i32) {
    %c0_i32 = arith.constant 0 : i32
    %c0_i32_0 = arith.constant 0 : i32
    %c0_i32_1 = arith.constant 0 : i32
    return %c0_i32, %c0_i32_0 : i32, i32
  }
  func.func @transform_27(%arg0: i32) -> (i32, i32) {
    %c0_i32 = arith.constant 0 : i32
    %c0_i32_0 = arith.constant 0 : i32
    %c0_i32_1 = arith.constant 0 : i32
    return %c0_i32, %c0_i32_0 : i32, i32
  }
  func.func @transform_28(%arg0: i32) -> (i32, i32) {
    %c0_i32 = arith.constant 0 : i32
    %c0_i32_0 = arith.constant 0 : i32
    %c0_i32_1 = arith.constant 0 : i32
    return %c0_i32, %c0_i32_0 : i32, i32
  }
  func.func @transform_29(%arg0: i32) -> (i32, i32) {
    %c0_i32 = arith.constant 0 : i32
    %c0_i32_0 = arith.constant 0 : i32
    %c0_i32_1 = arith.constant 0 : i32
    return %c0_i32, %c0_i32_0 : i32, i32
  }
  func.func @transform_30(%arg0: i32) -> (i32, i32, i32) {
    %c0_i32 = arith.constant 0 : i32
    %c0_i32_0 = arith.constant 0 : i32
    %c0_i32_1 = arith.constant 0 : i32
    return %c0_i32, %arg0, %c0_i32_0 : i32, i32, i32
  }
  func.func @transform_31(%arg0: i32) -> (i32, i32, i32) {
    %c0_i32 = arith.constant 0 : i32
    %c0_i32_0 = arith.constant 0 : i32
    %c0_i32_1 = arith.constant 0 : i32
    return %c0_i32, %arg0, %c0_i32_0 : i32, i32, i32
  }
}

</mosaic_0001>

<bundles_post_ra>
// kernel: tpu_custom_call.1
= control target key start
LH: loop header
LB: loop body
LE: loop exit
PB: predicated region body
PF: predicated region fallthrough
CT: control target
= control target key end

     0   :  { %s6711_s6 = smov 1   ;;  %s6712_s10 = smov 2   ;;  %s7589_s0 = inlined_call_operand.smem [shape: u32[32], index: -1, kind: input, shape index: {}] }
   0x1   :  { %s6771_s5 = sld [smem:[%s7589_s0]]   ;;  %s6713_s14 = smov 3  }
   0x2   :  { %s6776_s9 = sld [smem:[%s7589_s0 + %s6711_s6]]   ;;  %s6714_s18 = smov 4  }
   0x3   :  { %s6781_s13 = sld [smem:[%s7589_s0 + %s6712_s10]]   ;;  %s6715_s22 = smov 5  }
   0x4   :  { %s6786_s17 = sld [smem:[%s7589_s0 + %s6713_s14]]   ;;  %s6716_s26 = smov 6  }
   0x5   :  { %s6791_s21 = sld [smem:[%s7589_s0 + %s6714_s18]]   ;;  %s6717_s30 = smov 7  }
   0x6   :  { %s6796_s25 = sld [smem:[%s7589_s0 + %s6715_s22]]   ;;  %s6718_s4 = smov 8  }
   0x7   :  { %7601 = sst [smem:[#allocation41_spill]] %s6771_s5  ;;  %s6719_s10 = smov 9  }
   0x8   :  { %7602 = sst [smem:[#allocation42_spill]] %s6776_s9  ;;  %s6720_s15 = smov 10  }
   0x9   :  { %s6801_s29 = sld [smem:[%s7589_s0 + %s6716_s26]]   ;;  %s6721_s20 = smov 11  }
   0xa   :  { %s6806_s3 = sld [smem:[%s7589_s0 + %s6717_s30]]   ;;  %s6722_s26 = smov 12  }
   0xb   :  { %s6811_s8 = sld [smem:[%s7589_s0 + %s6718_s4]]   ;;  %s6723_s1 = smov 13  }
   0xc   :  { %7603 = sst [smem:[#allocation43_spill]] %s6796_s25  ;;  %s6724_s7 = smov 14  }
   0xd   :  { %s6816_s14 = sld [smem:[%s7589_s0 + %s6719_s10]]   ;;  %s6726_s22 = smov 16  }
   0xe   :  { %s6821_s19 = sld [smem:[%s7589_s0 + %s6720_s15]]   ;;  %s6725_s15 = smov 15  }
   0xf   :  { %s6826_s24 = sld [smem:[%s7589_s0 + %s6721_s20]]   ;;  %s6727_s28 = smov 17  }
  0x10   :  { %7604 = sst [smem:[#allocation44_spill]] %s6806_s3  ;;  %s6740_s10 = smov 30  }
  0x11   :  { %s6831_s30 = sld [smem:[%s7589_s0 + %s6722_s26]]   ;;  %s6741_s16 = smov 31  }
  0x12   :  { %s6836_s6 = sld [smem:[%s7589_s0 + %s6723_s1]]  }
  0x13   :  { %7605 = sst [smem:[#allocation45_spill]] %s6816_s14 }
  0x14   :  { %7606 = sst [smem:[#allocation46_spill]] %s6821_s19 }
  0x15   :  { %7607 = sst [smem:[#allocation47_spill]] %s6826_s24 }
  0x16   :  { %s6841_s12 = sld [smem:[%s7589_s0 + %s6724_s7]]   ;;  %s6728_s7 = smov 18  }
  0x17   :  { %7608 = sst [smem:[#allocation48_spill]] %s6831_s30 }
  0x18   :  { %s6846_s20 = sld [smem:[%s7589_s0 + %s6725_s15]]   ;;  %s6729_s15 = smov 19  }
  0x19   :  { %s6851_s27 = sld [smem:[%s7589_s0 + %s6726_s22]]   ;;  %s6730_s22 = smov 20  }
  0x1a   :  { %s6856_s4 = sld [smem:[%s7589_s0 + %s6727_s28]]   ;;  %s6731_s28 = smov 21  }
  0x1b   :  { %s6861_s30 = sld [smem:[%s7589_s0 + %s6728_s7]]   ;;  %s6732_s7 = smov 22  }
  0x1c   :  { %s6866_s24 = sld [smem:[%s7589_s0 + %s6729_s15]]   ;;  %s6733_s15 = smov 23  }
  0x1d   :  { %s6876_s19 = sld [smem:[%s7589_s0 + %s6731_s28]]   ;;  %s6735_s28 = smov 25  }
  0x1e   :  { %s6881_s14 = sld [smem:[%s7589_s0 + %s6732_s7]]   ;;  %s6736_s7 = smov 26  }
  0x1f   :  { %7609 = sst [smem:[#allocation49_spill]] %s6851_s27 }
  0x20   :  { %s6871_s27 = sld [smem:[%s7589_s0 + %s6730_s22]]   ;;  %s6734_s22 = smov 24  }
  0x21   :  { %s6886_s3 = sld [smem:[%s7589_s0 + %s6733_s15]]   ;;  %s6737_s15 = smov 27  }
  0x22   :  { %s6891_s5 = sld [smem:[%s7589_s0 + %s6734_s22]]   ;;  %s6738_s22 = smov 28  }
  0x23   :  { %s6896_s25 = sld [smem:[%s7589_s0 + %s6735_s28]]   ;;  %s6739_s28 = smov 29  }
  0x24   :  { %s6901_s9 = sld [smem:[%s7589_s0 + %s6736_s7]]  }
  0x27   :  { %7610 = sst [smem:[#allocation50_spill]] %s6886_s3 }
  0x28   :  { %7611 = sst [smem:[#allocation51_spill]] %s6891_s5 }
  0x29   :  { %7612 = sst [smem:[#allocation52_spill]] %s6896_s25 }
  0x2a   :  { %7613 = sst [smem:[#allocation53_spill]] %s6901_s9 }
  0x2b   :  { %s6906_s3 = sld [smem:[%s7589_s0 + %s6737_s15]]  }
  0x2c   :  { %s6911_s5 = sld [smem:[%s7589_s0 + %s6738_s22]]  }
  0x2d   :  { %s4804_s25 = sld [smem:[%s7589_s0 + %s6739_s28]]  }
  0x2e   :  { %s6919_s9 = sld [smem:[%s7589_s0 + %s6740_s10]]  }
  0x31   :  { %7614 = sst [smem:[#allocation54_spill]] %s6906_s3 }
  0x32   :  { %s6924_s3 = sld [smem:[%s7589_s0 + %s6741_s16]]  }
  0x33   :  { %v69_v0 = vstv %s4804_s25 }
  0x34   :  { %70 = vst [vmem:[#allocation7] sm:$0x1] %v69_v0 }
  0x35   :  { %71 = vsyncpa [#allocation9], 0 }
  0x36   :  { %72 = vsyncpa [#allocation12], 0 }
  0x37   :  { %73 = vsyncpa [#allocation15], 0 }
  0x38   :  { %74 = vsyncpa [#allocation18], 0 }
  0x39   :  { %75 = vsyncpa [#allocation21], 0 }
  0x3a   :  { %76 = vsyncpa [#allocation24], 0 }
  0x3b   :  { %77 = vsyncpa [#allocation27], 0 }
  0x3c   :  { %78 = vsyncpa [#allocation30], 0 }
  0x3d   :  { %79 = vsyncpa [#allocation10], 0  ;;  %s6742_s22 = smov [#allocation11]   ;;  %s6743_s26 = smov [#allocation14]  }
  0x3e   :  { %s102_s23 = sshll.u32 %s6742_s22, 4  ;;  %s124_s28 = sshll.u32 %s6743_s26, 4  ;;  %s103_s23 = int_to_ptr.vmem [resolvable:$true] %s102_s23  ;;  %s125_s28 = int_to_ptr.vmem [resolvable:$true] %s124_s28 }
  0x3f   :  { %s6363_s0 = scalar_lea.hbm %s6786_s17, 128 }
  0x40   :  { %p6364_p0 = scmp.ne.s32.totalorder %s6786_s17, %s6363_s0  ;;  %p6367_p1 = scmp.lt.u32.totalorder %s6363_s0, %s6786_s17 }
  0x42   :  { %p6369_p2 = pnand %p6367_p1, %p6364_p0 }
  0x44   :  { %6372 = shalt.err (!%p6369_p2)
}
  0x45   :  { %s6373_s25 = scalar_lea.vmem %s103_s23, 128  ;;  %p6378_p4 = scmp.lt.s32.totalorder %s103_s23, %s103_s23 }
  0x46   :  { %p6374_p3 = scmp.ne.s32.totalorder %s103_s23, %s6373_s25  ;;  %p6379_p5 = scmp.lt.s32.totalorder %s6373_s25, %s6373_s25 }
  0x48   :  { %p6380_p6 = por %p6379_p5, %p6378_p4 }
  0x4a   :  { %p6381_p7 = pnand %p6380_p6, %p6374_p3 }
  0x4c   :  { %6384 = shalt.err (!%p6381_p7)
}
  0x4d   :  { %105 = dma.hbm_to_vmem [thread:$0]  %s6786_s17, 128, %s103_s23, [#allocation12]  }
  0x4e   :  { %s6385_s1 = scalar_lea.hbm %s6801_s29, 16 }
  0x4f   :  { %p6386_p8 = scmp.ne.s32.totalorder %s6801_s29, %s6385_s1  ;;  %p6389_p9 = scmp.lt.u32.totalorder %s6385_s1, %s6801_s29 }
  0x51   :  { %p6391_p10 = pnand %p6389_p9, %p6386_p8 }
  0x53   :  { %6394 = shalt.err (!%p6391_p10)
}
  0x54   :  { %s6395_s2 = scalar_lea.vmem %s125_s28, 16  ;;  %s6399_s10 = scalar_lea.vmem %s125_s28, 32 }
  0x55   :  { %p6396_p11 = scmp.ne.s32.totalorder %s125_s28, %s6395_s2  ;;  %p6400_p12 = scmp.lt.s32.totalorder %s125_s28, %s125_s28 }
  0x56   :  { %p6401_p13 = scmp.lt.s32.totalorder %s6399_s10, %s6395_s2 }
  0x58   :  { %p6402_p0 = por %p6401_p13, %p6400_p12 }
  0x5a   :  { %p6403_p1 = pnand %p6402_p0, %p6396_p11 }
  0x5c   :  { %6406 = shalt.err (!%p6403_p1)
}
  0x5d   :  { %127 = dma.hbm_to_vmem [thread:$0]  %s6801_s29, 16, %s125_s28, [#allocation15]  }
  0x5e   :  { %s6744_s7 = smov [#allocation17]   ;;  %s6745_s11 = smov [#allocation20]  }
  0x5f   :  { %s153_s17 = sshll.u32 %s6744_s7, 4  ;;  %s177_s16 = sshll.u32 %s6745_s11, 4  ;;  %s154_s17 = int_to_ptr.vmem [resolvable:$true] %s153_s17  ;;  %s6934_s16 = int_to_ptr.vmem [resolvable:$true] %s177_s16 }
  0x60   :  { %s6407_s15 = scalar_lea.hbm %s6836_s6, 512 }
  0x61   :  { %p6408_p2 = scmp.ne.s32.totalorder %s6836_s6, %s6407_s15  ;;  %p6411_p3 = scmp.lt.u32.totalorder %s6407_s15, %s6836_s6 }
  0x63   :  { %p6413_p4 = pnand %p6411_p3, %p6408_p2 }
  0x65   :  { %6416 = shalt.err (!%p6413_p4)
}
  0x66   :  { %s6417_s18 = scalar_lea.vmem %s154_s17, 512  ;;  %p6422_p6 = scmp.lt.s32.totalorder %s154_s17, %s154_s17 }
  0x67   :  { %p6418_p5 = scmp.ne.s32.totalorder %s154_s17, %s6417_s18  ;;  %p6423_p7 = scmp.lt.s32.totalorder %s6417_s18, %s6417_s18 }
  0x69   :  { %p6424_p8 = por %p6423_p7, %p6422_p6 }
  0x6b   :  { %p6425_p9 = pnand %p6424_p8, %p6418_p5 }
  0x6d   :  { %6428 = shalt.err (!%p6425_p9)
}
  0x6e   :  { %s6746_s29 = smov 128   ;;  %s6747_s22 = smov 8  }
  0x6f   :  { %159 = dma.hbm_to_vmem [thread:$0]  %s6836_s6, 512, %s154_s17, [#allocation18], %s6746_s29, %s6746_s29, %s6747_s22  }
  0x70   :  { %s6429_s23 = scalar_lea.hbm %s6846_s20, 512 }
  0x71   :  { %p6430_p10 = scmp.ne.s32.totalorder %s6846_s20, %s6429_s23  ;;  %p6433_p11 = scmp.lt.u32.totalorder %s6429_s23, %s6846_s20 }
  0x73   :  { %p6435_p12 = pnand %p6433_p11, %p6430_p10 }
  0x75   :  { %6438 = shalt.err (!%p6435_p12)
}
  0x76   :  { %s6439_s26 = scalar_lea.vmem %s6934_s16, 512  ;;  %p6444_p0 = scmp.lt.s32.totalorder %s6934_s16, %s6934_s16 }
  0x77   :  { %p6440_p13 = scmp.ne.s32.totalorder %s6934_s16, %s6439_s26  ;;  %p6445_p1 = scmp.lt.s32.totalorder %s6439_s26, %s6439_s26 }
  0x79   :  { %p6446_p2 = por %p6445_p1, %p6444_p0 }
  0x7b   :  { %p6447_p3 = pnand %p6446_p2, %p6440_p13 }
  0x7d   :  { %6450 = shalt.err (!%p6447_p3)
}
  0x7e   :  { %183 = dma.hbm_to_vmem [thread:$0]  %s6846_s20, 512, %s6934_s16, [#allocation21], %s6746_s29, %s6746_s29, %s6747_s22  }
  0x7f   :  { %s6748_s6 = smov [#allocation23]   ;;  %s6749_s0 = smov [#allocation26]  }
  0x80   :  { %s202_s28 = sshll.u32 %s6748_s6, 4  ;;  %s222_s25 = sshll.u32 %s6749_s0, 4  ;;  %s203_s28 = int_to_ptr.vmem [resolvable:$true] %s202_s28  ;;  %s223_s25 = int_to_ptr.vmem [resolvable:$true] %s222_s25 }
  0x81   :  { %s6451_s1 = scalar_lea.hbm %s6861_s30, 16 }
  0x82   :  { %p6452_p4 = scmp.ne.s32.totalorder %s6861_s30, %s6451_s1  ;;  %p6455_p5 = scmp.lt.u32.totalorder %s6451_s1, %s6861_s30 }
  0x84   :  { %p6457_p6 = pnand %p6455_p5, %p6452_p4 }
  0x86   :  { %6460 = shalt.err (!%p6457_p6)
}
  0x87   :  { %s6461_s2 = scalar_lea.vmem %s203_s28, 16  ;;  %s6465_s10 = scalar_lea.vmem %s203_s28, 32 }
  0x88   :  { %p6462_p7 = scmp.ne.s32.totalorder %s203_s28, %s6461_s2  ;;  %p6466_p8 = scmp.lt.s32.totalorder %s203_s28, %s203_s28 }
  0x89   :  { %p6467_p9 = scmp.lt.s32.totalorder %s6465_s10, %s6461_s2 }
  0x8b   :  { %p6468_p10 = por %p6467_p9, %p6466_p8 }
  0x8d   :  { %p6469_p11 = pnand %p6468_p10, %p6462_p7 }
  0x8f   :  { %6472 = shalt.err (!%p6469_p11)
}
  0x90   :  { %205 = dma.hbm_to_vmem [thread:$0]  %s6861_s30, 16, %s203_s28, [#allocation24]  }
  0x91   :  { %s6473_s20 = scalar_lea.hbm %s6871_s27, 16 }
  0x92   :  { %p6474_p12 = scmp.ne.s32.totalorder %s6871_s27, %s6473_s20  ;;  %p6477_p13 = scmp.lt.u32.totalorder %s6473_s20, %s6871_s27 }
  0x94   :  { %p6479_p0 = pnand %p6477_p13, %p6474_p12 }
  0x96   :  { %6482 = shalt.err (!%p6479_p0)
}
  0x97   :  { %s6483_s7 = scalar_lea.vmem %s223_s25, 16  ;;  %s6487_s17 = scalar_lea.vmem %s223_s25, 32 }
  0x98   :  { %p6484_p1 = scmp.ne.s32.totalorder %s223_s25, %s6483_s7  ;;  %p6488_p2 = scmp.lt.s32.totalorder %s223_s25, %s223_s25 }
  0x99   :  { %p6489_p3 = scmp.lt.s32.totalorder %s6487_s17, %s6483_s7 }
  0x9b   :  { %p6490_p4 = por %p6489_p3, %p6488_p2 }
  0x9d   :  { %p6491_p5 = pnand %p6490_p4, %p6484_p1 }
  0x9f   :  { %6494 = shalt.err (!%p6491_p5)
}
  0xa0   :  { %225 = dma.hbm_to_vmem [thread:$0]  %s6871_s27, 16, %s223_s25, [#allocation27]  }
  0xa1   :  { %s6750_s11 = smov [#allocation8]   ;;  %s6751_s16 = smov [#allocation13]  }
  0xa2   :  { %s89_s30 = sshll.u32 %s6750_s11, 4  ;;  %s112_s15 = sshll.u32 %s6751_s16, 4  ;;  %s90_s30 = int_to_ptr.vmem [resolvable:$true] %s89_s30  ;;  %s113_s15 = int_to_ptr.vmem [resolvable:$true] %s112_s15 }
  0xa3   :  { %s6495_s18 = scalar_lea.hbm %s6781_s13, 256 }
  0xa4   :  { %p6496_p6 = scmp.ne.s32.totalorder %s6781_s13, %s6495_s18  ;;  %p6499_p7 = scmp.lt.u32.totalorder %s6495_s18, %s6781_s13 }
  0xa6   :  { %p6501_p8 = pnand %p6499_p7, %p6496_p6 }
  0xa8   :  { %6504 = shalt.err (!%p6501_p8)
}
  0xa9   :  { %s6505_s23 = scalar_lea.vmem %s90_s30, 256  ;;  %p6510_p10 = scmp.lt.s32.totalorder %s90_s30, %s90_s30 }
  0xaa   :  { %p6506_p9 = scmp.ne.s32.totalorder %s90_s30, %s6505_s23  ;;  %p6511_p11 = scmp.lt.s32.totalorder %s6505_s23, %s6505_s23 }
  0xac   :  { %p6512_p12 = por %p6511_p11, %p6510_p10 }
  0xae   :  { %p6513_p13 = pnand %p6512_p12, %p6506_p9 }
  0xb0   :  { %6516 = shalt.err (!%p6513_p13)
}
  0xb1   :  { %95 = dma.hbm_to_vmem [thread:$0]  %s6781_s13, 256, %s90_s30, [#allocation9], %s6746_s29, %s6746_s29, %s6747_s22  }
  0xb2   :  { %s6517_s27 = scalar_lea.hbm %s6791_s21, 16 }
  0xb3   :  { %p6518_p0 = scmp.ne.s32.totalorder %s6791_s21, %s6517_s27  ;;  %p6521_p1 = scmp.lt.u32.totalorder %s6517_s27, %s6791_s21 }
  0xb5   :  { %p6523_p2 = pnand %p6521_p1, %p6518_p0 }
  0xb7   :  { %6526 = shalt.err (!%p6523_p2)
}
  0xb8   :  { %s6527_s26 = scalar_lea.vmem %s113_s15, 16  ;;  %s6531_s6 = scalar_lea.vmem %s113_s15, 32 }
  0xb9   :  { %p6528_p3 = scmp.ne.s32.totalorder %s113_s15, %s6527_s26  ;;  %p6532_p4 = scmp.lt.s32.totalorder %s113_s15, %s113_s15 }
  0xba   :  { %p6533_p5 = scmp.lt.s32.totalorder %s6531_s6, %s6527_s26 }
  0xbc   :  { %p6534_p6 = por %p6533_p5, %p6532_p4 }
  0xbe   :  { %p6535_p7 = pnand %p6534_p6, %p6528_p3 }
  0xc0   :  { %6538 = shalt.err (!%p6535_p7)
}
  0xc1   :  { %115 = dma.hbm_to_vmem [thread:$0]  %s6791_s21, 16, %s113_s15, [#allocation12]  }
  0xc2   :  { %s6752_s28 = smov [#allocation16]   ;;  %s6753_s0 = smov [#allocation19]  }
  0xc3   :  { %s136_s13 = sshll.u32 %s6752_s28, 4  ;;  %s165_s25 = sshll.u32 %s6753_s0, 4  ;;  %s137_s13 = int_to_ptr.vmem [resolvable:$true] %s136_s13  ;;  %s6974_s25 = int_to_ptr.vmem [resolvable:$true] %s165_s25 }
  0xc4   :  { %s6539_s1 = scalar_lea.hbm %s6811_s8, 16 }
  0xc5   :  { %p6540_p8 = scmp.ne.s32.totalorder %s6811_s8, %s6539_s1  ;;  %p6543_p9 = scmp.lt.u32.totalorder %s6539_s1, %s6811_s8 }
  0xc7   :  { %p6545_p10 = pnand %p6543_p9, %p6540_p8 }
  0xc9   :  { %6548 = shalt.err (!%p6545_p10)
}
  0xca   :  { %s6549_s2 = scalar_lea.vmem %s137_s13, 16  ;;  %s6553_s10 = scalar_lea.vmem %s137_s13, 32 }
  0xcb   :  { %p6550_p11 = scmp.ne.s32.totalorder %s137_s13, %s6549_s2  ;;  %p6554_p12 = scmp.lt.s32.totalorder %s137_s13, %s137_s13 }
  0xcc   :  { %p6555_p13 = scmp.lt.s32.totalorder %s6553_s10, %s6549_s2 }
  0xce   :  { %p6556_p0 = por %p6555_p13, %p6554_p12 }
  0xd0   :  { %p6557_p1 = pnand %p6556_p0, %p6550_p11 }
  0xd2   :  { %6560 = shalt.err (!%p6557_p1)
}
  0xd3   :  { %139 = dma.hbm_to_vmem [thread:$0]  %s6811_s8, 16, %s137_s13, [#allocation15]  }
  0xd4   :  { %s6561_s21 = scalar_lea.hbm %s6841_s12, 512 }
  0xd5   :  { %p6562_p2 = scmp.ne.s32.totalorder %s6841_s12, %s6561_s21  ;;  %p6565_p3 = scmp.lt.u32.totalorder %s6561_s21, %s6841_s12 }
  0xd7   :  { %p6567_p4 = pnand %p6565_p3, %p6562_p2 }
  0xd9   :  { %6570 = shalt.err (!%p6567_p4)
}
  0xda   :  { %s6571_s20 = scalar_lea.vmem %s6974_s25, 512  ;;  %p6576_p6 = scmp.lt.s32.totalorder %s6974_s25, %s6974_s25 }
  0xdb   :  { %p6572_p5 = scmp.ne.s32.totalorder %s6974_s25, %s6571_s20  ;;  %p6577_p7 = scmp.lt.s32.totalorder %s6571_s20, %s6571_s20 }
  0xdd   :  { %p6578_p8 = por %p6577_p7, %p6576_p6 }
  0xdf   :  { %p6579_p9 = pnand %p6578_p8, %p6572_p5 }
  0xe1   :  { %6582 = shalt.err (!%p6579_p9)
}
  0xe2   :  { %171 = dma.hbm_to_vmem [thread:$0]  %s6841_s12, 512, %s6974_s25, [#allocation18], %s6746_s29, %s6746_s29, %s6747_s22  }
  0xe3   :  { %s6754_s8 = smov [#allocation22]   ;;  %s6755_s17 = smov [#allocation25]  }
  0xe4   :  { %s192_s7 = sshll.u32 %s6754_s8, 4  ;;  %s212_s11 = sshll.u32 %s6755_s17, 4  ;;  %s193_s7 = int_to_ptr.vmem [resolvable:$true] %s192_s7  ;;  %s213_s11 = int_to_ptr.vmem [resolvable:$true] %s212_s11 }
  0xe5   :  { %s6583_s30 = scalar_lea.hbm %s6856_s4, 16 }
  0xe6   :  { %p6584_p10 = scmp.ne.s32.totalorder %s6856_s4, %s6583_s30  ;;  %p6587_p11 = scmp.lt.u32.totalorder %s6583_s30, %s6856_s4 }
  0xe8   :  { %p6589_p12 = pnand %p6587_p11, %p6584_p10 }
  0xea   :  { %6592 = shalt.err (!%p6589_p12)
}
  0xeb   :  { %s6593_s16 = scalar_lea.vmem %s193_s7, 16  ;;  %s6597_s15 = scalar_lea.vmem %s193_s7, 32 }
  0xec   :  { %p6594_p13 = scmp.ne.s32.totalorder %s193_s7, %s6593_s16  ;;  %p6598_p0 = scmp.lt.s32.totalorder %s193_s7, %s193_s7 }
  0xed   :  { %p6599_p1 = scmp.lt.s32.totalorder %s6597_s15, %s6593_s16 }
  0xef   :  { %p6600_p2 = por %p6599_p1, %p6598_p0 }
  0xf1   :  { %p6601_p3 = pnand %p6600_p2, %p6594_p13 }
  0xf3   :  { %6604 = shalt.err (!%p6601_p3)
}
  0xf4   :  { %195 = dma.hbm_to_vmem [thread:$0]  %s6856_s4, 16, %s193_s7, [#allocation21]  }
  0xf5   :  { %s6605_s12 = scalar_lea.hbm %s6866_s24, 16 }
  0xf6   :  { %p6606_p4 = scmp.ne.s32.totalorder %s6866_s24, %s6605_s12  ;;  %p6609_p5 = scmp.lt.u32.totalorder %s6605_s12, %s6866_s24 }
  0xf8   :  { %p6611_p6 = pnand %p6609_p5, %p6606_p4 }
  0xfa   :  { %6614 = shalt.err (!%p6611_p6)
}
  0xfb   :  { %s6615_s18 = scalar_lea.vmem %s213_s11, 16  ;;  %s6619_s23 = scalar_lea.vmem %s213_s11, 32 }
  0xfc   :  { %p6616_p7 = scmp.ne.s32.totalorder %s213_s11, %s6615_s18  ;;  %p6620_p8 = scmp.lt.s32.totalorder %s213_s11, %s213_s11 }
  0xfd   :  { %p6621_p9 = scmp.lt.s32.totalorder %s6619_s23, %s6615_s18 }
  0xff   :  { %p6622_p10 = por %p6621_p9, %p6620_p8 }
 0x101   :  { %p6623_p11 = pnand %p6622_p10, %p6616_p7 }
 0x103   :  { %6626 = shalt.err (!%p6623_p11)
}
 0x104   :  { %215 = dma.hbm_to_vmem [thread:$0]  %s6866_s24, 16, %s213_s11, [#allocation24]  }
 0x105   :  { %s6756_s27 = smov [#allocation28]   ;;  %s6757_s26 = smov [#allocation29]  }
 0x106   :  { %s231_s4 = sshll.u32 %s6756_s27, 4  ;;  %s243_s6 = sshll.u32 %s6757_s26, 4  ;;  %s232_s4 = int_to_ptr.vmem [resolvable:$true] %s231_s4  ;;  %s7000_s6 = int_to_ptr.vmem [resolvable:$true] %s243_s6 }
 0x107   :  { %s6627_s28 = scalar_lea.hbm %s6876_s19, 512 }
 0x108   :  { %p6628_p12 = scmp.ne.s32.totalorder %s6876_s19, %s6627_s28  ;;  %p6631_p13 = scmp.lt.u32.totalorder %s6627_s28, %s6876_s19 }
 0x10a   :  { %p6633_p0 = pnand %p6631_p13, %p6628_p12 }
 0x10c   :  { %6636 = shalt.err (!%p6633_p0)
}
 0x10d   :  { %s6637_s13 = scalar_lea.vmem %s232_s4, 512  ;;  %p6642_p2 = scmp.lt.s32.totalorder %s232_s4, %s232_s4 }
 0x10e   :  { %p6638_p1 = scmp.ne.s32.totalorder %s232_s4, %s6637_s13  ;;  %p6643_p3 = scmp.lt.s32.totalorder %s6637_s13, %s6637_s13 }
 0x110   :  { %p6644_p4 = por %p6643_p3, %p6642_p2 }
 0x112   :  { %p6645_p5 = pnand %p6644_p4, %p6638_p1 }
 0x114   :  { %6648 = shalt.err (!%p6645_p5)
}
 0x115   :  { %237 = dma.hbm_to_vmem [thread:$0]  %s6876_s19, 512, %s232_s4, [#allocation27], %s6746_s29, %s6746_s29, %s6747_s22  }
 0x116   :  { %s6649_s24 = scalar_lea.hbm %s6881_s14, 512 }
 0x117   :  { %p6650_p6 = scmp.ne.s32.totalorder %s6881_s14, %s6649_s24  ;;  %p6653_p7 = scmp.lt.u32.totalorder %s6649_s24, %s6881_s14 }
 0x119   :  { %p6655_p8 = pnand %p6653_p7, %p6650_p6 }
 0x11b   :  { %6658 = shalt.err (!%p6655_p8)
}
 0x11c   :  { %s6659_s0 = scalar_lea.vmem %s7000_s6, 512  ;;  %p6664_p10 = scmp.lt.s32.totalorder %s7000_s6, %s7000_s6 }
 0x11d   :  { %p6660_p9 = scmp.ne.s32.totalorder %s7000_s6, %s6659_s0  ;;  %p6665_p11 = scmp.lt.s32.totalorder %s6659_s0, %s6659_s0 }
 0x11f   :  { %p6666_p12 = por %p6665_p11, %p6664_p10 }
 0x121   :  { %p6667_p13 = pnand %p6666_p12, %p6660_p9 }
 0x123   :  { %6670 = shalt.err (!%p6667_p13)
}
 0x124   :  { %249 = dma.hbm_to_vmem [thread:$0]  %s6881_s14, 512, %s7000_s6, [#allocation30], %s6746_s29, %s6746_s29, %s6747_s22  }
 0x125   :  { %6693 = dma.done.wait [#allocation9], 256  }
 0x126   :  { %6694 = vsyncadd [#allocation9], 4294967040 }
 0x127   :  { %6695 = dma.done.wait [#allocation12], 144  }
 0x128   :  { %6696 = vsyncadd [#allocation12], 4294967152 }
 0x129   :  { %6697 = dma.done.wait [#allocation15], 32  }
 0x12a   :  { %6698 = vsyncadd [#allocation15], 4294967264 }
 0x12b   :  { %6699 = dma.done.wait [#allocation18], 1024  }
 0x12c   :  { %6700 = vsyncadd [#allocation18], 4294966272 }
 0x12d   :  { %6701 = dma.done.wait [#allocation21], 528  }
 0x12e   :  { %6702 = vsyncadd [#allocation21], 4294966768 }
 0x12f   :  { %6703 = dma.done.wait [#allocation24], 32  }
 0x130   :  { %6704 = vsyncadd [#allocation24], 4294967264 }
 0x131   :  { %6705 = dma.done.wait [#allocation27], 528  }
 0x132   :  { %6706 = vsyncadd [#allocation27], 4294966768 }
 0x133   :  { %6707 = dma.done.wait [#allocation30], 512  }
 0x134   :  { %6708 = vsyncadd [#allocation30], 4294966784  ;;  %s7615_s19 = sld [smem:[#allocation42_spill]]  ;;  %vm484_vm0 = vcmask 1042432   ;;  %vm350_vm1 = vcmask 1044480   ;;  %vm325_vm2 = vcmask 39936  }
 0x135   :  { %vm6758_vm3 = vmmov 1   ;;  %v324_v1 = vld [vmem:[#allocation11] sm:$0x1f]  ;;  %s7616_s14 = sld [smem:[#allocation43_spill]]  ;;  %v322_v4 = vld [vmem:[#allocation8] sm:$0xff]  ;;  %s7617_s25 = sld [smem:[#allocation41_spill]] }
 0x136   :  { %vm5890_vm4 = vmpackc.low %vm484_vm0, %vm6758_vm3  ;;  %5287 = vmatprep.subr.msk.mxu0 %vm350_vm1, %v324_v1  ;;  %v323_v5 = vld [vmem:[#allocation8 + $0x8] sm:$0x7]  ;;  %vm459_vm5 = vcmask 89088   ;;  %s7618_s1 = sld [smem:[#allocation44_spill]]  ;;  %v4825_v36 = vld [vmem:[#allocation13] ss:$0 sm:$0xff] }
 0x137   :  { %5288 = vmatpush3.msk.msra.mxu0 %vm350_vm1, %v324_v1  ;;  %v5889_v7 = vpack.c.bf16 %v323_v5, %v322_v4  ;;  %vm631_vm6 = vcmask 523264   ;;  %s7619_s2 = sld [smem:[#allocation45_spill]]  ;;  %v918_v0 = vld [vmem:[#allocation28] sm:$0xff]  ;;  %v919_v1 = vld [vmem:[#allocation28 + $0x8] sm:$0xff]  ;;  %v921_v4 = vld [vmem:[#allocation28 + $0x18] sm:$0xff]  ;;  %vm780_vm7 = vcmask 261120  }
 0x138   :  { %s7620_s10 = sld [smem:[#allocation46_spill]]  ;;  %s7621_s21 = sld [smem:[#allocation47_spill]]  ;;  %vm6760_vm8 = vmmov 0   ;;  %vm4463_vm9 = vcmask 130048   ;;  %vm4739_vm10 = vcmask 7168  }
 0x139   :  { %5891 = vmatprep.subr.msk.bf16.mxu0 %vm5890_vm4, %v5889_v7  ;;  %s7622_s20 = sld [smem:[#allocation48_spill]]  ;;  %s7623_s8 = sld [smem:[#allocation49_spill]] }
 0x13a   :  { %v314_v2 = vld [vmem:[%s7615_s19] sm:$0xff]  ;;  %v315_v3 = vld [vmem:[%s7615_s19 + $0x8] sm:$0xff]  ;;  %v316_v6 = vld [vmem:[%s7615_s19 + $0x10] sm:$0xff]  ;;  %s7624_s7 = sld [smem:[#allocation50_spill]]  ;;  %s7625_s17 = sld [smem:[#allocation51_spill]] }
 0x13b   :  { %5289 = vmatprep.mubr.msk.f32.mxu0 %vm325_vm2, %v314_v2  ;;  %v317_v8 = vld [vmem:[%s7615_s19 + $0x18] sm:$0xff]  ;;  %v318_v9 = vld [vmem:[%s7615_s19 + $0x20] sm:$0xff]  ;;  %v617_v11 = vld [vmem:[%s7616_s14 + $0x8] sm:$0xff]  ;;  %s7626_s11 = sld [smem:[#allocation53_spill]]  ;;  %s7627_s30 = sld [smem:[#allocation52_spill]] }
 0x13c   :  { %5290 = vmatmul.mubr.msk.f32.vlgmr.msra.gmra.mrb[0].mxu0 %vm325_vm2, %v315_v3  ;;  %v616_v10 = vld [vmem:[%s7616_s14] sm:$0xff]  ;;  %v618_v13 = vld [vmem:[%s7616_s14 + $0x10] sm:$0xff]  ;;  %v619_v14 = vld [vmem:[%s7616_s14 + $0x18] sm:$0xff]  ;;  %v5919_v3 = vpack.c.bf16 %v919_v1, %v918_v0  ;;  %s7628_s16 = sld [smem:[#allocation54_spill]] }
 0x13d   :  { %5292 = vmatprep.mubr.msk.f32.mxu0 %vm325_vm2, %v316_v6  ;;  %5894 = vmatpush3.bf16.msk.msra.mxu0 %vm5890_vm4, %v5889_v7  ;;  %v5895_v12 = vpack.c.bf16 %v617_v11, %v616_v10  ;;  %v319_v15 = vld [vmem:[%s7615_s19 + $0x28] sm:$0xff]  ;;  %v5899_v16 = vpack.c.bf16 %v619_v14, %v618_v13  ;;  %v620_v17 = vld [vmem:[%s7616_s14 + $0x20] sm:$0xff]  ;;  %v320_v19 = vld [vmem:[%s7615_s19 + $0x30] sm:$0xff] }
 0x13e   :  { %v621_v18 = vld [vmem:[%s7616_s14 + $0x28] sm:$0xff]  ;;  %v321_v21 = vld [vmem:[%s7615_s19 + $0x38] sm:$0xff]  ;;  %v306_v22 = vld [vmem:[%s7617_s25] sm:$0xff]  ;;  %5920 = vmatprep.subr.bf16.mxu0 %v5919_v3 }
 0x13f   :  { %5896 = vmatprep.subr.bf16.mxu1 %v5895_v12  ;;  %v5903_v20 = vpack.c.bf16 %v621_v18, %v620_v17  ;;  %v307_v23 = vld [vmem:[%s7617_s25 + $0x8] sm:$0xff]  ;;  %v308_v24 = vld [vmem:[%s7617_s25 + $0x10] sm:$0xff]  ;;  %v309_v25 = vld [vmem:[%s7617_s25 + $0x18] sm:$0xff] }
 0x140   :  { %5293 = vmatmul.mubr.msk.f32.gmra.mrb[2].mxu0 %vm325_vm2, %v317_v8  ;;  %5898 = vmatpush3.bf16.msra.mxu1 %v5895_v12  ;;  %v310_v26 = vld [vmem:[%s7617_s25 + $0x20] sm:$0xff]  ;;  %v311_v27 = vld [vmem:[%s7617_s25 + $0x28] sm:$0xff]  ;;  %v312_v28 = vld [vmem:[%s7617_s25 + $0x30] sm:$0xff] }
 0x141   :  { %5295 = vmatprep.mubr.msk.f32.mxu0 %vm325_vm2, %v318_v9  ;;  %5900 = vmatprep.subr.bf16.mxu1 %v5899_v16  ;;  %v313_v29 = vld [vmem:[%s7617_s25 + $0x38] sm:$0xff]  ;;  %v622_v30 = vld [vmem:[%s7616_s14 + $0x30] sm:$0xff]  ;;  %v769_v33 = vld [vmem:[%s7618_s1] sm:$0xff] }
 0x142   :  { %v623_v31 = vld [vmem:[%s7616_s14 + $0x38] sm:$0xff]  ;;  %v770_v34 = vld [vmem:[%s7618_s1 + $0x8] sm:$0xff]  ;;  %v771_v41 = vld [vmem:[%s7618_s1 + $0x10] sm:$0xff] }
 0x143   :  { %v5907_v32 = vpack.c.bf16 %v623_v31, %v622_v30  ;;  %v5911_v35 = vpack.c.bf16 %v770_v34, %v769_v33  ;;  %v772_v42 = vld [vmem:[%s7618_s1 + $0x18] sm:$0xff]  ;;  %v1066_v5 = vld [vmem:[%s7619_s2] sm:$0xff]  ;;  %v1067_v6 = vld [vmem:[%s7619_s2 + $0x8] sm:$0xff] }
 0x144   :  { %5296 = vmatmul.mubr.msk.f32.gmra.mrb[4].mxu0 %vm325_vm2, %v319_v15  ;;  %5902 = vmatpush3.bf16.msra.mxu1 %v5899_v16  ;;  %v5915_v48 = vpack.c.bf16 %v772_v42, %v771_v41  ;;  %v920_v2 = vld [vmem:[#allocation28 + $0x10] sm:$0xff]  ;;  %v5927_v8 = vpack.c.bf16 %v1067_v6, %v1066_v5  ;;  %v1315_v41 = vld [vmem:[%s7621_s21 + $0x8] sm:$0xff] }
 0x145   :  { %5298 = vmatprep.mubr.msk.f32.mxu0 %vm325_vm2, %v320_v19  ;;  %5904 = vmatprep.subr.bf16.mxu1 %v5903_v20  ;;  %v5923_v7 = vpack.c.bf16 %v921_v4, %v920_v2  ;;  %v4826_v9 = vld [vmem:[#allocation14] ss:$0 sm:$0xff]  ;;  %v1068_v34 = vld [vmem:[%s7619_s2 + $0x10] sm:$0xff] }
 0x148   :  { %5299 = vmatmul.mubr.msk.f32.gmra.mrb[6].mxu0 %vm325_vm2, %v321_v21  ;;  %5906 = vmatpush3.bf16.msra.mxu1 %v5903_v20 }
 0x149   :  { %5305 = vmatprep.mubr.msk.f32.mxu0 %vm459_vm5, %v306_v22  ;;  %5908 = vmatprep.subr.bf16.mxu1 %v5907_v32 }
 0x14c   :  { %5306 = vmatmul.mubr.msk.f32.vlgmr.msra.gmra.mrb[0].mxu0 %vm459_vm5, %v307_v23  ;;  %5910 = vmatpush3.bf16.msra.mxu1 %v5907_v32 }
 0x14d   :  { %5308 = vmatprep.mubr.msk.f32.mxu0 %vm459_vm5, %v308_v24  ;;  %5912 = vmatprep.subr.bf16.mxu1 %v5911_v35 }
 0x14e   :  { %5922 = vmatpush3.bf16.msra.mxu0 %v5919_v3 }
 0x14f   :  { %5924 = vmatprep.subr.bf16.mxu0 %v5923_v7 }
 0x150   :  { %5309 = vmatmul.mubr.msk.f32.gmra.mrb[2].mxu0 %vm459_vm5, %v309_v25 }
 0x151   :  { %5311 = vmatprep.mubr.msk.f32.mxu0 %vm459_vm5, %v310_v26 }
 0x152   :  { %5926 = vmatpush3.bf16.msra.mxu0 %v5923_v7 }
 0x154   :  { %5312 = vmatmul.mubr.msk.f32.gmra.mrb[4].mxu0 %vm459_vm5, %v311_v27 }
 0x155   :  { %5314 = vmatprep.mubr.msk.f32.mxu0 %vm459_vm5, %v312_v28 }
 0x158   :  { %5315 = vmatmul.mubr.msk.f32.gmra.mrb[6].mxu0 %vm459_vm5, %v313_v29 }
 0x21f   :  { %v5307_v37 = vpop.f32.mrb[0].mxu0 }
 0x220   :  { %v601_v38 = vadd.f32 %v5307_v37, %v4825_v36  ;;  %v554_v39 = vpop.f32.mrb[1].mxu0  ;;  %v1190_v37 = vld [vmem:[%s7620_s10] sm:$0xff] }
 0x221   :  { %v600_v40 = vadd.f32 %v4825_v36, %v554_v39 }
 0x222   :  { %v609_v45 = vmax.f32 %v601_v38, 0.0  ;;  %v1191_v38 = vld [vmem:[%s7620_s10 + $0x8] sm:$0xff] }
 0x223   :  { %v608_v43 = vmax.f32 %v600_v40, 0.0  ;;  %v5310_v44 = vpop.f32.mrb[2].mxu0  ;;  %v5935_v39 = vpack.c.bf16 %v1191_v38, %v1190_v37  ;;  %v1314_v40 = vld [vmem:[%s7621_s21] sm:$0xff]  ;;  %v1575_v37 = vld [vmem:[%s7623_s8 + $0x8] sm:$0xff] }
 0x224   :  { %v603_v46 = vadd.f32 %v5310_v44, %v4825_v36  ;;  %v564_v47 = vpop.f32.mrb[3].mxu0  ;;  %v5943_v42 = vpack.c.bf16 %v1315_v41, %v1314_v40  ;;  %v1577_v40 = vld [vmem:[%s7623_s8 + $0x18] sm:$0xff] }
 0x225   :  { %v602_v49 = vadd.f32 %v4825_v36, %v564_v47  ;;  %5333 = vmatprep.mubr.msk.f32.mxu1 %vm631_vm6, %v608_v43  ;;  %5936 = vmatprep.subr.bf16.mxu0 %v5935_v39  ;;  %v4835_v43 = vld [vmem:[#allocation16] ss:$0 sm:$0xff]  ;;  %v1192_v47 = vld [vmem:[%s7620_s10 + $0x10] sm:$0xff] }
 0x226   :  { %5334 = vmatmul.mubr.msk.f32.vlgmr.msra.gmra.mrb[0].mxu1 %vm631_vm6, %v609_v45  ;;  %v611_v52 = vmax.f32 %v603_v46, 0.0 }
 0x227   :  { %v610_v50 = vmax.f32 %v602_v49, 0.0  ;;  %v5313_v51 = vpop.f32.mrb[4].mxu0  ;;  %5914 = vmatpush3.bf16.msra.mxu1 %v5911_v35  ;;  %v1069_v35 = vld [vmem:[%s7619_s2 + $0x18] sm:$0xff] }
 0x228   :  { %v605_v53 = vadd.f32 %v5313_v51, %v4825_v36  ;;  %v574_v54 = vpop.f32.mrb[5].mxu0  ;;  %5916 = vmatprep.subr.bf16.mxu1 %v5915_v48  ;;  %v1193_v49 = vld [vmem:[%s7620_s10 + $0x18] sm:$0xff] }
 0x229   :  { %v604_v55 = vadd.f32 %v4825_v36, %v574_v54  ;;  %5336 = vmatprep.mubr.msk.f32.mxu1 %vm631_vm6, %v610_v50  ;;  %v1316_v50 = vld [vmem:[%s7621_s21 + $0x10] sm:$0xff]  ;;  %v1317_v51 = vld [vmem:[%s7621_s21 + $0x18] sm:$0xff] }
 0x22a   :  { %5337 = vmatmul.mubr.msk.f32.gmra.mrb[2].mxu1 %vm631_vm6, %v611_v52  ;;  %v613_v58 = vmax.f32 %v605_v53, 0.0 }
 0x22b   :  { %v612_v56 = vmax.f32 %v604_v55, 0.0  ;;  %v5316_v57 = vpop.f32.mrb[6].mxu0  ;;  %5918 = vmatpush3.bf16.msra.mxu1 %v5915_v48 }
 0x22c   :  { %v607_v59 = vadd.f32 %v5316_v57, %v4825_v36  ;;  %v584_v60 = vpop.f32.mrb[7].mxu0  ;;  %5928 = vmatprep.subr.bf16.mxu1 %v5927_v8  ;;  %v5939_v57 = vpack.c.bf16 %v1193_v49, %v1192_v47 }
 0x22d   :  { %v606_v61 = vadd.f32 %v4825_v36, %v584_v60  ;;  %5339 = vmatprep.mubr.msk.f32.mxu1 %vm631_vm6, %v612_v56  ;;  %v5931_v36 = vpack.c.bf16 %v1069_v35, %v1068_v34  ;;  %v1438_v60 = vld [vmem:[%s7622_s20] sm:$0xff] }
 0x22e   :  { %5340 = vmatmul.mubr.msk.f32.gmra.mrb[4].mxu1 %vm631_vm6, %v613_v58  ;;  %v615_v63 = vmax.f32 %v607_v59, 0.0  ;;  %v5947_v58 = vpack.c.bf16 %v1317_v51, %v1316_v50 }
 0x22f   :  { %v614_v62 = vmax.f32 %v606_v61, 0.0  ;;  %v1439_v61 = vld [vmem:[%s7622_s20 + $0x8] sm:$0xff] }
 0x230   :  { %v5951_v3 = vpack.c.bf16 %v1439_v61, %v1438_v60 }
 0x231   :  { %5342 = vmatprep.mubr.msk.f32.mxu1 %vm631_vm6, %v614_v62 }
 0x232   :  { %5343 = vmatmul.mubr.msk.f32.gmra.mrb[6].mxu1 %vm631_vm6, %v615_v63 }
 0x2f9   :  { %v5335_v10 = vpop.f32.mrb[0].mxu1 }
 0x2fa   :  { %v728_v11 = vadd.f32 %v5335_v10, %v4826_v9  ;;  %v722_v12 = vpop.f32.mrb[1].mxu1  ;;  %v6759_v10 = vmov 0.0|0.0  }
 0x2fb   :  { %v723_v13 = vadd.f32 %v4826_v9, %v722_v12 }
 0x2fc   :  { %v762_v16 = vmax.f32 %v728_v11, 0.0 }
 0x2fd   :  { %v761_v14 = vmax.f32 %v723_v13, 0.0  ;;  %v5338_v15 = vpop.f32.mrb[2].mxu1 }
 0x2fe   :  { %v738_v17 = vadd.f32 %v5338_v15, %v4826_v9  ;;  %v732_v18 = vpop.f32.mrb[3].mxu1  ;;  %v1563_v15 = vld [vmem:[#allocation17 + $0x8] sm:$0xff] }
 0x2ff   :  { %v733_v19 = vadd.f32 %v4826_v9, %v732_v18  ;;  %5353 = vmatprep.mubr.msk.f32.mxu1 %vm780_vm7, %v761_v14  ;;  %v1562_v14 = vld [vmem:[#allocation17] sm:$0xff] }
 0x300   :  { %5354 = vmatmul.mubr.msk.f32.vlgmr.msra.gmra.mrb[8].mxu1 %vm780_vm7, %v762_v16  ;;  %v764_v22 = vmax.f32 %v738_v17, 0.0  ;;  %v1440_v16 = vld [vmem:[%s7622_s20 + $0x10] sm:$0xff]  ;;  %v1441_v17 = vld [vmem:[%s7622_s20 + $0x18] sm:$0xff]  ;;  %v7150_v18 = vpack.c.bf16 %v1563_v15, %v1562_v14  ;;  %v4871_v14 = vld [vmem:[#allocation25] ss:$0 sm:$0xff] }
 0x301   :  { %v763_v20 = vmax.f32 %v733_v19, 0.0  ;;  %v5341_v21 = vpop.f32.mrb[4].mxu1  ;;  %5930 = vmatpush3.bf16.msra.mxu1 %v5927_v8  ;;  %v5955_v19 = vpack.c.bf16 %v1441_v17, %v1440_v16 }
 0x302   :  { %v748_v23 = vadd.f32 %v5341_v21, %v4826_v9  ;;  %v742_v24 = vpop.f32.mrb[5].mxu1  ;;  %5932 = vmatprep.subr.bf16.mxu1 %v5931_v36  ;;  %v1565_v21 = vld [vmem:[#allocation17 + $0x18] sm:$0xff] }
 0x303   :  { %v743_v25 = vadd.f32 %v4826_v9, %v742_v24  ;;  %5356 = vmatprep.mubr.msk.f32.mxu1 %vm780_vm7, %v763_v20  ;;  %v1564_v20 = vld [vmem:[#allocation17 + $0x10] sm:$0xff]  ;;  %v1571_v24 = vld [vmem:[#allocation20 + $0x8] sm:$0xff] }
 0x304   :  { %5357 = vmatmul.mubr.msk.f32.gmra.mrb[10].mxu1 %vm780_vm7, %v764_v22  ;;  %v766_v28 = vmax.f32 %v748_v23, 0.0  ;;  %v7161_v22 = vpack.c.bf16 %v1565_v21, %v1564_v20  ;;  %v1570_v23 = vld [vmem:[#allocation20] sm:$0xff] }
 0x305   :  { %v765_v26 = vmax.f32 %v743_v25, 0.0  ;;  %v5344_v27 = vpop.f32.mrb[6].mxu1  ;;  %5934 = vmatpush3.bf16.msra.mxu1 %v5931_v36  ;;  %v1566_v25 = vld [vmem:[#allocation19] sm:$0xff] }
 0x306   :  { %v758_v29 = vadd.f32 %v5344_v27, %v4826_v9  ;;  %v752_v30 = vpop.f32.mrb[7].mxu1  ;;  %5944 = vmatprep.subr.bf16.mxu1 %v5943_v42  ;;  %v6761_v27 = vmov 0.0   ;;  %v1574_v36 = vld [vmem:[%s7623_s8] sm:$0xff] }
 0x307   :  { %v753_v31 = vadd.f32 %v4826_v9, %v752_v30  ;;  %5359 = vmatprep.mubr.msk.f32.mxu1 %vm780_vm7, %v765_v26  ;;  %v1567_v26 = vld [vmem:[#allocation19 + $0x8] sm:$0xff]  ;;  %v1572_v30 = vld [vmem:[#allocation20 + $0x10] sm:$0xff]  ;;  %v7233_v38 = vpack.c.bf16 %v1575_v37, %v1574_v36 }
 0x308   :  { %5360 = vmatmul.mubr.msk.f32.gmra.mrb[12].mxu1 %vm780_vm7, %v766_v28  ;;  %v768_v33 = vmax.f32 %v758_v29, 0.0  ;;  %v7191_v28 = vpack.c.bf16 %v1571_v24, %v1570_v23  ;;  %v7193_v29 = vpack.c.bf16 %v1567_v26, %v1566_v25 }
 0x309   :  { %v767_v32 = vmax.f32 %v753_v31, 0.0  ;;  %v1573_v31 = vld [vmem:[#allocation20 + $0x18] sm:$0xff] }
 0x30a   :  { %v7201_v34 = vpack.c.bf16 %v1573_v31, %v1572_v30 }
 0x30b   :  { %5362 = vmatprep.mubr.msk.f32.mxu1 %vm780_vm7, %v767_v32  ;;  %v1568_v32 = vld [vmem:[#allocation19 + $0x10] sm:$0xff] }
 0x30c   :  { %5363 = vmatmul.mubr.msk.f32.gmra.mrb[14].mxu1 %vm780_vm7, %v768_v33  ;;  %v1569_v33 = vld [vmem:[#allocation19 + $0x18] sm:$0xff] }
 0x30d   :  { %v7205_v35 = vpack.c.bf16 %v1569_v33, %v1568_v32 }
 0x3d3   :  { %v5355_v44 = vpop.f32.mrb[8].mxu1 }
 0x3d4   :  { %v877_v45 = vadd.f32 %v5355_v44, %v4835_v43  ;;  %v871_v46 = vpop.f32.mrb[9].mxu1 }
 0x3d5   :  { %v872_v48 = vadd.f32 %v4835_v43, %v871_v46 }
 0x3d6   :  { %v7095_v54 = vmax.f32 %v877_v45, 0.0 }
 0x3d7   :  { %v7093_v52 = vmax.f32 %v872_v48, 0.0  ;;  %v5358_v53 = vpop.f32.mrb[10].mxu1 }
 0x3d8   :  { %v887_v55 = vadd.f32 %v5358_v53, %v4835_v43  ;;  %v881_v56 = vpop.f32.mrb[11].mxu1 }
 0x3d9   :  { %v882_v59 = vadd.f32 %v4835_v43, %v881_v56  ;;  %5373 = vmatprep.mubr.msk.f32.mxu0 %vm780_vm7, %v7093_v52  ;;  %5393 = vmatprep.mubr.msk.f32.mxu1 %vm780_vm7, %v7093_v52 }
 0x3da   :  { %5374 = vmatmul.mubr.msk.f32.vlgmr.msra.gmra.mrb[8].mxu0 %vm780_vm7, %v7095_v54  ;;  %5394 = vmatmul.mubr.msk.f32.vlgmr.msra.gmra.mrb[16].mxu1 %vm780_vm7, %v7095_v54  ;;  %v7109_v0 = vmax.f32 %v887_v55, 0.0 }
 0x3db   :  { %v7107_v62 = vmax.f32 %v882_v59, 0.0  ;;  %v5361_v63 = vpop.f32.mrb[12].mxu1  ;;  %5938 = vmatpush3.bf16.msra.mxu0 %v5935_v39  ;;  %5946 = vmatpush3.bf16.msra.mxu1 %v5943_v42  ;;  %v1576_v39 = vld [vmem:[%s7623_s8 + $0x10] sm:$0xff]  ;;  %v4844_v42 = vld [vmem:[%s7624_s7] ss:$0 sm:$0xff] }
 0x3dc   :  { %v897_v1 = vadd.f32 %v5361_v63, %v4835_v43  ;;  %v891_v2 = vpop.f32.mrb[13].mxu1  ;;  %5940 = vmatprep.subr.bf16.mxu0 %v5939_v57  ;;  %5948 = vmatprep.subr.bf16.mxu1 %v5947_v58  ;;  %v7241_v41 = vpack.c.bf16 %v1577_v40, %v1576_v39 }
 0x3dd   :  { %v892_v4 = vadd.f32 %v4835_v43, %v891_v2  ;;  %5376 = vmatprep.mubr.msk.f32.mxu0 %vm780_vm7, %v7107_v62  ;;  %5396 = vmatprep.mubr.msk.f32.mxu1 %vm780_vm7, %v7107_v62 }
 0x3de   :  { %5377 = vmatmul.mubr.msk.f32.gmra.mrb[10].mxu0 %vm780_vm7, %v7109_v0  ;;  %5397 = vmatmul.mubr.msk.f32.gmra.mrb[18].mxu1 %vm780_vm7, %v7109_v0  ;;  %v7121_v7 = vmax.f32 %v897_v1, 0.0 }
 0x3df   :  { %v7119_v5 = vmax.f32 %v892_v4, 0.0  ;;  %v5364_v6 = vpop.f32.mrb[14].mxu1  ;;  %5942 = vmatpush3.bf16.msra.mxu0 %v5939_v57  ;;  %5950 = vmatpush3.bf16.msra.mxu1 %v5947_v58 }
 0x3e0   :  { %v907_v8 = vadd.f32 %v5364_v6, %v4835_v43  ;;  %v901_v9 = vpop.f32.mrb[15].mxu1  ;;  %5952 = vmatprep.subr.bf16.mxu0 %v5951_v3  ;;  %5959 = vmatprep.subr.bf16.mxu1 %v6759_v10 }
 0x3e1   :  { %v902_v11 = vadd.f32 %v4835_v43, %v901_v9  ;;  %5379 = vmatprep.mubr.msk.f32.mxu0 %vm780_vm7, %v7119_v5  ;;  %5399 = vmatprep.mubr.msk.f32.mxu1 %vm780_vm7, %v7119_v5  ;;  %v4853_v43 = vld [vmem:[#allocation22] ss:$0 sm:$0xff] }
 0x3e2   :  { %5380 = vmatmul.mubr.msk.f32.gmra.mrb[12].mxu0 %vm780_vm7, %v7121_v7  ;;  %5400 = vmatmul.mubr.msk.f32.gmra.mrb[20].mxu1 %vm780_vm7, %v7121_v7  ;;  %v7134_v13 = vmax.f32 %v907_v8, 0.0 }
 0x3e3   :  { %v7132_v12 = vmax.f32 %v902_v11, 0.0 }
 0x3e5   :  { %5382 = vmatprep.mubr.msk.f32.mxu0 %vm780_vm7, %v7132_v12  ;;  %5402 = vmatprep.mubr.msk.f32.mxu1 %vm780_vm7, %v7132_v12 }
 0x3e6   :  { %5383 = vmatmul.mubr.msk.f32.gmra.mrb[14].mxu0 %vm780_vm7, %v7134_v13  ;;  %5403 = vmatmul.mubr.msk.f32.gmra.mrb[22].mxu1 %vm780_vm7, %v7134_v13 }
 0x3e7   :  { %5413 = vmatprep.mubr.msk.f32.mxu0 %vm780_vm7, %v7093_v52  ;;  %5433 = vmatprep.mubr.msk.f32.mxu1 %vm780_vm7, %v7093_v52 }
 0x3ea   :  { %5414 = vmatmul.mubr.msk.f32.vlgmr.msra.gmra.mrb[16].mxu0 %vm780_vm7, %v7095_v54  ;;  %5434 = vmatmul.mubr.msk.f32.vlgmr.msra.gmra.mrb[24].mxu1 %vm780_vm7, %v7095_v54 }
 0x3eb   :  { %5416 = vmatprep.mubr.msk.f32.mxu0 %vm780_vm7, %v7107_v62  ;;  %5436 = vmatprep.mubr.msk.f32.mxu1 %vm780_vm7, %v7107_v62 }
 0x3ec   :  { %5954 = vmatpush3.bf16.msra.mxu0 %v5951_v3  ;;  %5961 = vmatpush3.bf16.msra.mxu1 %v7150_v18 }
 0x3ed   :  { %5956 = vmatprep.subr.bf16.mxu0 %v5955_v19  ;;  %5962 = vmatprep.subr.bf16.mxu1 %v6759_v10 }
 0x3ee   :  { %5417 = vmatmul.mubr.msk.f32.gmra.mrb[18].mxu0 %vm780_vm7, %v7109_v0  ;;  %5437 = vmatmul.mubr.msk.f32.gmra.mrb[26].mxu1 %vm780_vm7, %v7109_v0 }
 0x3ef   :  { %5419 = vmatprep.mubr.msk.f32.mxu0 %vm780_vm7, %v7119_v5  ;;  %5439 = vmatprep.mubr.msk.f32.mxu1 %vm780_vm7, %v7119_v5 }
 0x3f0   :  { %5958 = vmatpush3.bf16.msra.mxu0 %v5955_v19  ;;  %5964 = vmatpush3.bf16.msra.mxu1 %v7161_v22 }
 0x3f1   :  { %5971 = vmatprep.subr.bf16.mxu1 %v6759_v10  ;;  %5965 = vmatprep.subr.bf16.mxu0 %v6759_v10 }
 0x3f2   :  { %5420 = vmatmul.mubr.msk.f32.gmra.mrb[20].mxu0 %vm780_vm7, %v7121_v7  ;;  %5440 = vmatmul.mubr.msk.f32.gmra.mrb[28].mxu1 %vm780_vm7, %v7121_v7 }
 0x3f3   :  { %5422 = vmatprep.mubr.msk.f32.mxu0 %vm780_vm7, %v7132_v12  ;;  %5442 = vmatprep.mubr.msk.f32.mxu1 %vm780_vm7, %v7132_v12 }
 0x3f6   :  { %5423 = vmatmul.mubr.msk.f32.gmra.mrb[22].mxu0 %vm780_vm7, %v7134_v13  ;;  %5443 = vmatmul.mubr.msk.f32.gmra.mrb[30].mxu1 %vm780_vm7, %v7134_v13 }
 0x3f7   :  { %5453 = vmatprep.mubr.msk.f32.mxu0 %vm780_vm7, %v7093_v52  ;;  %5473 = vmatprep.mubr.msk.f32.mxu1 %vm6760_vm8, %v6761_v27 }
 0x3fa   :  { %5454 = vmatmul.mubr.msk.f32.vlgmr.msra.gmra.mrb[24].mxu0 %vm780_vm7, %v7095_v54  ;;  %5474 = vmatmul.mubr.f32.vlgmr.msra.gmra.mrb[32].mxu1 %v6761_v27 }
 0x3fb   :  { %5973 = vmatpush3.bf16.msra.mxu1 %v7191_v28  ;;  %5456 = vmatprep.mubr.msk.f32.mxu0 %vm780_vm7, %v7107_v62 }
 0x3fc   :  { %5967 = vmatpush3.bf16.msra.mxu0 %v7193_v29  ;;  %5974 = vmatprep.subr.bf16.mxu1 %v6759_v10 }
 0x3fd   :  { %5495 = vmatprep.mubr.msk.f32.mxu1 %vm6760_vm8, %v6761_v27  ;;  %5968 = vmatprep.subr.bf16.mxu0 %v6759_v10 }
 0x3fe   :  { %5457 = vmatmul.mubr.msk.f32.gmra.mrb[26].mxu0 %vm780_vm7, %v7109_v0 }
 0x3ff   :  { %5976 = vmatpush3.bf16.msra.mxu1 %v7201_v34  ;;  %5459 = vmatprep.mubr.msk.f32.mxu0 %vm780_vm7, %v7119_v5 }
 0x400   :  { %5970 = vmatpush3.bf16.msra.mxu0 %v7205_v35  ;;  %5983 = vmatprep.subr.bf16.mxu1 %v6759_v10 }
 0x401   :  { %5977 = vmatprep.subr.bf16.mxu0 %v6759_v10 }
 0x402   :  { %5496 = vmatmul.mubr.f32.vlgmr.msra.gmra.mrb[34].mxu1 %v6761_v27  ;;  %5460 = vmatmul.mubr.msk.f32.gmra.mrb[28].mxu0 %vm780_vm7, %v7121_v7 }
 0x403   :  { %5462 = vmatprep.mubr.msk.f32.mxu0 %vm780_vm7, %v7132_v12  ;;  %5985 = vmatpush3.bf16.msra.mxu1 %v7150_v18 }
 0x404   :  { %5986 = vmatprep.subr.bf16.mxu1 %v6759_v10  ;;  %5517 = vmatprep.mubr.msk.f32.mxu1 %vm6760_vm8, %v6761_v27 }
 0x406   :  { %5463 = vmatmul.mubr.msk.f32.gmra.mrb[30].mxu0 %vm780_vm7, %v7134_v13  ;;  %v4862_v13 = vld [vmem:[#allocation23] ss:$0 sm:$0xff] }
 0x407   :  { %5484 = vmatprep.mubr.msk.f32.mxu0 %vm6760_vm8, %v6761_v27  ;;  %5988 = vmatpush3.bf16.msra.mxu1 %v7161_v22 }
 0x408   :  { %5995 = vmatprep.subr.bf16.mxu1 %v6759_v10 }
 0x40a   :  { %5485 = vmatmul.mubr.f32.vlgmr.msra.gmra.mrb[32].mxu0 %v6761_v27 }
 0x40b   :  { %5979 = vmatpush3.bf16.msra.mxu0 %v7233_v38  ;;  %5506 = vmatprep.mubr.msk.f32.mxu0 %vm6760_vm8, %v6761_v27 }
 0x40c   :  { %5980 = vmatprep.subr.bf16.mxu0 %v6759_v10 }
 0x40f   :  { %5982 = vmatpush3.bf16.msra.mxu0 %v7241_v41 }
 0x410   :  { %5989 = vmatprep.subr.bf16.mxu0 %v6759_v10 }
 0x412   :  { %5507 = vmatmul.mubr.f32.vlgmr.msra.gmra.mrb[34].mxu0 %v6761_v27 }
 0x413   :  { %5991 = vmatpush3.bf16.msra.mxu0 %v7193_v29  ;;  %5528 = vmatprep.mubr.msk.f32.mxu0 %vm6760_vm8, %v6761_v27 }
 0x414   :  { %5992 = vmatprep.subr.bf16.mxu0 %v6759_v10 }
 0x417   :  { %5994 = vmatpush3.bf16.msra.mxu0 %v7205_v35 }
 0x418   :  { %6001 = vmatprep.subr.bf16.mxu0 %v6759_v10 }
 0x4ad   :  { %v5375_v44 = vpop.f32.mrb[8].mxu0  ;;  %v5395_v45 = vpop.f32.mrb[16].mxu1 }
 0x4ae   :  { %v1025_v46 = vadd.f32 %v5375_v44, %v4844_v42  ;;  %v1149_v47 = vadd.f32 %v5395_v45, %v4853_v43  ;;  %v1019_v48 = vpop.f32.mrb[9].mxu0  ;;  %v1143_v49 = vpop.f32.mrb[17].mxu1 }
 0x4af   :  { %v1020_v50 = vadd.f32 %v4844_v42, %v1019_v48  ;;  %v1144_v51 = vadd.f32 %v4853_v43, %v1143_v49 }
 0x4b0   :  { %1059 = vst.msk [vmem:[#allocation2 + $0x8] sm:$0xff] %vm780_vm7, %v1025_v46  ;;  %1183 = vst.msk [vmem:[#allocation3 + $0x8] sm:$0xff] %vm780_vm7, %v1149_v47 }
 0x4b1   :  { %1058 = vst.msk [vmem:[#allocation2] sm:$0xff] %vm780_vm7, %v1020_v50  ;;  %1182 = vst.msk [vmem:[#allocation3] sm:$0xff] %vm780_vm7, %v1144_v51  ;;  %v5378_v52 = vpop.f32.mrb[10].mxu0  ;;  %v5398_v53 = vpop.f32.mrb[18].mxu1 }
 0x4b2   :  { %v1035_v54 = vadd.f32 %v5378_v52, %v4844_v42  ;;  %v1159_v55 = vadd.f32 %v5398_v53, %v4853_v43  ;;  %v1029_v56 = vpop.f32.mrb[11].mxu0  ;;  %v1153_v57 = vpop.f32.mrb[19].mxu1 }
 0x4b3   :  { %v1030_v58 = vadd.f32 %v4844_v42, %v1029_v56  ;;  %v1154_v59 = vadd.f32 %v4853_v43, %v1153_v57  ;;  %v4880_v56 = vld [vmem:[#allocation26] ss:$0 sm:$0xff] }
 0x4b4   :  { %1061 = vst.msk [vmem:[#allocation2 + $0x18] sm:$0xff] %vm780_vm7, %v1035_v54  ;;  %1185 = vst.msk [vmem:[#allocation3 + $0x18] sm:$0xff] %vm780_vm7, %v1159_v55 }
 0x4b5   :  { %1060 = vst.msk [vmem:[#allocation2 + $0x10] sm:$0xff] %vm780_vm7, %v1030_v58  ;;  %1184 = vst.msk [vmem:[#allocation3 + $0x10] sm:$0xff] %vm780_vm7, %v1154_v59  ;;  %v5381_v60 = vpop.f32.mrb[12].mxu0  ;;  %v5401_v61 = vpop.f32.mrb[20].mxu1 }
 0x4b6   :  { %v1045_v62 = vadd.f32 %v5381_v60, %v4844_v42  ;;  %v1169_v63 = vadd.f32 %v5401_v61, %v4853_v43  ;;  %v1039_v0 = vpop.f32.mrb[13].mxu0  ;;  %v1163_v1 = vpop.f32.mrb[21].mxu1 }
 0x4b7   :  { %v1040_v2 = vadd.f32 %v4844_v42, %v1039_v0  ;;  %v1164_v3 = vadd.f32 %v4853_v43, %v1163_v1 }
 0x4b8   :  { %1063 = vst.msk [vmem:[#allocation2 + $0x28] sm:$0xff] %vm780_vm7, %v1045_v62  ;;  %1187 = vst.msk [vmem:[#allocation3 + $0x28] sm:$0xff] %vm780_vm7, %v1169_v63  ;;  %v1861_v59 = vld [vmem:[#allocation3] sm:$0xff] }
 0x4b9   :  { %1062 = vst.msk [vmem:[#allocation2 + $0x20] sm:$0xff] %vm780_vm7, %v1040_v2  ;;  %1186 = vst.msk [vmem:[#allocation3 + $0x20] sm:$0xff] %vm780_vm7, %v1164_v3  ;;  %v5384_v4 = vpop.f32.mrb[14].mxu0  ;;  %v5404_v5 = vpop.f32.mrb[22].mxu1 }
 0x4ba   :  { %v1055_v6 = vadd.f32 %v5384_v4, %v4844_v42  ;;  %v1179_v7 = vadd.f32 %v5404_v5, %v4853_v43  ;;  %v1049_v8 = vpop.f32.mrb[15].mxu0  ;;  %v1173_v9 = vpop.f32.mrb[23].mxu1 }
 0x4bb   :  { %v1050_v11 = vadd.f32 %v4844_v42, %v1049_v8  ;;  %v1174_v12 = vadd.f32 %v4853_v43, %v1173_v9 }
 0x4bc   :  { %1065 = vst.msk [vmem:[#allocation2 + $0x38] sm:$0xff] %vm780_vm7, %v1055_v6  ;;  %1189 = vst.msk [vmem:[#allocation3 + $0x38] sm:$0xff] %vm780_vm7, %v1179_v7 }
 0x4bd   :  { %1064 = vst.msk [vmem:[#allocation2 + $0x30] sm:$0xff] %vm780_vm7, %v1050_v11  ;;  %1188 = vst.msk [vmem:[#allocation3 + $0x30] sm:$0xff] %vm780_vm7, %v1174_v12  ;;  %v5415_v15 = vpop.f32.mrb[16].mxu0  ;;  %v5435_v16 = vpop.f32.mrb[24].mxu1 }
 0x4be   :  { %v1273_v17 = vadd.f32 %v5415_v15, %v4862_v13  ;;  %v1397_v19 = vadd.f32 %v5435_v16, %v4871_v14  ;;  %v1267_v20 = vpop.f32.mrb[17].mxu0  ;;  %v1391_v21 = vpop.f32.mrb[25].mxu1 }
 0x4bf   :  { %v1268_v23 = vadd.f32 %v4862_v13, %v1267_v20  ;;  %v1392_v24 = vadd.f32 %v4871_v14, %v1391_v21 }
 0x4c0   :  { %1307 = vst.msk [vmem:[#allocation4 + $0x8] sm:$0xff] %vm780_vm7, %v1273_v17  ;;  %1431 = vst.msk [vmem:[#allocation5 + $0x8] sm:$0xff] %vm780_vm7, %v1397_v19 }
 0x4c1   :  { %1306 = vst.msk [vmem:[#allocation4] sm:$0xff] %vm780_vm7, %v1268_v23  ;;  %1430 = vst.msk [vmem:[#allocation5] sm:$0xff] %vm780_vm7, %v1392_v24  ;;  %v5418_v25 = vpop.f32.mrb[18].mxu0  ;;  %v5438_v26 = vpop.f32.mrb[26].mxu1 }
 0x4c2   :  { %v1283_v30 = vadd.f32 %v5418_v25, %v4862_v13  ;;  %v1407_v31 = vadd.f32 %v5438_v26, %v4871_v14  ;;  %v1277_v32 = vpop.f32.mrb[19].mxu0  ;;  %v1401_v33 = vpop.f32.mrb[27].mxu1 }
 0x4c3   :  { %v1278_v36 = vadd.f32 %v4862_v13, %v1277_v32  ;;  %v1402_v37 = vadd.f32 %v4871_v14, %v1401_v33 }
 0x4c4   :  { %1309 = vst.msk [vmem:[#allocation4 + $0x18] sm:$0xff] %vm780_vm7, %v1283_v30  ;;  %1433 = vst.msk [vmem:[#allocation5 + $0x18] sm:$0xff] %vm780_vm7, %v1407_v31 }
 0x4c5   :  { %1308 = vst.msk [vmem:[#allocation4 + $0x10] sm:$0xff] %vm780_vm7, %v1278_v36  ;;  %1432 = vst.msk [vmem:[#allocation5 + $0x10] sm:$0xff] %vm780_vm7, %v1402_v37  ;;  %v5421_v39 = vpop.f32.mrb[20].mxu0  ;;  %v5441_v40 = vpop.f32.mrb[28].mxu1 }
 0x4c6   :  { %v1293_v42 = vadd.f32 %v5421_v39, %v4862_v13  ;;  %v1417_v43 = vadd.f32 %v5441_v40, %v4871_v14  ;;  %v1287_v44 = vpop.f32.mrb[21].mxu0  ;;  %v1411_v45 = vpop.f32.mrb[29].mxu1 }
 0x4c7   :  { %v1288_v46 = vadd.f32 %v4862_v13, %v1287_v44  ;;  %v1412_v47 = vadd.f32 %v4871_v14, %v1411_v45 }
 0x4c8   :  { %1311 = vst.msk [vmem:[#allocation4 + $0x28] sm:$0xff] %vm780_vm7, %v1293_v42  ;;  %1435 = vst.msk [vmem:[#allocation5 + $0x28] sm:$0xff] %vm780_vm7, %v1417_v43  ;;  %v1869_v24 = vld [vmem:[#allocation4] sm:$0xff] }
 0x4c9   :  { %1310 = vst.msk [vmem:[#allocation4 + $0x20] sm:$0xff] %vm780_vm7, %v1288_v46  ;;  %1434 = vst.msk [vmem:[#allocation5 + $0x20] sm:$0xff] %vm780_vm7, %v1412_v47  ;;  %v5424_v48 = vpop.f32.mrb[22].mxu0  ;;  %v5444_v49 = vpop.f32.mrb[30].mxu1 }
 0x4ca   :  { %v1303_v50 = vadd.f32 %v5424_v48, %v4862_v13  ;;  %v1427_v51 = vadd.f32 %v5444_v49, %v4871_v14  ;;  %v1297_v52 = vpop.f32.mrb[23].mxu0  ;;  %v1421_v53 = vpop.f32.mrb[31].mxu1 }
 0x4cb   :  { %v1298_v54 = vadd.f32 %v4862_v13, %v1297_v52  ;;  %v1422_v55 = vadd.f32 %v4871_v14, %v1421_v53  ;;  %v1877_v13 = vld [vmem:[#allocation5] sm:$0xff] }
 0x4cc   :  { %1313 = vst.msk [vmem:[#allocation4 + $0x38] sm:$0xff] %vm780_vm7, %v1303_v50  ;;  %1437 = vst.msk [vmem:[#allocation5 + $0x38] sm:$0xff] %vm780_vm7, %v1427_v51 }
 0x4cd   :  { %1312 = vst.msk [vmem:[#allocation4 + $0x30] sm:$0xff] %vm780_vm7, %v1298_v54  ;;  %1436 = vst.msk [vmem:[#allocation5 + $0x30] sm:$0xff] %vm780_vm7, %v1422_v55  ;;  %v5455_v57 = vpop.f32.mrb[24].mxu0  ;;  %v1647_v58 = vpop.f32.mrb[32].mxu1  ;;  %v2178_v54 = vld [vmem:[#allocation3 + $0x8] sm:$0xff] }
 0x4ce   :  { %v1521_v60 = vadd.f32 %v5455_v57, %v4880_v56  ;;  %v1862_v61 = vadd.f32 %v1861_v59, %v1647_v58  ;;  %v1515_v62 = vpop.f32.mrb[25].mxu0  ;;  %v5475_v63 = vpop.f32.mrb[33].mxu1 }
 0x4cf   :  { %v1516_v0 = vadd.f32 %v4880_v56, %v1515_v62 }
 0x4d0   :  { %1555 = vst.msk [vmem:[#allocation6 + $0x8] sm:$0xff] %vm780_vm7, %v1521_v60  ;;  %v4889_v1 = vmul.f32 -1.442695, %v1862_v61 }
 0x4d1   :  { %1554 = vst.msk [vmem:[#allocation6] sm:$0xff] %vm780_vm7, %v1516_v0  ;;  %v5458_v2 = vpop.f32.mrb[26].mxu0 }
 0x4d2   :  { %6235 = vpow2.f32 %v4889_v1  ;;  %v1531_v3 = vadd.f32 %v5458_v2, %v4880_v56  ;;  %v1525_v4 = vpop.f32.mrb[27].mxu0 }
 0x4d3   :  { %v1526_v5 = vadd.f32 %v4880_v56, %v1525_v4 }
 0x4d4   :  { %1557 = vst.msk [vmem:[#allocation6 + $0x18] sm:$0xff] %vm780_vm7, %v1531_v3 }
 0x4d5   :  { %1556 = vst.msk [vmem:[#allocation6 + $0x10] sm:$0xff] %vm780_vm7, %v1526_v5  ;;  %v1787_v6 = vpop.f32.mrb[34].mxu1  ;;  %v5461_v7 = vpop.f32.mrb[28].mxu0  ;;  %v2196_v5 = vld [vmem:[#allocation5 + $0x8] sm:$0xff] }
 0x4d6   :  { %v1541_v8 = vadd.f32 %v5461_v7, %v4880_v56  ;;  %v1535_v9 = vpop.f32.mrb[29].mxu0  ;;  %v5497_v11 = vpop.f32.mrb[35].mxu1  ;;  %v1878_v15 = vadd.f32 %v1877_v13, %v1787_v6 }
 0x4d7   :  { %v1536_v12 = vadd.f32 %v4880_v56, %v1535_v9  ;;  %v2200_v1 = vld [vmem:[#allocation6 + $0x8] sm:$0xff] }
 0x4d8   :  { %1559 = vst.msk [vmem:[#allocation6 + $0x28] sm:$0xff] %vm780_vm7, %v1541_v8  ;;  %6237 = vtanh.f32 %v1878_v15  ;;  %v1880_v32 = vld [vmem:[#allocation6] sm:$0xff] }
 0x4d9   :  { %1558 = vst.msk [vmem:[#allocation6 + $0x20] sm:$0xff] %vm780_vm7, %v1536_v12  ;;  %v5464_v14 = vpop.f32.mrb[30].mxu0 }
 0x4da   :  { %v1551_v16 = vadd.f32 %v5464_v14, %v4880_v56  ;;  %v1545_v17 = vpop.f32.mrb[31].mxu0 }
 0x4db   :  { %v1546_v19 = vadd.f32 %v4880_v56, %v1545_v17  ;;  %v2187_v56 = vld [vmem:[#allocation4 + $0x8] sm:$0xff] }
 0x4dc   :  { %v6236_v20 = vpop.eup %6235  ;;  %1561 = vst.msk [vmem:[#allocation6 + $0x38] sm:$0xff] %vm780_vm7, %v1551_v16 }
 0x4dd   :  { %v1866_v21 = vadd.f32 1.0, %v6236_v20  ;;  %1560 = vst.msk [vmem:[#allocation6 + $0x30] sm:$0xff] %vm780_vm7, %v1546_v19  ;;  %v1717_v23 = vpop.f32.mrb[32].mxu0 }
 0x4de   :  { %v1870_v25 = vadd.f32 %v1869_v24, %v1717_v23  ;;  %v5486_v26 = vpop.f32.mrb[33].mxu0 }
 0x4df   :  { %6239 = vrcp.f32 %v1866_v21 }
 0x4e0   :  { %v4890_v30 = vmul.f32 -1.442695, %v1870_v25 }
 0x4e2   :  { %6241 = vpow2.f32 %v4890_v30  ;;  %v6238_v37 = vpop.eup %6237  ;;  %v2499_v30 = vld [vmem:[#allocation3 + $0x10] sm:$0xff] }
 0x4e5   :  { %v1857_v31 = vpop.f32.mrb[34].mxu0 }
 0x4e6   :  { %v1881_v33 = vadd.f32 %v1880_v32, %v1857_v31  ;;  %v5508_v36 = vpop.f32.mrb[35].mxu0  ;;  %v2508_v32 = vld [vmem:[#allocation4 + $0x10] sm:$0xff] }
 0x4e8   :  { %v4891_v39 = vmul.f32 -1.442695, %v1881_v33 }
 0x4e9   :  { %v6240_v40 = vpop.eup %6239 }
 0x4ea   :  { %v1889_v42 = vmul.f32 %v6240_v40, %v6238_v37  ;;  %6243 = vpow2.f32 %v4891_v39 }
 0x4ec   :  { %v6242_v43 = vpop.eup %6241 }
 0x4ed   :  { %v1874_v44 = vadd.f32 1.0, %v6242_v43 }
 0x4ef   :  { %6245 = vrcp.f32 %v1874_v44 }
 0x4f4   :  { %v6244_v45 = vpop.eup %6243 }
 0x4f5   :  { %v1885_v47 = vadd.f32 1.0, %v6244_v45  ;;  %v2521_v45 = vld [vmem:[#allocation6 + $0x10] sm:$0xff] }
 0x4f7   :  { %6247 = vrcp.f32 %v1885_v47 }
 0x4f9   :  { %v6246_v46 = vpop.eup %6245 }
 0x4fa   :  { %v1888_v48 = vmul.f32 0.0, %v6246_v46 }
 0x4fc   :  { %v7296_v49 = vadd.f32 %v1889_v42, %v1888_v48 }
 0x4fe   :  { %6249 = vtanh.f32 %v7296_v49 }
 0x501   :  { %v6248_v50 = vpop.eup %6247 }
 0x508   :  { %v6250_v51 = vpop.eup %6249 }
 0x509   :  { %v1892_v52 = vmul.f32 %v6250_v51, %v6248_v50 }
 0x50b   :  { %1893 = vst.msk [vmem:[#allocation31] sm:$0xff] %vm780_vm7, %v1892_v52  ;;  %5518 = vmatmul.mubr.msk.f32.vlgmr.msra.gmra.mrb[36].mxu1 %vm780_vm7, %v1892_v52  ;;  %5529 = vmatmul.mubr.msk.f32.vlgmr.msra.gmra.mrb[36].mxu0 %vm780_vm7, %v1892_v52 }
 0x50c   :  { %5997 = vmatpush3.bf16.msra.mxu1 %v7191_v28  ;;  %6003 = vmatpush3.bf16.msra.mxu0 %v7233_v38 }
 0x50d   :  { %5998 = vmatprep.subr.bf16.mxu1 %v6759_v10  ;;  %6004 = vmatprep.subr.bf16.mxu0 %v6759_v10 }
 0x50e   :  { %5539 = vmatprep.mubr.msk.f32.mxu1 %vm6760_vm8, %v6761_v27  ;;  %5550 = vmatprep.mubr.msk.f32.mxu0 %vm6760_vm8, %v6761_v27 }
 0x510   :  { %6000 = vmatpush3.bf16.msra.mxu1 %v7201_v34  ;;  %6006 = vmatpush3.bf16.msra.mxu0 %v7241_v41 }
 0x511   :  { %6007 = vmatprep.subr.bf16.mxu1 %v6759_v10  ;;  %6013 = vmatprep.subr.bf16.mxu0 %v6759_v10 }
 0x513   :  { %5540 = vmatmul.mubr.msk.f32.vlgmr.msra.gmra.mrb[38].mxu1 %vm780_vm7, %v1892_v52  ;;  %5551 = vmatmul.mubr.msk.f32.vlgmr.msra.gmra.mrb[38].mxu0 %vm780_vm7, %v1892_v52 }
 0x514   :  { %6009 = vmatpush3.bf16.msra.mxu1 %v7150_v18  ;;  %6015 = vmatpush3.bf16.msra.mxu0 %v7193_v29 }
 0x515   :  { %6010 = vmatprep.subr.bf16.mxu1 %v6759_v10  ;;  %6016 = vmatprep.subr.bf16.mxu0 %v6759_v10 }
 0x516   :  { %5561 = vmatprep.mubr.msk.f32.mxu1 %vm6760_vm8, %v6761_v27  ;;  %5572 = vmatprep.mubr.msk.f32.mxu0 %vm6760_vm8, %v6761_v27 }
 0x518   :  { %6012 = vmatpush3.bf16.msra.mxu1 %v7161_v22  ;;  %6018 = vmatpush3.bf16.msra.mxu0 %v7205_v35 }
 0x519   :  { %6019 = vmatprep.subr.bf16.mxu1 %v6759_v10  ;;  %6025 = vmatprep.subr.bf16.mxu0 %v6759_v10 }
 0x5de   :  { %v1963_v53 = vpop.f32.mrb[36].mxu1  ;;  %v2033_v55 = vpop.f32.mrb[36].mxu0 }
 0x5df   :  { %v2179_v57 = vadd.f32 %v2178_v54, %v1963_v53  ;;  %v2188_v58 = vadd.f32 %v2187_v56, %v2033_v55  ;;  %v5519_v59 = vpop.f32.mrb[37].mxu1  ;;  %v5530_v60 = vpop.f32.mrb[37].mxu0 }
 0x5e1   :  { %v4896_v61 = vmul.f32 -1.442695, %v2179_v57  ;;  %v4897_v62 = vmul.f32 -1.442695, %v2188_v58 }
 0x5e3   :  { %6251 = vpow2.f32 %v4896_v61 }
 0x5e4   :  { %6253 = vpow2.f32 %v4897_v62 }
 0x5e6   :  { %v2103_v63 = vpop.f32.mrb[38].mxu1  ;;  %v2173_v0 = vpop.f32.mrb[38].mxu0 }
 0x5e7   :  { %v2201_v2 = vadd.f32 %v2200_v1, %v2173_v0  ;;  %v5541_v3 = vpop.f32.mrb[39].mxu1  ;;  %v5552_v4 = vpop.f32.mrb[39].mxu0  ;;  %v2197_v7 = vadd.f32 %v2196_v5, %v2103_v63 }
 0x5e8   :  { %v2820_v4 = vld [vmem:[#allocation3 + $0x18] sm:$0xff] }
 0x5e9   :  { %v4898_v6 = vmul.f32 -1.442695, %v2201_v2 }
 0x5eb   :  { %6255 = vpow2.f32 %v4898_v6  ;;  %v2829_v6 = vld [vmem:[#allocation4 + $0x18] sm:$0xff] }
 0x5ec   :  { %6257 = vtanh.f32 %v2197_v7 }
 0x5ed   :  { %v6252_v8 = vpop.eup %6251 }
 0x5ee   :  { %v6254_v9 = vpop.eup %6253  ;;  %v2183_v11 = vadd.f32 1.0, %v6252_v8 }
 0x5ef   :  { %v2192_v12 = vadd.f32 1.0, %v6254_v9 }
 0x5f0   :  { %6259 = vrcp.f32 %v2183_v11 }
 0x5f1   :  { %6261 = vrcp.f32 %v2192_v12 }
 0x5f5   :  { %v6256_v13 = vpop.eup %6255 }
 0x5f6   :  { %v6258_v14 = vpop.eup %6257  ;;  %v2205_v19 = vadd.f32 1.0, %v6256_v13 }
 0x5f8   :  { %6263 = vrcp.f32 %v2205_v19 }
 0x5fa   :  { %v6260_v15 = vpop.eup %6259 }
 0x5fb   :  { %v6262_v16 = vpop.eup %6261  ;;  %v2209_v17 = vmul.f32 %v6260_v15, %v6258_v14 }
 0x5fc   :  { %v2208_v20 = vmul.f32 %v6262_v16, %v7296_v49  ;;  %v2517_v49 = vld [vmem:[#allocation5 + $0x10] sm:$0xff]  ;;  %v2842_v16 = vld [vmem:[#allocation6 + $0x18] sm:$0xff] }
 0x5fe   :  { %v7329_v21 = vadd.f32 %v2209_v17, %v2208_v20 }
 0x600   :  { %6265 = vtanh.f32 %v7329_v21 }
 0x602   :  { %v6264_v23 = vpop.eup %6263 }
 0x60a   :  { %v6266_v24 = vpop.eup %6265 }
 0x60b   :  { %v2212_v25 = vmul.f32 %v6266_v24, %v6264_v23 }
 0x60d   :  { %2214 = vst.msk [vmem:[#allocation31 + $0x8] sm:$0xff] %vm780_vm7, %v2212_v25  ;;  %5562 = vmatmul.mubr.msk.f32.vlgmr.msra.gmra.mrb[40].mxu1 %vm780_vm7, %v2212_v25  ;;  %5573 = vmatmul.mubr.msk.f32.vlgmr.msra.gmra.mrb[40].mxu0 %vm780_vm7, %v2212_v25 }
 0x60e   :  { %6021 = vmatpush3.bf16.msra.mxu1 %v7191_v28  ;;  %6027 = vmatpush3.bf16.msra.mxu0 %v7233_v38 }
 0x60f   :  { %6022 = vmatprep.subr.bf16.mxu1 %v6759_v10  ;;  %6028 = vmatprep.subr.bf16.mxu0 %v6759_v10 }
 0x610   :  { %5583 = vmatprep.mubr.msk.f32.mxu1 %vm6760_vm8, %v6761_v27  ;;  %5594 = vmatprep.mubr.msk.f32.mxu0 %vm6760_vm8, %v6761_v27 }
 0x612   :  { %6024 = vmatpush3.bf16.msra.mxu1 %v7201_v34  ;;  %6030 = vmatpush3.bf16.msra.mxu0 %v7241_v41 }
 0x613   :  { %6031 = vmatprep.subr.bf16.mxu1 %v6759_v10  ;;  %6037 = vmatprep.subr.bf16.mxu0 %v6759_v10 }
 0x615   :  { %5584 = vmatmul.mubr.msk.f32.vlgmr.msra.gmra.mrb[42].mxu1 %vm780_vm7, %v2212_v25  ;;  %5595 = vmatmul.mubr.msk.f32.vlgmr.msra.gmra.mrb[42].mxu0 %vm780_vm7, %v2212_v25 }
 0x616   :  { %6033 = vmatpush3.bf16.msra.mxu1 %v7150_v18  ;;  %6039 = vmatpush3.bf16.msra.mxu0 %v7193_v29 }
 0x617   :  { %6034 = vmatprep.subr.bf16.mxu1 %v6759_v10  ;;  %6040 = vmatprep.subr.bf16.mxu0 %v6759_v10 }
 0x618   :  { %5605 = vmatprep.mubr.msk.f32.mxu1 %vm6760_vm8, %v6761_v27  ;;  %5616 = vmatprep.mubr.msk.f32.mxu0 %vm6760_vm8, %v6761_v27 }
 0x61a   :  { %6036 = vmatpush3.bf16.msra.mxu1 %v7161_v22  ;;  %6042 = vmatpush3.bf16.msra.mxu0 %v7205_v35 }
 0x61b   :  { %6043 = vmatprep.subr.bf16.mxu1 %v6759_v10  ;;  %6049 = vmatprep.subr.bf16.mxu0 %v6759_v10 }
 0x6e0   :  { %v2284_v26 = vpop.f32.mrb[40].mxu1  ;;  %v2354_v31 = vpop.f32.mrb[40].mxu0 }
 0x6e1   :  { %v2500_v33 = vadd.f32 %v2499_v30, %v2284_v26  ;;  %v2509_v36 = vadd.f32 %v2508_v32, %v2354_v31  ;;  %v5563_v37 = vpop.f32.mrb[41].mxu1  ;;  %v5574_v39 = vpop.f32.mrb[41].mxu0 }
 0x6e3   :  { %v4903_v40 = vmul.f32 -1.442695, %v2500_v33  ;;  %v4904_v42 = vmul.f32 -1.442695, %v2509_v36 }
 0x6e5   :  { %6267 = vpow2.f32 %v4903_v40 }
 0x6e6   :  { %6269 = vpow2.f32 %v4904_v42 }
 0x6e8   :  { %v2424_v43 = vpop.f32.mrb[42].mxu1  ;;  %v2494_v44 = vpop.f32.mrb[42].mxu0 }
 0x6e9   :  { %v2522_v46 = vadd.f32 %v2521_v45, %v2494_v44  ;;  %v5585_v47 = vpop.f32.mrb[43].mxu1  ;;  %v5596_v48 = vpop.f32.mrb[43].mxu0  ;;  %v2518_v51 = vadd.f32 %v2517_v49, %v2424_v43 }
 0x6ea   :  { %v3141_v48 = vld [vmem:[#allocation3 + $0x20] sm:$0xff] }
 0x6eb   :  { %v4905_v50 = vmul.f32 -1.442695, %v2522_v46 }
 0x6ed   :  { %6271 = vpow2.f32 %v4905_v50  ;;  %v3150_v50 = vld [vmem:[#allocation4 + $0x20] sm:$0xff] }
 0x6ee   :  { %6273 = vtanh.f32 %v2518_v51 }
 0x6ef   :  { %v6268_v52 = vpop.eup %6267 }
 0x6f0   :  { %v6270_v53 = vpop.eup %6269  ;;  %v2504_v54 = vadd.f32 1.0, %v6268_v52 }
 0x6f1   :  { %v2513_v55 = vadd.f32 1.0, %v6270_v53 }
 0x6f2   :  { %6275 = vrcp.f32 %v2504_v54 }
 0x6f3   :  { %6277 = vrcp.f32 %v2513_v55 }
 0x6f7   :  { %v6272_v56 = vpop.eup %6271 }
 0x6f8   :  { %v6274_v57 = vpop.eup %6273  ;;  %v2526_v61 = vadd.f32 1.0, %v6272_v56 }
 0x6fa   :  { %6279 = vrcp.f32 %v2526_v61 }
 0x6fc   :  { %v6276_v58 = vpop.eup %6275 }
 0x6fd   :  { %v6278_v59 = vpop.eup %6277  ;;  %v2530_v60 = vmul.f32 %v6276_v58, %v6274_v57 }
 0x6fe   :  { %v2529_v62 = vmul.f32 %v6278_v59, %v7329_v21  ;;  %v2838_v21 = vld [vmem:[#allocation5 + $0x18] sm:$0xff]  ;;  %v3163_v59 = vld [vmem:[#allocation6 + $0x20] sm:$0xff] }
 0x700   :  { %v7362_v63 = vadd.f32 %v2530_v60, %v2529_v62 }
 0x702   :  { %6281 = vtanh.f32 %v7362_v63 }
 0x704   :  { %v6280_v0 = vpop.eup %6279 }
 0x70c   :  { %v6282_v1 = vpop.eup %6281 }
 0x70d   :  { %v2533_v2 = vmul.f32 %v6282_v1, %v6280_v0 }
 0x70f   :  { %2535 = vst.msk [vmem:[#allocation31 + $0x10] sm:$0xff] %vm780_vm7, %v2533_v2  ;;  %5606 = vmatmul.mubr.msk.f32.vlgmr.msra.gmra.mrb[44].mxu1 %vm780_vm7, %v2533_v2  ;;  %5617 = vmatmul.mubr.msk.f32.vlgmr.msra.gmra.mrb[44].mxu0 %vm780_vm7, %v2533_v2 }
 0x710   :  { %6045 = vmatpush3.bf16.msra.mxu1 %v7191_v28  ;;  %6051 = vmatpush3.bf16.msra.mxu0 %v7233_v38 }
 0x711   :  { %6046 = vmatprep.subr.bf16.mxu1 %v6759_v10  ;;  %6052 = vmatprep.subr.bf16.mxu0 %v6759_v10 }
 0x712   :  { %5627 = vmatprep.mubr.msk.f32.mxu1 %vm6760_vm8, %v6761_v27  ;;  %5638 = vmatprep.mubr.msk.f32.mxu0 %vm6760_vm8, %v6761_v27 }
 0x714   :  { %6048 = vmatpush3.bf16.msra.mxu1 %v7201_v34  ;;  %6054 = vmatpush3.bf16.msra.mxu0 %v7241_v41 }
 0x715   :  { %6055 = vmatprep.subr.bf16.mxu1 %v6759_v10  ;;  %6061 = vmatprep.subr.bf16.mxu0 %v6759_v10 }
 0x717   :  { %5628 = vmatmul.mubr.msk.f32.vlgmr.msra.gmra.mrb[46].mxu1 %vm780_vm7, %v2533_v2  ;;  %5639 = vmatmul.mubr.msk.f32.vlgmr.msra.gmra.mrb[46].mxu0 %vm780_vm7, %v2533_v2 }
 0x718   :  { %6057 = vmatpush3.bf16.msra.mxu1 %v7150_v18  ;;  %6063 = vmatpush3.bf16.msra.mxu0 %v7193_v29 }
 0x719   :  { %6058 = vmatprep.subr.bf16.mxu1 %v6759_v10  ;;  %6064 = vmatprep.subr.bf16.mxu0 %v6759_v10 }
 0x71a   :  { %5649 = vmatprep.mubr.msk.f32.mxu1 %vm6760_vm8, %v6761_v27  ;;  %5660 = vmatprep.mubr.msk.f32.mxu0 %vm6760_vm8, %v6761_v27 }
 0x71c   :  { %6060 = vmatpush3.bf16.msra.mxu1 %v7161_v22  ;;  %6066 = vmatpush3.bf16.msra.mxu0 %v7205_v35 }
 0x71d   :  { %6067 = vmatprep.subr.bf16.mxu1 %v6759_v10  ;;  %6073 = vmatprep.subr.bf16.mxu0 %v6759_v10 }
 0x7e2   :  { %v2605_v3 = vpop.f32.mrb[44].mxu1  ;;  %v2675_v5 = vpop.f32.mrb[44].mxu0 }
 0x7e3   :  { %v2821_v7 = vadd.f32 %v2820_v4, %v2605_v3  ;;  %v2830_v8 = vadd.f32 %v2829_v6, %v2675_v5  ;;  %v5607_v9 = vpop.f32.mrb[45].mxu1  ;;  %v5618_v11 = vpop.f32.mrb[45].mxu0 }
 0x7e5   :  { %v4910_v12 = vmul.f32 -1.442695, %v2821_v7  ;;  %v4911_v13 = vmul.f32 -1.442695, %v2830_v8 }
 0x7e7   :  { %6283 = vpow2.f32 %v4910_v12 }
 0x7e8   :  { %6285 = vpow2.f32 %v4911_v13 }
 0x7ea   :  { %v2745_v14 = vpop.f32.mrb[46].mxu1  ;;  %v2815_v15 = vpop.f32.mrb[46].mxu0 }
 0x7eb   :  { %v2843_v17 = vadd.f32 %v2842_v16, %v2815_v15  ;;  %v5629_v19 = vpop.f32.mrb[47].mxu1  ;;  %v5640_v20 = vpop.f32.mrb[47].mxu0  ;;  %v2839_v24 = vadd.f32 %v2838_v21, %v2745_v14 }
 0x7ec   :  { %v3462_v20 = vld [vmem:[#allocation3 + $0x28] sm:$0xff] }
 0x7ed   :  { %v4912_v23 = vmul.f32 -1.442695, %v2843_v17 }
 0x7ef   :  { %6287 = vpow2.f32 %v4912_v23  ;;  %v3471_v23 = vld [vmem:[#allocation4 + $0x28] sm:$0xff] }
 0x7f0   :  { %6289 = vtanh.f32 %v2839_v24 }
 0x7f1   :  { %v6284_v25 = vpop.eup %6283 }
 0x7f2   :  { %v6286_v26 = vpop.eup %6285  ;;  %v2825_v30 = vadd.f32 1.0, %v6284_v25 }
 0x7f3   :  { %v2834_v31 = vadd.f32 1.0, %v6286_v26 }
 0x7f4   :  { %6291 = vrcp.f32 %v2825_v30 }
 0x7f5   :  { %6293 = vrcp.f32 %v2834_v31 }
 0x7f9   :  { %v6288_v32 = vpop.eup %6287 }
 0x7fa   :  { %v6290_v33 = vpop.eup %6289  ;;  %v2847_v40 = vadd.f32 1.0, %v6288_v32 }
 0x7fc   :  { %6295 = vrcp.f32 %v2847_v40 }
 0x7fe   :  { %v6292_v36 = vpop.eup %6291 }
 0x7ff   :  { %v6294_v37 = vpop.eup %6293  ;;  %v2851_v39 = vmul.f32 %v6292_v36, %v6290_v33 }
 0x800   :  { %v2850_v42 = vmul.f32 %v6294_v37, %v7362_v63  ;;  %v3159_v63 = vld [vmem:[#allocation5 + $0x20] sm:$0xff]  ;;  %v3484_v37 = vld [vmem:[#allocation6 + $0x28] sm:$0xff] }
 0x802   :  { %v7395_v43 = vadd.f32 %v2851_v39, %v2850_v42 }
 0x804   :  { %6297 = vtanh.f32 %v7395_v43 }
 0x806   :  { %v6296_v44 = vpop.eup %6295 }
 0x80e   :  { %v6298_v45 = vpop.eup %6297 }
 0x80f   :  { %v2854_v46 = vmul.f32 %v6298_v45, %v6296_v44 }
 0x811   :  { %2856 = vst.msk [vmem:[#allocation31 + $0x18] sm:$0xff] %vm780_vm7, %v2854_v46  ;;  %5650 = vmatmul.mubr.msk.f32.vlgmr.msra.gmra.mrb[48].mxu1 %vm780_vm7, %v2854_v46  ;;  %5661 = vmatmul.mubr.msk.f32.vlgmr.msra.gmra.mrb[48].mxu0 %vm780_vm7, %v2854_v46 }
 0x812   :  { %6069 = vmatpush3.bf16.msra.mxu1 %v7191_v28  ;;  %6075 = vmatpush3.bf16.msra.mxu0 %v7233_v38 }
 0x813   :  { %6070 = vmatprep.subr.bf16.mxu1 %v6759_v10  ;;  %6076 = vmatprep.subr.bf16.mxu0 %v6759_v10 }
 0x814   :  { %5671 = vmatprep.mubr.msk.f32.mxu1 %vm6760_vm8, %v6761_v27  ;;  %5682 = vmatprep.mubr.msk.f32.mxu0 %vm6760_vm8, %v6761_v27 }
 0x816   :  { %6072 = vmatpush3.bf16.msra.mxu1 %v7201_v34  ;;  %6078 = vmatpush3.bf16.msra.mxu0 %v7241_v41 }
 0x817   :  { %6079 = vmatprep.subr.bf16.mxu1 %v6759_v10  ;;  %6085 = vmatprep.subr.bf16.mxu0 %v6759_v10 }
 0x819   :  { %5672 = vmatmul.mubr.msk.f32.vlgmr.msra.gmra.mrb[50].mxu1 %vm780_vm7, %v2854_v46  ;;  %5683 = vmatmul.mubr.msk.f32.vlgmr.msra.gmra.mrb[50].mxu0 %vm780_vm7, %v2854_v46 }
 0x81a   :  { %6081 = vmatpush3.bf16.msra.mxu1 %v7150_v18  ;;  %6087 = vmatpush3.bf16.msra.mxu0 %v7193_v29 }
 0x81b   :  { %6082 = vmatprep.subr.bf16.mxu1 %v6759_v10  ;;  %6088 = vmatprep.subr.bf16.mxu0 %v6759_v10 }
 0x81c   :  { %5693 = vmatprep.mubr.msk.f32.mxu1 %vm6760_vm8, %v6761_v27  ;;  %5704 = vmatprep.mubr.msk.f32.mxu0 %vm6760_vm8, %v6761_v27 }
 0x81e   :  { %6084 = vmatpush3.bf16.msra.mxu1 %v7161_v22  ;;  %6090 = vmatpush3.bf16.msra.mxu0 %v7205_v35 }
 0x81f   :  { %6091 = vmatprep.subr.bf16.mxu1 %v6759_v10  ;;  %6097 = vmatprep.subr.bf16.mxu0 %v6759_v10 }
 0x8e4   :  { %v2926_v47 = vpop.f32.mrb[48].mxu1  ;;  %v2996_v49 = vpop.f32.mrb[48].mxu0 }
 0x8e5   :  { %v3142_v51 = vadd.f32 %v3141_v48, %v2926_v47  ;;  %v3151_v52 = vadd.f32 %v3150_v50, %v2996_v49  ;;  %v5651_v53 = vpop.f32.mrb[49].mxu1  ;;  %v5662_v54 = vpop.f32.mrb[49].mxu0 }
 0x8e7   :  { %v4917_v55 = vmul.f32 -1.442695, %v3142_v51  ;;  %v4918_v56 = vmul.f32 -1.442695, %v3151_v52 }
 0x8e9   :  { %6299 = vpow2.f32 %v4917_v55 }
 0x8ea   :  { %6301 = vpow2.f32 %v4918_v56 }
 0x8ec   :  { %v3066_v57 = vpop.f32.mrb[50].mxu1  ;;  %v3136_v58 = vpop.f32.mrb[50].mxu0 }
 0x8ed   :  { %v3164_v60 = vadd.f32 %v3163_v59, %v3136_v58  ;;  %v5673_v61 = vpop.f32.mrb[51].mxu1  ;;  %v5684_v62 = vpop.f32.mrb[51].mxu0  ;;  %v3160_v1 = vadd.f32 %v3159_v63, %v3066_v57 }
 0x8ee   :  { %v3792_v62 = vld [vmem:[#allocation4 + $0x30] sm:$0xff] }
 0x8ef   :  { %v4919_v0 = vmul.f32 -1.442695, %v3164_v60 }
 0x8f1   :  { %6303 = vpow2.f32 %v4919_v0 }
 0x8f2   :  { %6305 = vtanh.f32 %v3160_v1 }
 0x8f3   :  { %v6300_v2 = vpop.eup %6299 }
 0x8f4   :  { %v6302_v3 = vpop.eup %6301  ;;  %v3146_v4 = vadd.f32 1.0, %v6300_v2 }
 0x8f5   :  { %v3155_v5 = vadd.f32 1.0, %v6302_v3 }
 0x8f6   :  { %6307 = vrcp.f32 %v3146_v4 }
 0x8f7   :  { %6309 = vrcp.f32 %v3155_v5 }
 0x8fb   :  { %v6304_v6 = vpop.eup %6303 }
 0x8fc   :  { %v6306_v7 = vpop.eup %6305  ;;  %v3168_v12 = vadd.f32 1.0, %v6304_v6  ;;  %v3805_v6 = vld [vmem:[#allocation6 + $0x30] sm:$0xff] }
 0x8fe   :  { %6311 = vrcp.f32 %v3168_v12 }
 0x900   :  { %v6308_v8 = vpop.eup %6307 }
 0x901   :  { %v6310_v9 = vpop.eup %6309  ;;  %v3172_v11 = vmul.f32 %v6308_v8, %v6306_v7 }
 0x902   :  { %v3171_v13 = vmul.f32 %v6310_v9, %v7395_v43  ;;  %v3480_v43 = vld [vmem:[#allocation5 + $0x28] sm:$0xff]  ;;  %v3801_v9 = vld [vmem:[#allocation5 + $0x30] sm:$0xff] }
 0x904   :  { %v7428_v14 = vadd.f32 %v3172_v11, %v3171_v13 }
 0x906   :  { %6313 = vtanh.f32 %v7428_v14 }
 0x908   :  { %v6312_v15 = vpop.eup %6311 }
 0x910   :  { %v6314_v16 = vpop.eup %6313 }
 0x911   :  { %v3175_v17 = vmul.f32 %v6314_v16, %v6312_v15 }
 0x913   :  { %3177 = vst.msk [vmem:[#allocation31 + $0x20] sm:$0xff] %vm780_vm7, %v3175_v17  ;;  %5694 = vmatmul.mubr.msk.f32.vlgmr.msra.gmra.mrb[52].mxu1 %vm780_vm7, %v3175_v17  ;;  %5705 = vmatmul.mubr.msk.f32.vlgmr.msra.gmra.mrb[52].mxu0 %vm780_vm7, %v3175_v17 }
 0x914   :  { %6093 = vmatpush3.bf16.msra.mxu1 %v7191_v28  ;;  %6099 = vmatpush3.bf16.msra.mxu0 %v7233_v38 }
 0x915   :  { %6094 = vmatprep.subr.bf16.mxu1 %v6759_v10  ;;  %6100 = vmatprep.subr.bf16.mxu0 %v6759_v10 }
 0x916   :  { %5715 = vmatprep.mubr.msk.f32.mxu1 %vm6760_vm8, %v6761_v27  ;;  %5726 = vmatprep.mubr.msk.f32.mxu0 %vm6760_vm8, %v6761_v27 }
 0x918   :  { %6096 = vmatpush3.bf16.msra.mxu1 %v7201_v34  ;;  %6102 = vmatpush3.bf16.msra.mxu0 %v7241_v41 }
 0x919   :  { %6103 = vmatprep.subr.bf16.mxu1 %v6759_v10  ;;  %6109 = vmatprep.subr.bf16.mxu0 %v6759_v10 }
 0x91b   :  { %5716 = vmatmul.mubr.msk.f32.vlgmr.msra.gmra.mrb[54].mxu1 %vm780_vm7, %v3175_v17  ;;  %5727 = vmatmul.mubr.msk.f32.vlgmr.msra.gmra.mrb[54].mxu0 %vm780_vm7, %v3175_v17 }
 0x91c   :  { %6105 = vmatpush3.bf16.msra.mxu1 %v7150_v18  ;;  %6111 = vmatpush3.bf16.msra.mxu0 %v7193_v29 }
 0x91d   :  { %6106 = vmatprep.subr.bf16.mxu1 %v6759_v10  ;;  %6112 = vmatprep.subr.bf16.mxu0 %v6759_v10 }
 0x91e   :  { %5737 = vmatprep.mubr.msk.f32.mxu1 %vm6760_vm8, %v6761_v27  ;;  %5748 = vmatprep.mubr.msk.f32.mxu0 %vm6760_vm8, %v6761_v27 }
 0x920   :  { %6108 = vmatpush3.bf16.msra.mxu1 %v7161_v22  ;;  %6114 = vmatpush3.bf16.msra.mxu0 %v7205_v35 }
 0x921   :  { %6115 = vmatprep.subr.bf16.mxu1 %v6759_v10  ;;  %6121 = vmatprep.subr.bf16.mxu0 %v6759_v10 }
 0x9e6   :  { %v3247_v19 = vpop.f32.mrb[52].mxu1  ;;  %v3317_v21 = vpop.f32.mrb[52].mxu0 }
 0x9e7   :  { %v3463_v24 = vadd.f32 %v3462_v20, %v3247_v19  ;;  %v3472_v25 = vadd.f32 %v3471_v23, %v3317_v21  ;;  %v5695_v26 = vpop.f32.mrb[53].mxu1  ;;  %v5706_v30 = vpop.f32.mrb[53].mxu0 }
 0x9e9   :  { %v4924_v31 = vmul.f32 -1.442695, %v3463_v24  ;;  %v4925_v32 = vmul.f32 -1.442695, %v3472_v25 }
 0x9eb   :  { %6315 = vpow2.f32 %v4924_v31 }
 0x9ec   :  { %6317 = vpow2.f32 %v4925_v32 }
 0x9ee   :  { %v3387_v33 = vpop.f32.mrb[54].mxu1  ;;  %v3457_v36 = vpop.f32.mrb[54].mxu0 }
 0x9ef   :  { %v3485_v39 = vadd.f32 %v3484_v37, %v3457_v36  ;;  %v5717_v40 = vpop.f32.mrb[55].mxu1  ;;  %v5728_v42 = vpop.f32.mrb[55].mxu0  ;;  %v3481_v45 = vadd.f32 %v3480_v43, %v3387_v33  ;;  %v4157_v33 = vld [vmem:[#allocation29] sm:$0xff]  ;;  %v4158_v36 = vld [vmem:[#allocation29 + $0x8] sm:$0xff] }
 0x9f0   :  { %v6151_v37 = vpack.c.bf16 %v4158_v36, %v4157_v33  ;;  %v4160_v40 = vld [vmem:[#allocation29 + $0x18] sm:$0xff] }
 0x9f1   :  { %v4926_v44 = vmul.f32 -1.442695, %v3485_v39  ;;  %v4159_v39 = vld [vmem:[#allocation29 + $0x10] sm:$0xff] }
 0x9f3   :  { %6319 = vpow2.f32 %v4926_v44  ;;  %v4306_v44 = vld [vmem:[%s7625_s17] sm:$0xff] }
 0x9f4   :  { %6321 = vtanh.f32 %v3481_v45  ;;  %v4307_v45 = vld [vmem:[%s7625_s17 + $0x8] sm:$0xff] }
 0x9f5   :  { %v6316_v46 = vpop.eup %6315 }
 0x9f6   :  { %v6318_v47 = vpop.eup %6317  ;;  %v3467_v48 = vadd.f32 1.0, %v6316_v46  ;;  %v6159_v46 = vpack.c.bf16 %v4307_v45, %v4306_v44 }
 0x9f7   :  { %v3476_v49 = vadd.f32 1.0, %v6318_v47  ;;  %v4308_v47 = vld [vmem:[%s7625_s17 + $0x10] sm:$0xff] }
 0x9f8   :  { %6323 = vrcp.f32 %v3467_v48  ;;  %v4309_v48 = vld [vmem:[%s7625_s17 + $0x18] sm:$0xff] }
 0x9f9   :  { %6325 = vrcp.f32 %v3476_v49  ;;  %v6163_v49 = vpack.c.bf16 %v4309_v48, %v4308_v47  ;;  %v4455_v47 = vld [vmem:[%s7626_s11 + $0x8] sm:$0xff] }
 0x9fd   :  { %v6320_v50 = vpop.eup %6319 }
 0x9fe   :  { %v6322_v51 = vpop.eup %6321  ;;  %v3489_v55 = vadd.f32 1.0, %v6320_v50 }
 0xa00   :  { %6327 = vrcp.f32 %v3489_v55 }
 0xa02   :  { %v6324_v52 = vpop.eup %6323 }
 0xa03   :  { %v6326_v53 = vpop.eup %6325  ;;  %v3493_v54 = vmul.f32 %v6324_v52, %v6322_v51  ;;  %v4104_v51 = vld [vmem:[#allocation3 + $0x38] sm:$0xff] }
 0xa04   :  { %v3492_v56 = vmul.f32 %v6326_v53, %v7428_v14  ;;  %v4113_v53 = vld [vmem:[#allocation4 + $0x38] sm:$0xff] }
 0xa06   :  { %v7461_v57 = vadd.f32 %v3493_v54, %v3492_v56 }
 0xa08   :  { %6329 = vtanh.f32 %v7461_v57 }
 0xa0a   :  { %v6328_v58 = vpop.eup %6327 }
 0xa12   :  { %v6330_v59 = vpop.eup %6329 }
 0xa13   :  { %v3496_v60 = vmul.f32 %v6330_v59, %v6328_v58 }
 0xa15   :  { %3498 = vst.msk [vmem:[#allocation31 + $0x28] sm:$0xff] %vm780_vm7, %v3496_v60  ;;  %5738 = vmatmul.mubr.msk.f32.vlgmr.msra.gmra.mrb[56].mxu1 %vm780_vm7, %v3496_v60  ;;  %5749 = vmatmul.mubr.msk.f32.vlgmr.msra.gmra.mrb[56].mxu0 %vm780_vm7, %v3496_v60 }
 0xa16   :  { %6117 = vmatpush3.bf16.msra.mxu1 %v7191_v28  ;;  %6123 = vmatpush3.bf16.msra.mxu0 %v7233_v38 }
 0xa17   :  { %6118 = vmatprep.subr.bf16.mxu1 %v6759_v10  ;;  %6124 = vmatprep.subr.bf16.mxu0 %v6759_v10 }
 0xa18   :  { %5759 = vmatprep.mubr.msk.f32.mxu1 %vm6760_vm8, %v6761_v27  ;;  %5770 = vmatprep.mubr.msk.f32.mxu0 %vm6760_vm8, %v6761_v27 }
 0xa1a   :  { %6120 = vmatpush3.bf16.msra.mxu1 %v7201_v34  ;;  %6126 = vmatpush3.bf16.msra.mxu0 %v7241_v41 }
 0xa1b   :  { %6127 = vmatprep.subr.bf16.mxu1 %v6759_v10  ;;  %6133 = vmatprep.subr.bf16.mxu0 %v6759_v10 }
 0xa1c   :  { %v4146_v42 = vld [vmem:[#allocation31 + $0x28] sm:$0xff] }
 0xa1d   :  { %5760 = vmatmul.mubr.msk.f32.vlgmr.msra.gmra.mrb[58].mxu1 %vm780_vm7, %v3496_v60  ;;  %5771 = vmatmul.mubr.msk.f32.vlgmr.msra.gmra.mrb[58].mxu0 %vm780_vm7, %v3496_v60 }
 0xa1e   :  { %6129 = vmatpush3.bf16.msra.mxu1 %v7150_v18  ;;  %6135 = vmatpush3.bf16.msra.mxu0 %v7193_v29  ;;  %v3783_v29 = vld [vmem:[#allocation3 + $0x30] sm:$0xff] }
 0xa1f   :  { %6130 = vmatprep.subr.bf16.mxu1 %v6759_v10  ;;  %6136 = vmatprep.subr.bf16.mxu0 %v6759_v10 }
 0xa20   :  { %5781 = vmatprep.mubr.msk.f32.mxu1 %vm6760_vm8, %v6761_v27  ;;  %5792 = vmatprep.mubr.msk.f32.mxu0 %vm6760_vm8, %v6761_v27 }
 0xa22   :  { %6132 = vmatpush3.bf16.msra.mxu1 %v7161_v22  ;;  %6138 = vmatpush3.bf16.msra.mxu0 %v7205_v35 }
 0xa23   :  { %6139 = vmatprep.subr.bf16.mxu1 %v6759_v10  ;;  %6145 = vmatprep.subr.bf16.mxu0 %v6759_v10 }
 0xae8   :  { %v3568_v18 = vpop.f32.mrb[56].mxu1  ;;  %v3638_v61 = vpop.f32.mrb[56].mxu0 }
 0xae9   :  { %v3784_v63 = vadd.f32 %v3783_v29, %v3568_v18  ;;  %v3793_v0 = vadd.f32 %v3792_v62, %v3638_v61  ;;  %v5739_v1 = vpop.f32.mrb[57].mxu1  ;;  %v5750_v2 = vpop.f32.mrb[57].mxu0  ;;  %v4126_v29 = vld [vmem:[#allocation6 + $0x38] sm:$0xff] }
 0xaeb   :  { %v4931_v3 = vmul.f32 -1.442695, %v3784_v63  ;;  %v4932_v4 = vmul.f32 -1.442695, %v3793_v0  ;;  %v4122_v0 = vld [vmem:[#allocation5 + $0x38] sm:$0xff] }
 0xaed   :  { %6331 = vpow2.f32 %v4931_v3 }
 0xaee   :  { %6333 = vpow2.f32 %v4932_v4 }
 0xaf0   :  { %v3708_v5 = vpop.f32.mrb[58].mxu1  ;;  %v3778_v22 = vpop.f32.mrb[58].mxu0 }
 0xaf1   :  { %v3806_v35 = vadd.f32 %v3805_v6, %v3778_v22  ;;  %v5761_v7 = vpop.f32.mrb[59].mxu1  ;;  %v5772_v8 = vpop.f32.mrb[59].mxu0  ;;  %v3802_v12 = vadd.f32 %v3801_v9, %v3708_v5  ;;  %v4150_v22 = vld [vmem:[#allocation2 + $0x8] sm:$0xff] }
 0xaf2   :  { %v4149_v8 = vld [vmem:[#allocation2] sm:$0xff] }
 0xaf3   :  { %v4933_v11 = vmul.f32 -1.442695, %v3806_v35 }
 0xaf5   :  { %6335 = vpow2.f32 %v4933_v11 }
 0xaf6   :  { %6337 = vtanh.f32 %v3802_v12 }
 0xaf7   :  { %v6332_v13 = vpop.eup %6331 }
 0xaf8   :  { %v6334_v14 = vpop.eup %6333  ;;  %v3788_v15 = vadd.f32 1.0, %v6332_v13  ;;  %v4152_v13 = vld [vmem:[#allocation2 + $0x18] sm:$0xff] }
 0xaf9   :  { %v3797_v16 = vadd.f32 1.0, %v6334_v14 }
 0xafa   :  { %6339 = vrcp.f32 %v3788_v15 }
 0xafb   :  { %6341 = vrcp.f32 %v3797_v16 }
 0xaff   :  { %v6336_v17 = vpop.eup %6335 }
 0xb00   :  { %v6338_v19 = vpop.eup %6337  ;;  %v3810_v24 = vadd.f32 1.0, %v6336_v17  ;;  %v4151_v17 = vld [vmem:[#allocation2 + $0x10] sm:$0xff] }
 0xb02   :  { %6343 = vrcp.f32 %v3810_v24 }
 0xb04   :  { %v6340_v20 = vpop.eup %6339 }
 0xb05   :  { %v6342_v21 = vpop.eup %6341  ;;  %v3814_v23 = vmul.f32 %v6340_v20, %v6338_v19 }
 0xb06   :  { %v3813_v25 = vmul.f32 %v6342_v21, %v7461_v57 }
 0xb08   :  { %v7494_v26 = vadd.f32 %v3814_v23, %v3813_v25  ;;  %v4154_v23 = vld [vmem:[#allocation2 + $0x28] sm:$0xff] }
 0xb0a   :  { %6345 = vtanh.f32 %v7494_v26 }
 0xb0c   :  { %v6344_v30 = vpop.eup %6343 }
 0xb14   :  { %v6346_v31 = vpop.eup %6345 }
 0xb15   :  { %v3817_v32 = vmul.f32 %v6346_v31, %v6344_v30  ;;  %v4153_v31 = vld [vmem:[#allocation2 + $0x20] sm:$0xff] }
 0xb17   :  { %3819 = vst.msk [vmem:[#allocation31 + $0x30] sm:$0xff] %vm780_vm7, %v3817_v32  ;;  %5782 = vmatmul.mubr.msk.f32.vlgmr.msra.gmra.mrb[60].mxu1 %vm780_vm7, %v3817_v32  ;;  %5793 = vmatmul.mubr.msk.f32.vlgmr.msra.gmra.mrb[60].mxu0 %vm780_vm7, %v3817_v32 }
 0xb18   :  { %6141 = vmatpush3.bf16.msra.mxu1 %v7191_v28  ;;  %6147 = vmatpush3.bf16.msra.mxu0 %v7233_v38  ;;  %v6155_v28 = vpack.c.bf16 %v4160_v40, %v4159_v39  ;;  %v4144_v38 = vld [vmem:[#allocation31 + $0x18] sm:$0xff] }
 0xb19   :  { %6142 = vmatprep.subr.bf16.mxu1 %v6759_v10  ;;  %6148 = vmatprep.subr.bf16.mxu0 %v6759_v10  ;;  %v4141_v10 = vld [vmem:[#allocation31] sm:$0xff] }
 0xb1a   :  { %5803 = vmatprep.mubr.msk.f32.mxu1 %vm6760_vm8, %v6761_v27  ;;  %5814 = vmatprep.mubr.msk.f32.mxu0 %vm6760_vm8, %v6761_v27  ;;  %v4142_v27 = vld [vmem:[#allocation31 + $0x8] sm:$0xff] }
 0xb1c   :  { %6144 = vmatpush3.bf16.msra.mxu1 %v7201_v34  ;;  %6150 = vmatpush3.bf16.msra.mxu0 %v7241_v41  ;;  %v4143_v34 = vld [vmem:[#allocation31 + $0x10] sm:$0xff]  ;;  %v4145_v41 = vld [vmem:[#allocation31 + $0x20] sm:$0xff] }
 0xb1d   :  { %6152 = vmatprep.subr.bf16.mxu1 %v6151_v37  ;;  %6160 = vmatprep.subr.bf16.mxu0 %v6159_v46 }
 0xb1e   :  { %v4147_v43 = vld [vmem:[#allocation31 + $0x30] sm:$0xff] }
 0xb1f   :  { %5804 = vmatmul.mubr.msk.f32.vlgmr.msra.gmra.mrb[62].mxu1 %vm780_vm7, %v3817_v32  ;;  %5815 = vmatmul.mubr.msk.f32.vlgmr.msra.gmra.mrb[62].mxu0 %vm780_vm7, %v3817_v32 }
 0xb20   :  { %6154 = vmatpush3.bf16.msra.mxu1 %v6151_v37  ;;  %5825 = vmatprep.mubr.msk.f32.mxu1 %vm780_vm7, %v4141_v10 }
 0xb21   :  { %6156 = vmatprep.subr.bf16.mxu1 %v6155_v28  ;;  %6162 = vmatpush3.bf16.msra.mxu0 %v6159_v46  ;;  %v4454_v46 = vld [vmem:[%s7626_s11] sm:$0xff] }
 0xb22   :  { %6164 = vmatprep.subr.bf16.mxu0 %v6163_v49  ;;  %v6167_v48 = vpack.c.bf16 %v4455_v47, %v4454_v46 }
 0xb24   :  { %6158 = vmatpush3.bf16.msra.mxu1 %v6155_v28 }
 0xb25   :  { %6166 = vmatpush3.bf16.msra.mxu0 %v6163_v49  ;;  %6168 = vmatprep.subr.bf16.mxu1 %v6167_v48 }
 0xb27   :  { %5826 = vmatmul.mubr.msk.f32.vlgmr.msra.gmra.mrb[64].mxu1 %vm780_vm7, %v4142_v27 }
 0xb28   :  { %5828 = vmatprep.mubr.msk.f32.mxu1 %vm780_vm7, %v4143_v34  ;;  %6170 = vmatpush3.bf16.msra.mxu1 %v6167_v48 }
 0xb2b   :  { %5829 = vmatmul.mubr.msk.f32.gmra.mrb[66].mxu1 %vm780_vm7, %v4144_v38 }
 0xb2c   :  { %5831 = vmatprep.mubr.msk.f32.mxu1 %vm780_vm7, %v4145_v41 }
 0xb2f   :  { %5832 = vmatmul.mubr.msk.f32.gmra.mrb[68].mxu1 %vm780_vm7, %v4146_v42 }
 0xb30   :  { %5834 = vmatprep.mubr.msk.f32.mxu1 %vm780_vm7, %v4147_v43 }
 0xbea   :  { %v3889_v50 = vpop.f32.mrb[60].mxu1  ;;  %v3959_v52 = vpop.f32.mrb[60].mxu0 }
 0xbeb   :  { %v4105_v54 = vadd.f32 %v4104_v51, %v3889_v50  ;;  %v4114_v55 = vadd.f32 %v4113_v53, %v3959_v52  ;;  %v5783_v56 = vpop.f32.mrb[61].mxu1  ;;  %v5794_v57 = vpop.f32.mrb[61].mxu0 }
 0xbed   :  { %v4938_v58 = vmul.f32 -1.442695, %v4105_v54  ;;  %v4939_v59 = vmul.f32 -1.442695, %v4114_v55 }
 0xbef   :  { %6347 = vpow2.f32 %v4938_v58 }
 0xbf0   :  { %6349 = vpow2.f32 %v4939_v59 }
 0xbf2   :  { %v4029_v60 = vpop.f32.mrb[62].mxu1  ;;  %v4099_v18 = vpop.f32.mrb[62].mxu0 }
 0xbf3   :  { %v4127_v61 = vadd.f32 %v4126_v29, %v4099_v18  ;;  %v5805_v62 = vpop.f32.mrb[63].mxu1  ;;  %v5816_v63 = vpop.f32.mrb[63].mxu0  ;;  %v4123_v2 = vadd.f32 %v4122_v0, %v4029_v60 }
 0xbf5   :  { %v4940_v1 = vmul.f32 -1.442695, %v4127_v61 }
 0xbf7   :  { %6351 = vpow2.f32 %v4940_v1  ;;  %v4156_v1 = vld [vmem:[#allocation2 + $0x38] sm:$0xff] }
 0xbf8   :  { %6353 = vtanh.f32 %v4123_v2 }
 0xbf9   :  { %v6348_v3 = vpop.eup %6347 }
 0xbfa   :  { %v6350_v4 = vpop.eup %6349  ;;  %v4109_v5 = vadd.f32 1.0, %v6348_v3  ;;  %v5827_v6 = vpop.f32.mrb[64].mxu1 }
 0xbfb   :  { %v4118_v35 = vadd.f32 1.0, %v6350_v4  ;;  %v4291_v7 = vadd.f32 %v5827_v6, %v4150_v22  ;;  %v4251_v9 = vpop.f32.mrb[65].mxu1  ;;  %v4155_v4 = vld [vmem:[#allocation2 + $0x30] sm:$0xff] }
 0xbfc   :  { %6355 = vrcp.f32 %v4109_v5  ;;  %v4290_v11 = vadd.f32 %v4251_v9, %v4149_v8  ;;  %v4602_v8 = vld [vmem:[%s6911_s5 + $0x8] sm:$0xff] }
 0xbfd   :  { %6357 = vrcp.f32 %v4118_v35  ;;  %v4299_v15 = vmax.f32 %v4291_v7, 0.0  ;;  %v4601_v7 = vld [vmem:[%s6911_s5] sm:$0xff]  ;;  %s6762_s5 = smov [#allocation31]  }
 0xbfe   :  { %v4298_v12 = vmax.f32 %v4290_v11, 0.0  ;;  %v5830_v14 = vpop.f32.mrb[66].mxu1  ;;  %v6171_v9 = vpack.c.bf16 %v4602_v8, %v4601_v7  ;;  %v4958_v11 = vld [vmem:[%s7628_s16] ss:$0 sm:$0xff]  ;;  %s4755_s15 = sshll.u32 %s6762_s5, 4  ;;  %s4756_s15 = int_to_ptr.vmem [resolvable:$true] %s4755_s15 }
 0xbff   :  { %v4293_v16 = vadd.f32 %v5830_v14, %v4152_v13  ;;  %v4261_v19 = vpop.f32.mrb[67].mxu1  ;;  %s6671_s12 = scalar_lea.vmem %s4756_s15, 1024  ;;  %p6676_p1 = scmp.lt.s32.totalorder %s4756_s15, %s4756_s15 }
 0xc00   :  { %v4292_v20 = vadd.f32 %v4261_v19, %v4151_v17  ;;  %5845 = vmatprep.mubr.msk.f32.mxu0 %vm780_vm7, %v4298_v12  ;;  %6172 = vmatprep.subr.bf16.mxu0 %v6171_v9  ;;  %p6672_p0 = scmp.ne.s32.totalorder %s4756_s15, %s6671_s12  ;;  %p6677_p2 = scmp.lt.s32.totalorder %s6671_s12, %s6671_s12 }
 0xc01   :  { %5846 = vmatmul.mubr.msk.f32.vlgmr.msra.gmra.mrb[64].mxu0 %vm780_vm7, %v4299_v15  ;;  %v4301_v25 = vmax.f32 %v4293_v16, 0.0  ;;  %v6352_v33 = vpop.eup %6351 }
 0xc02   :  { %v4300_v21 = vmax.f32 %v4292_v20, 0.0  ;;  %v5833_v24 = vpop.f32.mrb[68].mxu1  ;;  %v6354_v37 = vpop.eup %6353  ;;  %v4131_v27 = vadd.f32 1.0, %v6352_v33  ;;  %6174 = vmatpush3.bf16.msra.mxu0 %v6171_v9  ;;  %p6678_p3 = por %p6677_p2, %p6676_p1 }
 0xc03   :  { %v4295_v30 = vadd.f32 %v5833_v24, %v4154_v23  ;;  %v4271_v32 = vpop.f32.mrb[69].mxu1 }
 0xc04   :  { %v4294_v36 = vadd.f32 %v4271_v32, %v4153_v31  ;;  %5848 = vmatprep.mubr.msk.f32.mxu0 %vm780_vm7, %v4300_v21  ;;  %6359 = vrcp.f32 %v4131_v27  ;;  %p6679_p4 = pnand %p6678_p3, %p6672_p0 }
 0xc05   :  { %5849 = vmatmul.mubr.msk.f32.gmra.mrb[66].mxu0 %vm780_vm7, %v4301_v25  ;;  %v4303_v34 = vmax.f32 %v4295_v30, 0.0 }
 0xc06   :  { %v6356_v39 = vpop.eup %6355  ;;  %v4302_v40 = vmax.f32 %v4294_v36, 0.0 }
 0xc07   :  { %v6358_v28 = vpop.eup %6357  ;;  %v4135_v10 = vmul.f32 %v6356_v39, %v6354_v37 }
 0xc08   :  { %v4134_v38 = vmul.f32 %v6358_v28, %v7494_v26  ;;  %5851 = vmatprep.mubr.msk.f32.mxu0 %vm780_vm7, %v4302_v40  ;;  %v7535_v26 = vld [vmem:[%s7627_s30] ss:$0 sm:$0xff] }
 0xc09   :  { %5852 = vmatmul.mubr.msk.f32.gmra.mrb[68].mxu0 %vm780_vm7, %v4303_v34 }
 0xc0a   :  { %v4136_v41 = vadd.f32 %v4135_v10, %v4134_v38  ;;  %v4967_v38 = vld [vmem:[#allocation7] ss:$0 sm:$0xff] }
 0xc0c   :  { %6361 = vtanh.f32 %v4136_v41 }
 0xc0e   :  { %v6360_v42 = vpop.eup %6359 }
 0xc16   :  { %v6362_v43 = vpop.eup %6361 }
 0xc17   :  { %v4138_v44 = vmul.f32 %v6362_v43, %v6360_v42 }
 0xc19   :  { %4140 = vst.msk [vmem:[#allocation31 + $0x38] sm:$0xff] %vm780_vm7, %v4138_v44 }
 0xc20   :  { %v4148_v45 = vld [vmem:[#allocation31 + $0x38] sm:$0xff] }
 0xc21   :  { %5835 = vmatmul.mubr.msk.f32.gmra.mrb[70].mxu1 %vm780_vm7, %v4148_v45 }
 0xcd4   :  { %v5847_v49 = vpop.f32.mrb[64].mxu0 }
 0xcd5   :  { %v4413_v50 = vadd.f32 %v5847_v49, %v7535_v26  ;;  %v4407_v51 = vpop.f32.mrb[65].mxu0 }
 0xcd6   :  { %v4408_v52 = vadd.f32 %v7535_v26, %v4407_v51 }
 0xcd7   :  { %v4447_v55 = vmax.f32 %v4413_v50, 0.0 }
 0xcd8   :  { %v4446_v53 = vmax.f32 %v4408_v52, 0.0  ;;  %v5850_v54 = vpop.f32.mrb[66].mxu0 }
 0xcd9   :  { %v4423_v56 = vadd.f32 %v5850_v54, %v7535_v26  ;;  %v4417_v57 = vpop.f32.mrb[67].mxu0 }
 0xcda   :  { %v4418_v58 = vadd.f32 %v7535_v26, %v4417_v57  ;;  %5861 = vmatprep.mubr.msk.f32.mxu1 %vm4463_vm9, %v4446_v53 }
 0xcdb   :  { %5862 = vmatmul.mubr.msk.f32.vlgmr.msra.gmra.mrb[72].mxu1 %vm4463_vm9, %v4447_v55  ;;  %v4449_v18 = vmax.f32 %v4423_v56, 0.0 }
 0xcdc   :  { %v4448_v59 = vmax.f32 %v4418_v58, 0.0  ;;  %v5853_v60 = vpop.f32.mrb[68].mxu0 }
 0xcdd   :  { %v4433_v29 = vadd.f32 %v5853_v60, %v7535_v26  ;;  %v4427_v61 = vpop.f32.mrb[69].mxu0 }
 0xcde   :  { %v4428_v62 = vadd.f32 %v7535_v26, %v4427_v61  ;;  %5864 = vmatprep.mubr.msk.f32.mxu1 %vm4463_vm9, %v4448_v59 }
 0xcdf   :  { %5865 = vmatmul.mubr.msk.f32.gmra.mrb[74].mxu1 %vm4463_vm9, %v4449_v18  ;;  %v4451_v0 = vmax.f32 %v4433_v29, 0.0 }
 0xce0   :  { %v4450_v63 = vmax.f32 %v4428_v62, 0.0 }
 0xce2   :  { %5867 = vmatprep.mubr.msk.f32.mxu1 %vm4463_vm9, %v4450_v63 }
 0xce3   :  { %5868 = vmatmul.mubr.msk.f32.gmra.mrb[76].mxu1 %vm4463_vm9, %v4451_v0 }
 0xcf4   :  { %v5836_v2 = vpop.f32.mrb[70].mxu1 }
 0xcf5   :  { %v4297_v3 = vadd.f32 %v5836_v2, %v4156_v1  ;;  %v4281_v5 = vpop.f32.mrb[71].mxu1 }
 0xcf6   :  { %v4296_v22 = vadd.f32 %v4281_v5, %v4155_v4 }
 0xcf7   :  { %v4305_v35 = vmax.f32 %v4297_v3, 0.0 }
 0xcf8   :  { %v4304_v6 = vmax.f32 %v4296_v22, 0.0 }
 0xcfa   :  { %5854 = vmatprep.mubr.msk.f32.mxu0 %vm780_vm7, %v4304_v6 }
 0xcfb   :  { %5855 = vmatmul.mubr.msk.f32.gmra.mrb[70].mxu0 %vm780_vm7, %v4305_v35 }
 0xdae   :  { %v5863_v12 = vpop.f32.mrb[72].mxu1 }
 0xdaf   :  { %v4560_v13 = vadd.f32 %v5863_v12, %v4958_v11  ;;  %v4554_v14 = vpop.f32.mrb[73].mxu1 }
 0xdb0   :  { %v4555_v15 = vadd.f32 %v4958_v11, %v4554_v14 }
 0xdb1   :  { %v4594_v19 = vmax.f32 %v4560_v13, 0.0 }
 0xdb2   :  { %v4593_v16 = vmax.f32 %v4555_v15, 0.0  ;;  %v5866_v17 = vpop.f32.mrb[74].mxu1 }
 0xdb3   :  { %v4570_v20 = vadd.f32 %v5866_v17, %v4958_v11  ;;  %v4564_v21 = vpop.f32.mrb[75].mxu1 }
 0xdb4   :  { %v4565_v23 = vadd.f32 %v4958_v11, %v4564_v21  ;;  %5877 = vmatprep.mubr.msk.f32.mxu0 %vm4463_vm9, %v4593_v16 }
 0xdb5   :  { %5878 = vmatmul.mubr.msk.f32.vlgmr.msra.gmra.mrb[72].mxu0 %vm4463_vm9, %v4594_v19  ;;  %v4596_v30 = vmax.f32 %v4570_v20, 0.0 }
 0xdb6   :  { %v4595_v24 = vmax.f32 %v4565_v23, 0.0  ;;  %v5869_v25 = vpop.f32.mrb[76].mxu1 }
 0xdb7   :  { %v4580_v31 = vadd.f32 %v5869_v25, %v4958_v11  ;;  %v4574_v32 = vpop.f32.mrb[77].mxu1 }
 0xdb8   :  { %v4575_v33 = vadd.f32 %v4958_v11, %v4574_v32  ;;  %5880 = vmatprep.mubr.msk.f32.mxu0 %vm4463_vm9, %v4595_v24 }
 0xdb9   :  { %5881 = vmatmul.mubr.msk.f32.gmra.mrb[74].mxu0 %vm4463_vm9, %v4596_v30  ;;  %v4598_v37 = vmax.f32 %v4580_v31, 0.0 }
 0xdba   :  { %v4597_v36 = vmax.f32 %v4575_v33, 0.0 }
 0xdbc   :  { %5883 = vmatprep.mubr.msk.f32.mxu0 %vm4463_vm9, %v4597_v36 }
 0xdbd   :  { %5884 = vmatmul.mubr.msk.f32.gmra.mrb[76].mxu0 %vm4463_vm9, %v4598_v37 }
 0xdce   :  { %v5856_v39 = vpop.f32.mrb[70].mxu0 }
 0xdcf   :  { %v4443_v40 = vadd.f32 %v5856_v39, %v7535_v26  ;;  %v4437_v28 = vpop.f32.mrb[71].mxu0 }
 0xdd0   :  { %v4438_v10 = vadd.f32 %v7535_v26, %v4437_v28 }
 0xdd1   :  { %v4453_v34 = vmax.f32 %v4443_v40, 0.0 }
 0xdd2   :  { %v4452_v27 = vmax.f32 %v4438_v10, 0.0 }
 0xdd4   :  { %5870 = vmatprep.mubr.msk.f32.mxu1 %vm4463_vm9, %v4452_v27 }
 0xdd5   :  { %5871 = vmatmul.mubr.msk.f32.gmra.mrb[78].mxu1 %vm4463_vm9, %v4453_v34 }
 0xe88   :  { %v5879_v41 = vpop.f32.mrb[72].mxu0 }
 0xe89   :  { %v4706_v42 = vadd.f32 %v5879_v41, %v4967_v38  ;;  %v4700_v43 = vpop.f32.mrb[73].mxu0 }
 0xe8a   :  { %v4701_v44 = vadd.f32 %v4967_v38, %v4700_v43 }
 0xe8b   :  { %4741 = vst.msk [vmem:[%s6919_s9 + $0x8] sm:$0xff] %vm4739_vm10, %v4706_v42 }
 0xe8c   :  { %4740 = vst.msk [vmem:[%s6919_s9] sm:$0xff] %vm4739_vm10, %v4701_v44  ;;  %v5882_v45 = vpop.f32.mrb[74].mxu0 }
 0xe8d   :  { %v4716_v46 = vadd.f32 %v5882_v45, %v4967_v38  ;;  %v4710_v47 = vpop.f32.mrb[75].mxu0 }
 0xe8e   :  { %v4711_v48 = vadd.f32 %v4967_v38, %v4710_v47 }
 0xe8f   :  { %4743 = vst.msk [vmem:[%s6919_s9 + $0x18] sm:$0xff] %vm4739_vm10, %v4716_v46 }
 0xe90   :  { %4742 = vst.msk [vmem:[%s6919_s9 + $0x10] sm:$0xff] %vm4739_vm10, %v4711_v48  ;;  %v5885_v26 = vpop.f32.mrb[76].mxu0 }
 0xe91   :  { %v4726_v49 = vadd.f32 %v5885_v26, %v4967_v38  ;;  %v4720_v50 = vpop.f32.mrb[77].mxu0 }
 0xe92   :  { %v4721_v51 = vadd.f32 %v4967_v38, %v4720_v50 }
 0xe93   :  { %4745 = vst.msk [vmem:[%s6919_s9 + $0x28] sm:$0xff] %vm4739_vm10, %v4726_v49 }
 0xe94   :  { %4744 = vst.msk [vmem:[%s6919_s9 + $0x20] sm:$0xff] %vm4739_vm10, %v4721_v51 }
 0xea8   :  { %v5872_v52 = vpop.f32.mrb[78].mxu1 }
 0xea9   :  { %v4590_v53 = vadd.f32 %v5872_v52, %v4958_v11  ;;  %v4584_v54 = vpop.f32.mrb[79].mxu1 }
 0xeaa   :  { %v4585_v55 = vadd.f32 %v4958_v11, %v4584_v54 }
 0xeab   :  { %v4600_v57 = vmax.f32 %v4590_v53, 0.0 }
 0xeac   :  { %v4599_v56 = vmax.f32 %v4585_v55, 0.0 }
 0xeae   :  { %5886 = vmatprep.mubr.msk.f32.mxu0 %vm4463_vm9, %v4599_v56 }
 0xeaf   :  { %5887 = vmatmul.mubr.msk.f32.gmra.mrb[78].mxu0 %vm4463_vm9, %v4600_v57 }
 0xeb0   :  { %6682 = shalt.err (!%p6679_p4)
}
 0xeb1   :  { %s6683_s18 = scalar_lea.hbm %s6924_s3, 1024 }
 0xeb2   :  { %p6684_p5 = scmp.ne.s32.totalorder %s6924_s3, %s6683_s18  ;;  %p6687_p6 = scmp.lt.u32.totalorder %s6683_s18, %s6924_s3 }
 0xeb4   :  { %p6689_p7 = pnand %p6687_p6, %p6684_p5 }
 0xeb6   :  { %6692 = shalt.err (!%p6689_p7)
}
 0xeb7   :  { %4761 = dma.vmem_to_hbm [thread:$0]  %s4756_s15, 1024, %s6924_s3, [#allocation10], %s6746_s29, %s6746_s29, %s6747_s22  }
 0xf82   :  { %v5888_v58 = vpop.f32.mrb[78].mxu0 }
 0xf83   :  { %v4736_v59 = vadd.f32 %v5888_v58, %v4967_v38  ;;  %v4730_v60 = vpop.f32.mrb[79].mxu0 }
 0xf84   :  { %v4731_v18 = vadd.f32 %v4967_v38, %v4730_v60 }
 0xf85   :  { %4747 = vst.msk [vmem:[%s6919_s9 + $0x38] sm:$0xff] %vm4739_vm10, %v4736_v59 }
 0xf86   :  { %4746 = vst.msk [vmem:[%s6919_s9 + $0x30] sm:$0xff] %vm4739_vm10, %v4731_v18 }
 0xf87   :  { %6709 = dma.done.wait [#allocation10], 1024  }
 0xf88   :  { %6710 = vsyncadd [#allocation10], 4294966272 }
 0xf89   :  { %4767 = vsyncpa [#allocation9], 1 }
 0xf8a   :  { %4768 = vsyncpa [#allocation12], 1 }
 0xf8b   :  { %4769 = vsyncpa [#allocation15], 1 }
 0xf8c   :  { %4770 = vsyncpa [#allocation18], 1 }
 0xf8d   :  { %4771 = vsyncpa [#allocation21], 1 }
 0xf8e   :  { %4772 = vsyncpa [#allocation24], 1 }
 0xf8f   :  { %4773 = vsyncpa [#allocation27], 1 }
 0xf90   :  { %4774 = vsyncpa [#allocation30], 1 }
 0xf91   :  { %4775 = vsyncpa [#allocation10], 1 }

</bundles_post_ra>
